<compile_context>
chip_gen: v7x
topology: tpu7x:2x2x1
jax: 0.10.0
libtpu: 0.0.40
codegen_flags: <defaults>
</compile_context>

<pallas_src>
import math
import functools

import jax
import jax.numpy as jnp
from jax.experimental import pallas as pl
from jax.experimental.pallas import tpu as pltpu


# ----------------------------------------------------------------------------
# In-kernel helpers (trace-time Python; operate on values / refs inside kernels)
# ----------------------------------------------------------------------------

def _layer_norm(x, g, b, eps):
    mu = jnp.mean(x, axis=-1, keepdims=True)
    xc = x - mu
    var = jnp.mean(xc * xc, axis=-1, keepdims=True)
    return xc * jax.lax.rsqrt(var + eps) * g + b


def _softmax_rows(s):
    s = s - jnp.max(s, axis=-1, keepdims=True)
    p = jnp.exp(s)
    return p * pl.reciprocal(jnp.sum(p, axis=-1, keepdims=True), approx=True)


def _attend_heads(q, k, v, attn_sc, nhead, hd, scale):
    """q:(Sq,D)  k,v:(Sk,D); per-head attention, results written into attn_sc (Sq,D)."""
    for h in range(nhead):
        lo, hi = h * hd, (h + 1) * hd
        qh, kh, vh = q[:, lo:hi], k[:, lo:hi], v[:, lo:hi]
        s = jax.lax.dot_general(qh, kh, (((1,), (1,)), ((), ())),
                                preferred_element_type=jnp.float32) * scale
        p = _softmax_rows(s)
        attn_sc[:, lo:hi] = jnp.dot(p, vh, preferred_element_type=jnp.float32)
    return attn_sc[...]


def _mha_self(x, wqkv, bqkv, wout, bout, attn_sc, nhead, scale):
    D = x.shape[-1]
    hd = D // nhead
    qkv = jnp.dot(x, wqkv, preferred_element_type=jnp.float32) + bqkv
    o = _attend_heads(qkv[:, :D], qkv[:, D:2 * D], qkv[:, 2 * D:],
                      attn_sc, nhead, hd, scale)
    return jnp.dot(o, wout, preferred_element_type=jnp.float32) + bout


def _mha_cross(xq, xkv, wq, bq, wkv, bkv, wout, bout, attn_sc, nhead, scale):
    D = xq.shape[-1]
    hd = D // nhead
    q = jnp.dot(xq, wq, preferred_element_type=jnp.float32) + bq
    kv = jnp.dot(xkv, wkv, preferred_element_type=jnp.float32) + bkv
    o = _attend_heads(q, kv[:, :D], kv[:, D:], attn_sc, nhead, hd, scale)
    return jnp.dot(o, wout, preferred_element_type=jnp.float32) + bout


def _ffn(x, w1, b1, w2, b2):
    f = jnp.maximum(jnp.dot(x, w1, preferred_element_type=jnp.float32) + b1, 0.0)
    return jnp.dot(f, w2, preferred_element_type=jnp.float32) + b2


# ----------------------------------------------------------------------------
# Pallas kernels
# ----------------------------------------------------------------------------

def _pe_scale_add_kernel(x_ref, pe_ref, o_ref, *, scale):
    # x:(B,S,D) * sqrt(ninp) + pe:(S,D) (broadcast over B inside the kernel)
    o_ref[...] = x_ref[...] * scale + pe_ref[...]


def _layernorm_kernel(x_ref, g_ref, b_ref, o_ref, *, eps):
    o_ref[...] = _layer_norm(x_ref[...], g_ref[...], b_ref[...], eps)


def _encoder_layer_kernel(src_ref, wqkv_ref, bqkv_ref, wout_ref, bout_ref,
                          n1w_ref, n1b_ref, w1_ref, b1_ref, w2_ref, b2_ref,
                          n2w_ref, n2b_ref, o_ref, attn_sc, *, nhead, eps, scale):
    x = src_ref[0]                                              # (S, D)
    a = _mha_self(x, wqkv_ref[...], bqkv_ref[...], wout_ref[...], bout_ref[...],
                  attn_sc, nhead, scale)
    h = _layer_norm(x + a, n1w_ref[...], n1b_ref[...], eps)
    f = _ffn(h, w1_ref[...], b1_ref[...], w2_ref[...], b2_ref[...])
    o_ref[0] = _layer_norm(h + f, n2w_ref[...], n2b_ref[...], eps)


def _decoder_layer_kernel(tgt_ref, mem_ref,
                          s_wqkv_ref, s_bqkv_ref, s_wout_ref, s_bout_ref,
                          n1w_ref, n1b_ref,
                          c_wq_ref, c_bq_ref, c_wkv_ref, c_bkv_ref,
                          c_wout_ref, c_bout_ref, n2w_ref, n2b_ref,
                          w1_ref, b1_ref, w2_ref, b2_ref, n3w_ref, n3b_ref,
                          o_ref, attn_sc, *, nhead, eps, scale):
    x = tgt_ref[0]                                              # (S, D)
    m = mem_ref[0]                                              # (S, D)
    a = _mha_self(x, s_wqkv_ref[...], s_bqkv_ref[...], s_wout_ref[...],
                  s_bout_ref[...], attn_sc, nhead, scale)
    h = _layer_norm(x + a, n1w_ref[...], n1b_ref[...], eps)
    a2 = _mha_cross(h, m, c_wq_ref[...], c_bq_ref[...], c_wkv_ref[...],
                    c_bkv_ref[...], c_wout_ref[...], c_bout_ref[...],
                    attn_sc, nhead, scale)
    h2 = _layer_norm(h + a2, n2w_ref[...], n2b_ref[...], eps)
    f = _ffn(h2, w1_ref[...], b1_ref[...], w2_ref[...], b2_ref[...])
    o_ref[0] = _layer_norm(h2 + f, n3w_ref[...], n3b_ref[...], eps)


# ----------------------------------------------------------------------------
# pallas_call wrappers
# ----------------------------------------------------------------------------

def _w_spec(arr):
    nd = arr.ndim
    return pl.BlockSpec(arr.shape, lambda *_: (0,) * nd)   # whole-array block


def pe_scale_add(v, pe, scale):
    B, S, D = v.shape
    return pl.pallas_call(
        functools.partial(_pe_scale_add_kernel, scale=scale),
        out_shape=jax.ShapeDtypeStruct((B, S, D), jnp.float32),
        grid=(1,),
        in_specs=[pl.BlockSpec((B, S, D), lambda i: (0, 0, 0)),
                  pl.BlockSpec((S, D), lambda i: (0, 0))],      # first S rows of pe
        out_specs=pl.BlockSpec((B, S, D), lambda i: (0, 0, 0)),
        compiler_params=pltpu.CompilerParams(dimension_semantics=("arbitrary",)),
    )(v, pe)


def layernorm(x, g, b, eps):
    B, S, D = x.shape
    return pl.pallas_call(
        functools.partial(_layernorm_kernel, eps=eps),
        out_shape=jax.ShapeDtypeStruct((B, S, D), jnp.float32),
        grid=(1,),
        in_specs=[pl.BlockSpec((B, S, D), lambda i: (0, 0, 0)),
                  _w_spec(g), _w_spec(b)],
        out_specs=pl.BlockSpec((B, S, D), lambda i: (0, 0, 0)),
        compiler_params=pltpu.CompilerParams(dimension_semantics=("arbitrary",)),
    )(x, g, b)


_ENC_WNAMES = ("wqkv", "bqkv", "wout", "bout", "n1w", "n1b",
               "w1", "b1", "w2", "b2", "n2w", "n2b")

_DEC_WNAMES = ("s_wqkv", "s_bqkv", "s_wout", "s_bout", "n1w", "n1b",
               "c_wq", "c_bq", "c_wkv", "c_bkv", "c_wout", "c_bout",
               "n2w", "n2b", "w1", "b1", "w2", "b2", "n3w", "n3b")


def encoder_layer(src, p, nhead, eps):
    B, S, D = src.shape
    hd = D // nhead
    weights = [p[n] for n in _ENC_WNAMES]
    return pl.pallas_call(
        functools.partial(_encoder_layer_kernel, nhead=nhead, eps=eps,
                          scale=1.0 / math.sqrt(hd)),
        out_shape=jax.ShapeDtypeStruct((B, S, D), jnp.float32),
        grid=(B,),
        in_specs=[pl.BlockSpec((1, S, D), lambda b: (b, 0, 0))]
                 + [_w_spec(w) for w in weights],
        out_specs=pl.BlockSpec((1, S, D), lambda b: (b, 0, 0)),
        scratch_shapes=[pltpu.VMEM((S, D), jnp.float32)],
        compiler_params=pltpu.CompilerParams(dimension_semantics=("parallel",)),
    )(src, *weights)


def decoder_layer(tgt, memory, p, nhead, eps):
    B, S, D = tgt.shape
    hd = D // nhead
    weights = [p[n] for n in _DEC_WNAMES]
    return pl.pallas_call(
        functools.partial(_decoder_layer_kernel, nhead=nhead, eps=eps,
                          scale=1.0 / math.sqrt(hd)),
        out_shape=jax.ShapeDtypeStruct((B, S, D), jnp.float32),
        grid=(B,),
        in_specs=[pl.BlockSpec((1, S, D), lambda b: (b, 0, 0)),
                  pl.BlockSpec((1, S, D), lambda b: (b, 0, 0))]
                 + [_w_spec(w) for w in weights],
        out_specs=pl.BlockSpec((1, S, D), lambda b: (b, 0, 0)),
        scratch_shapes=[pltpu.VMEM((S, D), jnp.float32)],
        compiler_params=pltpu.CompilerParams(dimension_semantics=("parallel",)),
    )(tgt, memory, *weights)


# ----------------------------------------------------------------------------
# Forward pass
# ----------------------------------------------------------------------------

def make_pe(max_len, d_model):
    position = jnp.arange(max_len, dtype=jnp.float32)[:, None]
    div_term = jnp.exp(jnp.arange(0, d_model, 2, dtype=jnp.float32)
                       * (-math.log(10000.0) / d_model))
    pe_sin = jnp.sin(position * div_term)
    pe_cos = jnp.cos(position * div_term)
    return jnp.stack([pe_sin, pe_cos], axis=-1).reshape(max_len, d_model)


def position_attention_forward(x, params, nhead=4, eps=1e-5):
    N, E, H, W = x.shape
    D = params["pe"].shape[1]
    assert N == D, "reference code requires batch N == in_channels (see layout note)"
    S, B = H * W, E
    # reference layout: (S, B, D) = (HW, E, N); we compute in (B, S, D) internally.
    v = x.reshape(N, E, S).transpose(1, 2, 0)            # (B, S, D)
    v = pe_scale_add(v, params["pe"], math.sqrt(float(D)))   # ninp == in_channels == D
    # encoder stack + final norm
    mem = v
    for lp in params["enc_layers"]:
        mem = encoder_layer(mem, lp, nhead, eps)
    mem = layernorm(mem, params["enc_norm_w"], params["enc_norm_b"], eps)
    # decoder stack (tgt = v, memory = encoder output) + final norm
    out = v
    for lp in params["dec_layers"]:
        out = decoder_layer(out, mem, lp, nhead, eps)
    out = layernorm(out, params["dec_norm_w"], params["dec_norm_b"], eps)
    return out.transpose(1, 0, 2)                        # (S, B, D) = (HW, E, N)


# ----------------------------------------------------------------------------
# Deterministic parameter initialization (synthetic — no checkpoint loading).
# Weights are stored pre-transposed / pre-split in the layout the kernels consume.
# ----------------------------------------------------------------------------

def _init_self_attn(key, D):
    k1, k2 = jax.random.split(key)
    s = 1.0 / math.sqrt(D)
    return {"wqkv": jax.random.normal(k1, (D, 3 * D), jnp.float32) * s,
            "bqkv": jnp.zeros((1, 3 * D), jnp.float32),
            "wout": jax.random.normal(k2, (D, D), jnp.float32) * s,
            "bout": jnp.zeros((1, D), jnp.float32)}


def _init_cross_attn(key, D):
    k1, k2, k3 = jax.random.split(key, 3)
    s = 1.0 / math.sqrt(D)
    return {"wq": jax.random.normal(k1, (D, D), jnp.float32) * s,
            "bq": jnp.zeros((1, D), jnp.float32),
            "wkv": jax.random.normal(k2, (D, 2 * D), jnp.float32) * s,
            "bkv": jnp.zeros((1, 2 * D), jnp.float32),
            "wout": jax.random.normal(k3, (D, D), jnp.float32) * s,
            "bout": jnp.zeros((1, D), jnp.float32)}


def _init_ffn(key, D, FF):
    k1, k2 = jax.random.split(key)
    return {"w1": jax.random.normal(k1, (D, FF), jnp.float32) / math.sqrt(D),
            "b1": jnp.zeros((1, FF), jnp.float32),
            "w2": jax.random.normal(k2, (FF, D), jnp.float32) / math.sqrt(FF),
            "b2": jnp.zeros((1, D), jnp.float32)}


def _init_enc_layer(key, D, FF):
    k1, k2 = jax.random.split(key)
    p = dict(_init_self_attn(k1, D))
    p.update(_init_ffn(k2, D, FF))
    ones, zeros = jnp.ones((1, D), jnp.float32), jnp.zeros((1, D), jnp.float32)
    p.update({"n1w": ones, "n1b": zeros, "n2w": ones, "n2b": zeros})
    return p


def _init_dec_layer(key, D, FF):
    k1, k2, k3 = jax.random.split(key, 3)
    p = {"s_" + k: v for k, v in _init_self_attn(k1, D).items()}
    p.update({"c_" + k: v for k, v in _init_cross_attn(k2, D).items()})
    p.update(_init_ffn(k3, D, FF))
    ones, zeros = jnp.ones((1, D), jnp.float32), jnp.zeros((1, D), jnp.float32)
    p.update({"n1w": ones, "n1b": zeros, "n2w": ones, "n2b": zeros,
              "n3w": ones, "n3b": zeros})
    return p


if __name__ == "__main__":
    # small shapes: in_channels (= d_model) = 16, so batch N = 16 (see layout note),
    # E = 2 acts as the transformer batch, H = W = 4 -> sequence length 16.
    IN_CHANNELS = 16
    NHEAD = 4
    FF = 2048                # nn.Transformer default dim_feedforward
    MAX_LEN = 512            # PositionalEncoding default max_len
    N, E, H, W = IN_CHANNELS, 2, 4, 4

    keys = jax.random.split(jax.random.PRNGKey(42), 4)
    params = {
        "pe": make_pe(MAX_LEN, IN_CHANNELS),
        "enc_layers": [_init_enc_layer(keys[0], IN_CHANNELS, FF),
                       _init_enc_layer(keys[1], IN_CHANNELS, FF)],
        "dec_layers": [_init_dec_layer(keys[2], IN_CHANNELS, FF),
                       _init_dec_layer(keys[3], IN_CHANNELS, FF)],
        "enc_norm_w": jnp.ones((1, IN_CHANNELS), jnp.float32),
        "enc_norm_b": jnp.zeros((1, IN_CHANNELS), jnp.float32),
        "dec_norm_w": jnp.ones((1, IN_CHANNELS), jnp.float32),
        "dec_norm_b": jnp.zeros((1, IN_CHANNELS), jnp.float32),
    }

    x = jax.random.normal(jax.random.PRNGKey(0), (N, E, H, W), jnp.float32)

    fwd = jax.jit(lambda xx, pp: position_attention_forward(xx, pp, nhead=NHEAD, eps=1e-5))
    out = jax.block_until_ready(fwd(x, params))

    assert out.shape == (H * W, E, N), out.shape
    assert bool(jnp.all(jnp.isfinite(out)))
    print("KERNEL_OK")
</pallas_src>

<mosaic_0001>
module attributes {stable_mosaic.version = 11 : i64} {
  func.func @_pe_scale_add_kernel(%arg0: i32, %arg1: memref<2x16x16xf32, #tpu.memory_space<vmem>>, %arg2: memref<16x16xf32, #tpu.memory_space<vmem>>, %arg3: memref<2x16x16xf32, #tpu.memory_space<vmem>>) attributes {dimension_semantics = [#tpu.dimension_semantics<arbitrary>], iteration_bounds = array<i64: 1>, scalar_prefetch = 0 : i64, scratch_operands = 0 : i64, tpu.core_type = #tpu.core_type<tc>, window_params = [{pipeline_mode = #tpu.pipeline_mode<synchronous>, transform_indices = @transform_0, window_bounds = array<i64: 2, 16, 16>}, {transform_indices = @transform_1, window_bounds = array<i64: 16, 16>}, {pipeline_mode = #tpu.pipeline_mode<synchronous>, transform_indices = @transform_2, window_bounds = array<i64: 2, 16, 16>}]} {
    %c0 = arith.constant 0 : index
    %c0_0 = arith.constant 0 : index
    %c0_1 = arith.constant 0 : index
    %0 = vector.load %arg1[%c0, %c0_0, %c0_1] : memref<2x16x16xf32, #tpu.memory_space<vmem>>, vector<2x16x16xf32>
    %cst = arith.constant 4.000000e+00 : f32
    %1 = vector.broadcast %cst : f32 to vector<2x16x16xf32>
    %2 = arith.mulf %0, %1 : vector<2x16x16xf32>
    %c0_2 = arith.constant 0 : index
    %c0_3 = arith.constant 0 : index
    %3 = vector.load %arg2[%c0_2, %c0_3] : memref<16x16xf32, #tpu.memory_space<vmem>>, vector<16x16xf32>
    %4 = vector.shape_cast %3 : vector<16x16xf32> to vector<1x16x16xf32>
    %5 = vector.broadcast %4 : vector<1x16x16xf32> to vector<2x16x16xf32>
    %6 = arith.addf %2, %5 : vector<2x16x16xf32>
    %c0_4 = arith.constant 0 : index
    %c0_5 = arith.constant 0 : index
    %c0_6 = arith.constant 0 : index
    %7 = vector.load %arg3[%c0_4, %c0_5, %c0_6] : memref<2x16x16xf32, #tpu.memory_space<vmem>>, vector<2x16x16xf32>
    tpu.vector_store %arg3[%c0_4, %c0_5, %c0_6], %6 {strides = array<i32>} : memref<2x16x16xf32, #tpu.memory_space<vmem>>, vector<2x16x16xf32>,
    return
  }
  func.func @transform_0(%arg0: i32) -> (i32, i32, i32) {
    %c0_i32 = arith.constant 0 : i32
    %c0_i32_0 = arith.constant 0 : i32
    %c0_i32_1 = arith.constant 0 : i32
    %c0_i32_2 = arith.constant 0 : i32
    return %c0_i32, %c0_i32_0, %c0_i32_1 : i32, i32, i32
  }
  func.func @transform_1(%arg0: i32) -> (i32, i32) {
    %c0_i32 = arith.constant 0 : i32
    %c0_i32_0 = arith.constant 0 : i32
    %c0_i32_1 = arith.constant 0 : i32
    return %c0_i32, %c0_i32_0 : i32, i32
  }
  func.func @transform_2(%arg0: i32) -> (i32, i32, i32) {
    %c0_i32 = arith.constant 0 : i32
    %c0_i32_0 = arith.constant 0 : i32
    %c0_i32_1 = arith.constant 0 : i32
    %c0_i32_2 = arith.constant 0 : i32
    return %c0_i32, %c0_i32_0, %c0_i32_1 : i32, i32, i32
  }
}

module attributes {stable_mosaic.version = 11 : i64} {
  func.func @_encoder_layer_kernel(%arg0: i32, %arg1: memref<1x16x16xf32, #tpu.memory_space<vmem>>, %arg2: memref<16x48xf32, #tpu.memory_space<vmem>>, %arg3: memref<1x48xf32, #tpu.memory_space<vmem>>, %arg4: memref<16x16xf32, #tpu.memory_space<vmem>>, %arg5: memref<1x16xf32, #tpu.memory_space<vmem>>, %arg6: memref<1x16xf32, #tpu.memory_space<vmem>>, %arg7: memref<1x16xf32, #tpu.memory_space<vmem>>, %arg8: memref<16x2048xf32, #tpu.memory_space<vmem>>, %arg9: memref<1x2048xf32, #tpu.memory_space<vmem>>, %arg10: memref<2048x16xf32, #tpu.memory_space<vmem>>, %arg11: memref<1x16xf32, #tpu.memory_space<vmem>>, %arg12: memref<1x16xf32, #tpu.memory_space<vmem>>, %arg13: memref<1x16xf32, #tpu.memory_space<vmem>>, %arg14: memref<1x16x16xf32, #tpu.memory_space<vmem>>, %arg15: memref<16x16xf32, #tpu.memory_space<vmem>>) attributes {dimension_semantics = [#tpu.dimension_semantics<parallel>], iteration_bounds = array<i64: 2>, scalar_prefetch = 0 : i64, scratch_operands = 1 : i64, tpu.core_type = #tpu.core_type<tc>, window_params = [{transform_indices = @transform_0, window_bounds = array<i64: 1, 16, 16>}, {pipeline_mode = #tpu.pipeline_mode<synchronous>, transform_indices = @transform_1, window_bounds = array<i64: 16, 48>}, {pipeline_mode = #tpu.pipeline_mode<synchronous>, transform_indices = @transform_2, window_bounds = array<i64: 1, 48>}, {pipeline_mode = #tpu.pipeline_mode<synchronous>, transform_indices = @transform_3, window_bounds = array<i64: 16, 16>}, {pipeline_mode = #tpu.pipeline_mode<synchronous>, transform_indices = @transform_4, window_bounds = array<i64: 1, 16>}, {pipeline_mode = #tpu.pipeline_mode<synchronous>, transform_indices = @transform_5, window_bounds = array<i64: 1, 16>}, {pipeline_mode = #tpu.pipeline_mode<synchronous>, transform_indices = @transform_6, window_bounds = array<i64: 1, 16>}, {pipeline_mode = #tpu.pipeline_mode<synchronous>, transform_indices = @transform_7, window_bounds = array<i64: 16, 2048>}, {pipeline_mode = #tpu.pipeline_mode<synchronous>, transform_indices = @transform_8, window_bounds = array<i64: 1, 2048>}, {pipeline_mode = #tpu.pipeline_mode<synchronous>, transform_indices = @transform_9, window_bounds = array<i64: 2048, 16>}, {pipeline_mode = #tpu.pipeline_mode<synchronous>, transform_indices = @transform_10, window_bounds = array<i64: 1, 16>}, {pipeline_mode = #tpu.pipeline_mode<synchronous>, transform_indices = @transform_11, window_bounds = array<i64: 1, 16>}, {pipeline_mode = #tpu.pipeline_mode<synchronous>, transform_indices = @transform_12, window_bounds = array<i64: 1, 16>}, {transform_indices = @transform_13, window_bounds = array<i64: 1, 16, 16>}]} {
    %c0 = arith.constant 0 : index
    %c0_0 = arith.constant 0 : index
    %c0_1 = arith.constant 0 : index
    %0 = vector.load %arg1[%c0, %c0_0, %c0_1] : memref<1x16x16xf32, #tpu.memory_space<vmem>>, vector<1x16x16xf32>
    %1 = vector.shape_cast %0 : vector<1x16x16xf32> to vector<16x16xf32>
    %c0_2 = arith.constant 0 : index
    %c0_3 = arith.constant 0 : index
    %2 = vector.load %arg2[%c0_2, %c0_3] : memref<16x48xf32, #tpu.memory_space<vmem>>, vector<16x48xf32>
    %c0_4 = arith.constant 0 : index
    %c0_5 = arith.constant 0 : index
    %3 = vector.load %arg3[%c0_4, %c0_5] : memref<1x48xf32, #tpu.memory_space<vmem>>, vector<1x48xf32>
    %c0_6 = arith.constant 0 : index
    %c0_7 = arith.constant 0 : index
    %4 = vector.load %arg4[%c0_6, %c0_7] : memref<16x16xf32, #tpu.memory_space<vmem>>, vector<16x16xf32>
    %c0_8 = arith.constant 0 : index
    %c0_9 = arith.constant 0 : index
    %5 = vector.load %arg5[%c0_8, %c0_9] : memref<1x16xf32, #tpu.memory_space<vmem>>, vector<1x16xf32>
    %cst = arith.constant dense<0.000000e+00> : vector<16x48xf32>
    %6 = tpu.matmul %1, %2, %cst {dimension_numbers = #tpu.dot_dimension_numbers<[1], [0], [0], [1], [0, 0, 1, 1], [], []>} : vector<16x16xf32>, vector<16x48xf32>, vector<16x48xf32> -> vector<16x48xf32>
    %7 = vector.broadcast %3 : vector<1x48xf32> to vector<16x48xf32>
    %8 = arith.addf %6, %7 : vector<16x48xf32>
    %9 = vector.extract_strided_slice %8 {offsets = [0, 0], sizes = [16, 16], strides = [1, 1]} : vector<16x48xf32> to vector<16x16xf32>
    %10 = vector.extract_strided_slice %8 {offsets = [0, 16], sizes = [16, 16], strides = [1, 1]} : vector<16x48xf32> to vector<16x16xf32>
    %11 = vector.extract_strided_slice %8 {offsets = [0, 32], sizes = [16, 16], strides = [1, 1]} : vector<16x48xf32> to vector<16x16xf32>
    %12 = vector.extract_strided_slice %9 {offsets = [0, 0], sizes = [16, 4], strides = [1, 1]} : vector<16x16xf32> to vector<16x4xf32>
    %13 = vector.extract_strided_slice %10 {offsets = [0, 0], sizes = [16, 4], strides = [1, 1]} : vector<16x16xf32> to vector<16x4xf32>
    %14 = vector.extract_strided_slice %11 {offsets = [0, 0], sizes = [16, 4], strides = [1, 1]} : vector<16x16xf32> to vector<16x4xf32>
    %cst_10 = arith.constant dense<0.000000e+00> : vector<16x16xf32>
    %15 = tpu.matmul %12, %13, %cst_10 {dimension_numbers = #tpu.dot_dimension_numbers<[1], [1], [0], [0], [0, 0, 1, 0], [], []>} : vector<16x4xf32>, vector<16x4xf32>, vector<16x16xf32> -> vector<16x16xf32>
    %cst_11 = arith.constant 5.000000e-01 : f32
    %16 = vector.broadcast %cst_11 : f32 to vector<16x16xf32>
    %17 = arith.mulf %15, %16 : vector<16x16xf32>
    %cst_12 = arith.constant dense<0xFF800000> : vector<16xf32>
    %18 = vector.multi_reduction <maximumf>, %17, %cst_12 [1] : vector<16x16xf32> to vector<16xf32>
    %19 = vector.shape_cast %18 : vector<16xf32> to vector<16x1xf32>
    %20 = vector.broadcast %19 : vector<16x1xf32> to vector<16x16xf32>
    %21 = arith.subf %17, %20 : vector<16x16xf32>
    %22 = math.exp %21 : vector<16x16xf32>
    %cst_13 = arith.constant dense<0.000000e+00> : vector<16xf32>
    %23 = vector.multi_reduction <add>, %22, %cst_13 [1] : vector<16x16xf32> to vector<16xf32>
    %24 = vector.shape_cast %23 : vector<16xf32> to vector<16x1xf32>
    %25 = tpu.reciprocal %24 {approx = true} : vector<16x1xf32> -> vector<16x1xf32>
    %26 = vector.broadcast %25 : vector<16x1xf32> to vector<16x16xf32>
    %27 = arith.mulf %22, %26 : vector<16x16xf32>
    %cst_14 = arith.constant dense<0.000000e+00> : vector<16x4xf32>
    %28 = tpu.matmul %27, %14, %cst_14 {dimension_numbers = #tpu.dot_dimension_numbers<[1], [0], [0], [1], [0, 0, 1, 1], [], []>} : vector<16x16xf32>, vector<16x4xf32>, vector<16x4xf32> -> vector<16x4xf32>
    %c0_15 = arith.constant 0 : index
    %c0_16 = arith.constant 0 : index
    %29 = vector.load %arg15[%c0_15, %c0_16] : memref<16x16xf32, #tpu.memory_space<vmem>>, vector<16x4xf32>
    tpu.vector_store %arg15[%c0_15, %c0_16], %28 {strides = array<i32>} : memref<16x16xf32, #tpu.memory_space<vmem>>, vector<16x4xf32>,
    %30 = vector.extract_strided_slice %9 {offsets = [0, 4], sizes = [16, 4], strides = [1, 1]} : vector<16x16xf32> to vector<16x4xf32>
    %31 = vector.extract_strided_slice %10 {offsets = [0, 4], sizes = [16, 4], strides = [1, 1]} : vector<16x16xf32> to vector<16x4xf32>
    %32 = vector.extract_strided_slice %11 {offsets = [0, 4], sizes = [16, 4], strides = [1, 1]} : vector<16x16xf32> to vector<16x4xf32>
    %cst_17 = arith.constant dense<0.000000e+00> : vector<16x16xf32>
    %33 = tpu.matmul %30, %31, %cst_17 {dimension_numbers = #tpu.dot_dimension_numbers<[1], [1], [0], [0], [0, 0, 1, 0], [], []>} : vector<16x4xf32>, vector<16x4xf32>, vector<16x16xf32> -> vector<16x16xf32>
    %cst_18 = arith.constant 5.000000e-01 : f32
    %34 = vector.broadcast %cst_18 : f32 to vector<16x16xf32>
    %35 = arith.mulf %33, %34 : vector<16x16xf32>
    %cst_19 = arith.constant dense<0xFF800000> : vector<16xf32>
    %36 = vector.multi_reduction <maximumf>, %35, %cst_19 [1] : vector<16x16xf32> to vector<16xf32>
    %37 = vector.shape_cast %36 : vector<16xf32> to vector<16x1xf32>
    %38 = vector.broadcast %37 : vector<16x1xf32> to vector<16x16xf32>
    %39 = arith.subf %35, %38 : vector<16x16xf32>
    %40 = math.exp %39 : vector<16x16xf32>
    %cst_20 = arith.constant dense<0.000000e+00> : vector<16xf32>
    %41 = vector.multi_reduction <add>, %40, %cst_20 [1] : vector<16x16xf32> to vector<16xf32>
    %42 = vector.shape_cast %41 : vector<16xf32> to vector<16x1xf32>
    %43 = tpu.reciprocal %42 {approx = true} : vector<16x1xf32> -> vector<16x1xf32>
    %44 = vector.broadcast %43 : vector<16x1xf32> to vector<16x16xf32>
    %45 = arith.mulf %40, %44 : vector<16x16xf32>
    %cst_21 = arith.constant dense<0.000000e+00> : vector<16x4xf32>
    %46 = tpu.matmul %45, %32, %cst_21 {dimension_numbers = #tpu.dot_dimension_numbers<[1], [0], [0], [1], [0, 0, 1, 1], [], []>} : vector<16x16xf32>, vector<16x4xf32>, vector<16x4xf32> -> vector<16x4xf32>
    %c0_22 = arith.constant 0 : index
    %c4 = arith.constant 4 : index
    %47 = vector.load %arg15[%c0_22, %c4] : memref<16x16xf32, #tpu.memory_space<vmem>>, vector<16x4xf32>
    tpu.vector_store %arg15[%c0_22, %c4], %46 {strides = array<i32>} : memref<16x16xf32, #tpu.memory_space<vmem>>, vector<16x4xf32>,
    %48 = vector.extract_strided_slice %9 {offsets = [0, 8], sizes = [16, 4], strides = [1, 1]} : vector<16x16xf32> to vector<16x4xf32>
    %49 = vector.extract_strided_slice %10 {offsets = [0, 8], sizes = [16, 4], strides = [1, 1]} : vector<16x16xf32> to vector<16x4xf32>
    %50 = vector.extract_strided_slice %11 {offsets = [0, 8], sizes = [16, 4], strides = [1, 1]} : vector<16x16xf32> to vector<16x4xf32>
    %cst_23 = arith.constant dense<0.000000e+00> : vector<16x16xf32>
    %51 = tpu.matmul %48, %49, %cst_23 {dimension_numbers = #tpu.dot_dimension_numbers<[1], [1], [0], [0], [0, 0, 1, 0], [], []>} : vector<16x4xf32>, vector<16x4xf32>, vector<16x16xf32> -> vector<16x16xf32>
    %cst_24 = arith.constant 5.000000e-01 : f32
    %52 = vector.broadcast %cst_24 : f32 to vector<16x16xf32>
    %53 = arith.mulf %51, %52 : vector<16x16xf32>
    %cst_25 = arith.constant dense<0xFF800000> : vector<16xf32>
    %54 = vector.multi_reduction <maximumf>, %53, %cst_25 [1] : vector<16x16xf32> to vector<16xf32>
    %55 = vector.shape_cast %54 : vector<16xf32> to vector<16x1xf32>
    %56 = vector.broadcast %55 : vector<16x1xf32> to vector<16x16xf32>
    %57 = arith.subf %53, %56 : vector<16x16xf32>
    %58 = math.exp %57 : vector<16x16xf32>
    %cst_26 = arith.constant dense<0.000000e+00> : vector<16xf32>
    %59 = vector.multi_reduction <add>, %58, %cst_26 [1] : vector<16x16xf32> to vector<16xf32>
    %60 = vector.shape_cast %59 : vector<16xf32> to vector<16x1xf32>
    %61 = tpu.reciprocal %60 {approx = true} : vector<16x1xf32> -> vector<16x1xf32>
    %62 = vector.broadcast %61 : vector<16x1xf32> to vector<16x16xf32>
    %63 = arith.mulf %58, %62 : vector<16x16xf32>
    %cst_27 = arith.constant dense<0.000000e+00> : vector<16x4xf32>
    %64 = tpu.matmul %63, %50, %cst_27 {dimension_numbers = #tpu.dot_dimension_numbers<[1], [0], [0], [1], [0, 0, 1, 1], [], []>} : vector<16x16xf32>, vector<16x4xf32>, vector<16x4xf32> -> vector<16x4xf32>
    %c0_28 = arith.constant 0 : index
    %c8 = arith.constant 8 : index
    %65 = vector.load %arg15[%c0_28, %c8] : memref<16x16xf32, #tpu.memory_space<vmem>>, vector<16x4xf32>
    tpu.vector_store %arg15[%c0_28, %c8], %64 {strides = array<i32>} : memref<16x16xf32, #tpu.memory_space<vmem>>, vector<16x4xf32>,
    %66 = vector.extract_strided_slice %9 {offsets = [0, 12], sizes = [16, 4], strides = [1, 1]} : vector<16x16xf32> to vector<16x4xf32>
    %67 = vector.extract_strided_slice %10 {offsets = [0, 12], sizes = [16, 4], strides = [1, 1]} : vector<16x16xf32> to vector<16x4xf32>
    %68 = vector.extract_strided_slice %11 {offsets = [0, 12], sizes = [16, 4], strides = [1, 1]} : vector<16x16xf32> to vector<16x4xf32>
    %cst_29 = arith.constant dense<0.000000e+00> : vector<16x16xf32>
    %69 = tpu.matmul %66, %67, %cst_29 {dimension_numbers = #tpu.dot_dimension_numbers<[1], [1], [0], [0], [0, 0, 1, 0], [], []>} : vector<16x4xf32>, vector<16x4xf32>, vector<16x16xf32> -> vector<16x16xf32>
    %cst_30 = arith.constant 5.000000e-01 : f32
    %70 = vector.broadcast %cst_30 : f32 to vector<16x16xf32>
    %71 = arith.mulf %69, %70 : vector<16x16xf32>
    %cst_31 = arith.constant dense<0xFF800000> : vector<16xf32>
    %72 = vector.multi_reduction <maximumf>, %71, %cst_31 [1] : vector<16x16xf32> to vector<16xf32>
    %73 = vector.shape_cast %72 : vector<16xf32> to vector<16x1xf32>
    %74 = vector.broadcast %73 : vector<16x1xf32> to vector<16x16xf32>
    %75 = arith.subf %71, %74 : vector<16x16xf32>
    %76 = math.exp %75 : vector<16x16xf32>
    %cst_32 = arith.constant dense<0.000000e+00> : vector<16xf32>
    %77 = vector.multi_reduction <add>, %76, %cst_32 [1] : vector<16x16xf32> to vector<16xf32>
    %78 = vector.shape_cast %77 : vector<16xf32> to vector<16x1xf32>
    %79 = tpu.reciprocal %78 {approx = true} : vector<16x1xf32> -> vector<16x1xf32>
    %80 = vector.broadcast %79 : vector<16x1xf32> to vector<16x16xf32>
    %81 = arith.mulf %76, %80 : vector<16x16xf32>
    %cst_33 = arith.constant dense<0.000000e+00> : vector<16x4xf32>
    %82 = tpu.matmul %81, %68, %cst_33 {dimension_numbers = #tpu.dot_dimension_numbers<[1], [0], [0], [1], [0, 0, 1, 1], [], []>} : vector<16x16xf32>, vector<16x4xf32>, vector<16x4xf32> -> vector<16x4xf32>
    %c0_34 = arith.constant 0 : index
    %c12 = arith.constant 12 : index
    %83 = vector.load %arg15[%c0_34, %c12] : memref<16x16xf32, #tpu.memory_space<vmem>>, vector<16x4xf32>
    tpu.vector_store %arg15[%c0_34, %c12], %82 {strides = array<i32>} : memref<16x16xf32, #tpu.memory_space<vmem>>, vector<16x4xf32>,
    %c0_35 = arith.constant 0 : index
    %c0_36 = arith.constant 0 : index
    %84 = vector.load %arg15[%c0_35, %c0_36] : memref<16x16xf32, #tpu.memory_space<vmem>>, vector<16x16xf32>
    %cst_37 = arith.constant dense<0.000000e+00> : vector<16x16xf32>
    %85 = tpu.matmul %84, %4, %cst_37 {dimension_numbers = #tpu.dot_dimension_numbers<[1], [0], [0], [1], [0, 0, 1, 1], [], []>} : vector<16x16xf32>, vector<16x16xf32>, vector<16x16xf32> -> vector<16x16xf32>
    %86 = vector.broadcast %5 : vector<1x16xf32> to vector<16x16xf32>
    %87 = arith.addf %85, %86 : vector<16x16xf32>
    %88 = arith.addf %1, %87 : vector<16x16xf32>
    %c0_38 = arith.constant 0 : index
    %c0_39 = arith.constant 0 : index
    %89 = vector.load %arg6[%c0_38, %c0_39] : memref<1x16xf32, #tpu.memory_space<vmem>>, vector<1x16xf32>
    %c0_40 = arith.constant 0 : index
    %c0_41 = arith.constant 0 : index
    %90 = vector.load %arg7[%c0_40, %c0_41] : memref<1x16xf32, #tpu.memory_space<vmem>>, vector<1x16xf32>
    %cst_42 = arith.constant dense<0.000000e+00> : vector<16xf32>
    %91 = vector.multi_reduction <add>, %88, %cst_42 [1] : vector<16x16xf32> to vector<16xf32>
    %92 = vector.shape_cast %91 : vector<16xf32> to vector<16x1xf32>
    %cst_43 = arith.constant 1.600000e+01 : f32
    %93 = vector.broadcast %cst_43 : f32 to vector<16x1xf32>
    %94 = arith.divf %92, %93 : vector<16x1xf32>
    %95 = vector.broadcast %94 : vector<16x1xf32> to vector<16x16xf32>
    %96 = arith.subf %88, %95 : vector<16x16xf32>
    %97 = arith.mulf %96, %96 : vector<16x16xf32>
    %cst_44 = arith.constant dense<0.000000e+00> : vector<16xf32>
    %98 = vector.multi_reduction <add>, %97, %cst_44 [1] : vector<16x16xf32> to vector<16xf32>
    %99 = vector.shape_cast %98 : vector<16xf32> to vector<16x1xf32>
    %cst_45 = arith.constant 1.600000e+01 : f32
    %100 = vector.broadcast %cst_45 : f32 to vector<16x1xf32>
    %101 = arith.divf %99, %100 : vector<16x1xf32>
    %cst_46 = arith.constant 9.99999974E-6 : f32
    %102 = vector.broadcast %cst_46 : f32 to vector<16x1xf32>
    %103 = arith.addf %101, %102 : vector<16x1xf32>
    %104 = math.rsqrt %103 : vector<16x1xf32>
    %105 = vector.broadcast %104 : vector<16x1xf32> to vector<16x16xf32>
    %106 = arith.mulf %96, %105 : vector<16x16xf32>
    %107 = vector.broadcast %89 : vector<1x16xf32> to vector<16x16xf32>
    %108 = arith.mulf %106, %107 : vector<16x16xf32>
    %109 = vector.broadcast %90 : vector<1x16xf32> to vector<16x16xf32>
    %110 = arith.addf %108, %109 : vector<16x16xf32>
    %c0_47 = arith.constant 0 : index
    %c0_48 = arith.constant 0 : index
    %111 = vector.load %arg8[%c0_47, %c0_48] : memref<16x2048xf32, #tpu.memory_space<vmem>>, vector<16x2048xf32>
    %c0_49 = arith.constant 0 : index
    %c0_50 = arith.constant 0 : index
    %112 = vector.load %arg9[%c0_49, %c0_50] : memref<1x2048xf32, #tpu.memory_space<vmem>>, vector<1x2048xf32>
    %c0_51 = arith.constant 0 : index
    %c0_52 = arith.constant 0 : index
    %113 = vector.load %arg10[%c0_51, %c0_52] : memref<2048x16xf32, #tpu.memory_space<vmem>>, vector<2048x16xf32>
    %c0_53 = arith.constant 0 : index
    %c0_54 = arith.constant 0 : index
    %114 = vector.load %arg11[%c0_53, %c0_54] : memref<1x16xf32, #tpu.memory_space<vmem>>, vector<1x16xf32>
    %cst_55 = arith.constant dense<0.000000e+00> : vector<16x2048xf32>
    %115 = tpu.matmul %110, %111, %cst_55 {dimension_numbers = #tpu.dot_dimension_numbers<[1], [0], [0], [1], [0, 0, 1, 1], [], []>} : vector<16x16xf32>, vector<16x2048xf32>, vector<16x2048xf32> -> vector<16x2048xf32>
    %116 = vector.broadcast %112 : vector<1x2048xf32> to vector<16x2048xf32>
    %117 = arith.addf %115, %116 : vector<16x2048xf32>
    %cst_56 = arith.constant 0.000000e+00 : f32
    %118 = vector.broadcast %cst_56 : f32 to vector<16x2048xf32>
    %119 = arith.maximumf %117, %118 : vector<16x2048xf32>
    %cst_57 = arith.constant dense<0.000000e+00> : vector<16x16xf32>
    %120 = tpu.matmul %119, %113, %cst_57 {dimension_numbers = #tpu.dot_dimension_numbers<[1], [0], [0], [1], [0, 0, 1, 1], [], []>} : vector<16x2048xf32>, vector<2048x16xf32>, vector<16x16xf32> -> vector<16x16xf32>
    %121 = vector.broadcast %114 : vector<1x16xf32> to vector<16x16xf32>
    %122 = arith.addf %120, %121 : vector<16x16xf32>
    %123 = arith.addf %110, %122 : vector<16x16xf32>
    %c0_58 = arith.constant 0 : index
    %c0_59 = arith.constant 0 : index
    %124 = vector.load %arg12[%c0_58, %c0_59] : memref<1x16xf32, #tpu.memory_space<vmem>>, vector<1x16xf32>
    %c0_60 = arith.constant 0 : index
    %c0_61 = arith.constant 0 : index
    %125 = vector.load %arg13[%c0_60, %c0_61] : memref<1x16xf32, #tpu.memory_space<vmem>>, vector<1x16xf32>
    %cst_62 = arith.constant dense<0.000000e+00> : vector<16xf32>
    %126 = vector.multi_reduction <add>, %123, %cst_62 [1] : vector<16x16xf32> to vector<16xf32>
    %127 = vector.shape_cast %126 : vector<16xf32> to vector<16x1xf32>
    %cst_63 = arith.constant 1.600000e+01 : f32
    %128 = vector.broadcast %cst_63 : f32 to vector<16x1xf32>
    %129 = arith.divf %127, %128 : vector<16x1xf32>
    %130 = vector.broadcast %129 : vector<16x1xf32> to vector<16x16xf32>
    %131 = arith.subf %123, %130 : vector<16x16xf32>
    %132 = arith.mulf %131, %131 : vector<16x16xf32>
    %cst_64 = arith.constant dense<0.000000e+00> : vector<16xf32>
    %133 = vector.multi_reduction <add>, %132, %cst_64 [1] : vector<16x16xf32> to vector<16xf32>
    %134 = vector.shape_cast %133 : vector<16xf32> to vector<16x1xf32>
    %cst_65 = arith.constant 1.600000e+01 : f32
    %135 = vector.broadcast %cst_65 : f32 to vector<16x1xf32>
    %136 = arith.divf %134, %135 : vector<16x1xf32>
    %cst_66 = arith.constant 9.99999974E-6 : f32
    %137 = vector.broadcast %cst_66 : f32 to vector<16x1xf32>
    %138 = arith.addf %136, %137 : vector<16x1xf32>
    %139 = math.rsqrt %138 : vector<16x1xf32>
    %140 = vector.broadcast %139 : vector<16x1xf32> to vector<16x16xf32>
    %141 = arith.mulf %131, %140 : vector<16x16xf32>
    %142 = vector.broadcast %124 : vector<1x16xf32> to vector<16x16xf32>
    %143 = arith.mulf %141, %142 : vector<16x16xf32>
    %144 = vector.broadcast %125 : vector<1x16xf32> to vector<16x16xf32>
    %145 = arith.addf %143, %144 : vector<16x16xf32>
    %c0_67 = arith.constant 0 : index
    %c0_68 = arith.constant 0 : index
    %c0_69 = arith.constant 0 : index
    %146 = vector.load %arg14[%c0_67, %c0_68, %c0_69] : memref<1x16x16xf32, #tpu.memory_space<vmem>>, vector<1x16x16xf32>
    %147 = vector.shape_cast %146 : vector<1x16x16xf32> to vector<16x16xf32>
    %148 = vector.shape_cast %145 : vector<16x16xf32> to vector<1x16x16xf32>
    tpu.vector_store %arg14[%c0_67, %c0_68, %c0_69], %148 {strides = array<i32>} : memref<1x16x16xf32, #tpu.memory_space<vmem>>, vector<1x16x16xf32>,
    return
  }
  func.func @transform_0(%arg0: i32) -> (i32, i32, i32) {
    %c0_i32 = arith.constant 0 : i32
    %c0_i32_0 = arith.constant 0 : i32
    %c0_i32_1 = arith.constant 0 : i32
    return %arg0, %c0_i32, %c0_i32_0 : i32, i32, i32
  }
  func.func @transform_1(%arg0: i32) -> (i32, i32) {
    %c0_i32 = arith.constant 0 : i32
    %c0_i32_0 = arith.constant 0 : i32
    %c0_i32_1 = arith.constant 0 : i32
    return %c0_i32, %c0_i32_0 : i32, i32
  }
  func.func @transform_2(%arg0: i32) -> (i32, i32) {
    %c0_i32 = arith.constant 0 : i32
    %c0_i32_0 = arith.constant 0 : i32
    %c0_i32_1 = arith.constant 0 : i32
    return %c0_i32, %c0_i32_0 : i32, i32
  }
  func.func @transform_3(%arg0: i32) -> (i32, i32) {
    %c0_i32 = arith.constant 0 : i32
    %c0_i32_0 = arith.constant 0 : i32
    %c0_i32_1 = arith.constant 0 : i32
    return %c0_i32, %c0_i32_0 : i32, i32
  }
  func.func @transform_4(%arg0: i32) -> (i32, i32) {
    %c0_i32 = arith.constant 0 : i32
    %c0_i32_0 = arith.constant 0 : i32
    %c0_i32_1 = arith.constant 0 : i32
    return %c0_i32, %c0_i32_0 : i32, i32
  }
  func.func @transform_5(%arg0: i32) -> (i32, i32) {
    %c0_i32 = arith.constant 0 : i32
    %c0_i32_0 = arith.constant 0 : i32
    %c0_i32_1 = arith.constant 0 : i32
    return %c0_i32, %c0_i32_0 : i32, i32
  }
  func.func @transform_6(%arg0: i32) -> (i32, i32) {
    %c0_i32 = arith.constant 0 : i32
    %c0_i32_0 = arith.constant 0 : i32
    %c0_i32_1 = arith.constant 0 : i32
    return %c0_i32, %c0_i32_0 : i32, i32
  }
  func.func @transform_7(%arg0: i32) -> (i32, i32) {
    %c0_i32 = arith.constant 0 : i32
    %c0_i32_0 = arith.constant 0 : i32
    %c0_i32_1 = arith.constant 0 : i32
    return %c0_i32, %c0_i32_0 : i32, i32
  }
  func.func @transform_8(%arg0: i32) -> (i32, i32) {
    %c0_i32 = arith.constant 0 : i32
    %c0_i32_0 = arith.constant 0 : i32
    %c0_i32_1 = arith.constant 0 : i32
    return %c0_i32, %c0_i32_0 : i32, i32
  }
  func.func @transform_9(%arg0: i32) -> (i32, i32) {
    %c0_i32 = arith.constant 0 : i32
    %c0_i32_0 = arith.constant 0 : i32
    %c0_i32_1 = arith.constant 0 : i32
    return %c0_i32, %c0_i32_0 : i32, i32
  }
  func.func @transform_10(%arg0: i32) -> (i32, i32) {
    %c0_i32 = arith.constant 0 : i32
    %c0_i32_0 = arith.constant 0 : i32
    %c0_i32_1 = arith.constant 0 : i32
    return %c0_i32, %c0_i32_0 : i32, i32
  }
  func.func @transform_11(%arg0: i32) -> (i32, i32) {
    %c0_i32 = arith.constant 0 : i32
    %c0_i32_0 = arith.constant 0 : i32
    %c0_i32_1 = arith.constant 0 : i32
    return %c0_i32, %c0_i32_0 : i32, i32
  }
  func.func @transform_12(%arg0: i32) -> (i32, i32) {
    %c0_i32 = arith.constant 0 : i32
    %c0_i32_0 = arith.constant 0 : i32
    %c0_i32_1 = arith.constant 0 : i32
    return %c0_i32, %c0_i32_0 : i32, i32
  }
  func.func @transform_13(%arg0: i32) -> (i32, i32, i32) {
    %c0_i32 = arith.constant 0 : i32
    %c0_i32_0 = arith.constant 0 : i32
    %c0_i32_1 = arith.constant 0 : i32
    return %arg0, %c0_i32, %c0_i32_0 : i32, i32, i32
  }
}

module attributes {stable_mosaic.version = 11 : i64} {
  func.func @_layernorm_kernel(%arg0: i32, %arg1: memref<2x16x16xf32, #tpu.memory_space<vmem>>, %arg2: memref<1x16xf32, #tpu.memory_space<vmem>>, %arg3: memref<1x16xf32, #tpu.memory_space<vmem>>, %arg4: memref<2x16x16xf32, #tpu.memory_space<vmem>>) attributes {dimension_semantics = [#tpu.dimension_semantics<arbitrary>], iteration_bounds = array<i64: 1>, scalar_prefetch = 0 : i64, scratch_operands = 0 : i64, tpu.core_type = #tpu.core_type<tc>, window_params = [{pipeline_mode = #tpu.pipeline_mode<synchronous>, transform_indices = @transform_0, window_bounds = array<i64: 2, 16, 16>}, {pipeline_mode = #tpu.pipeline_mode<synchronous>, transform_indices = @transform_1, window_bounds = array<i64: 1, 16>}, {pipeline_mode = #tpu.pipeline_mode<synchronous>, transform_indices = @transform_2, window_bounds = array<i64: 1, 16>}, {pipeline_mode = #tpu.pipeline_mode<synchronous>, transform_indices = @transform_3, window_bounds = array<i64: 2, 16, 16>}]} {
    %c0 = arith.constant 0 : index
    %c0_0 = arith.constant 0 : index
    %c0_1 = arith.constant 0 : index
    %0 = vector.load %arg1[%c0, %c0_0, %c0_1] : memref<2x16x16xf32, #tpu.memory_space<vmem>>, vector<2x16x16xf32>
    %c0_2 = arith.constant 0 : index
    %c0_3 = arith.constant 0 : index
    %1 = vector.load %arg2[%c0_2, %c0_3] : memref<1x16xf32, #tpu.memory_space<vmem>>, vector<1x16xf32>
    %c0_4 = arith.constant 0 : index
    %c0_5 = arith.constant 0 : index
    %2 = vector.load %arg3[%c0_4, %c0_5] : memref<1x16xf32, #tpu.memory_space<vmem>>, vector<1x16xf32>
    %cst = arith.constant dense<0.000000e+00> : vector<2x16xf32>
    %3 = vector.multi_reduction <add>, %0, %cst [2] : vector<2x16x16xf32> to vector<2x16xf32>
    %4 = vector.shape_cast %3 : vector<2x16xf32> to vector<2x16x1xf32>
    %cst_6 = arith.constant 1.600000e+01 : f32
    %5 = vector.broadcast %cst_6 : f32 to vector<2x16x1xf32>
    %6 = arith.divf %4, %5 : vector<2x16x1xf32>
    %7 = vector.broadcast %6 : vector<2x16x1xf32> to vector<2x16x16xf32>
    %8 = arith.subf %0, %7 : vector<2x16x16xf32>
    %9 = arith.mulf %8, %8 : vector<2x16x16xf32>
    %cst_7 = arith.constant dense<0.000000e+00> : vector<2x16xf32>
    %10 = vector.multi_reduction <add>, %9, %cst_7 [2] : vector<2x16x16xf32> to vector<2x16xf32>
    %11 = vector.shape_cast %10 : vector<2x16xf32> to vector<2x16x1xf32>
    %cst_8 = arith.constant 1.600000e+01 : f32
    %12 = vector.broadcast %cst_8 : f32 to vector<2x16x1xf32>
    %13 = arith.divf %11, %12 : vector<2x16x1xf32>
    %cst_9 = arith.constant 9.99999974E-6 : f32
    %14 = vector.broadcast %cst_9 : f32 to vector<2x16x1xf32>
    %15 = arith.addf %13, %14 : vector<2x16x1xf32>
    %16 = math.rsqrt %15 : vector<2x16x1xf32>
    %17 = vector.broadcast %16 : vector<2x16x1xf32> to vector<2x16x16xf32>
    %18 = arith.mulf %8, %17 : vector<2x16x16xf32>
    %19 = vector.shape_cast %1 : vector<1x16xf32> to vector<1x1x16xf32>
    %20 = vector.broadcast %19 : vector<1x1x16xf32> to vector<2x16x16xf32>
    %21 = arith.mulf %18, %20 : vector<2x16x16xf32>
    %22 = vector.shape_cast %2 : vector<1x16xf32> to vector<1x1x16xf32>
    %23 = vector.broadcast %22 : vector<1x1x16xf32> to vector<2x16x16xf32>
    %24 = arith.addf %21, %23 : vector<2x16x16xf32>
    %c0_10 = arith.constant 0 : index
    %c0_11 = arith.constant 0 : index
    %c0_12 = arith.constant 0 : index
    %25 = vector.load %arg4[%c0_10, %c0_11, %c0_12] : memref<2x16x16xf32, #tpu.memory_space<vmem>>, vector<2x16x16xf32>
    tpu.vector_store %arg4[%c0_10, %c0_11, %c0_12], %24 {strides = array<i32>} : memref<2x16x16xf32, #tpu.memory_space<vmem>>, vector<2x16x16xf32>,
    return
  }
  func.func @transform_0(%arg0: i32) -> (i32, i32, i32) {
    %c0_i32 = arith.constant 0 : i32
    %c0_i32_0 = arith.constant 0 : i32
    %c0_i32_1 = arith.constant 0 : i32
    %c0_i32_2 = arith.constant 0 : i32
    return %c0_i32, %c0_i32_0, %c0_i32_1 : i32, i32, i32
  }
  func.func @transform_1(%arg0: i32) -> (i32, i32) {
    %c0_i32 = arith.constant 0 : i32
    %c0_i32_0 = arith.constant 0 : i32
    %c0_i32_1 = arith.constant 0 : i32
    return %c0_i32, %c0_i32_0 : i32, i32
  }
  func.func @transform_2(%arg0: i32) -> (i32, i32) {
    %c0_i32 = arith.constant 0 : i32
    %c0_i32_0 = arith.constant 0 : i32
    %c0_i32_1 = arith.constant 0 : i32
    return %c0_i32, %c0_i32_0 : i32, i32
  }
  func.func @transform_3(%arg0: i32) -> (i32, i32, i32) {
    %c0_i32 = arith.constant 0 : i32
    %c0_i32_0 = arith.constant 0 : i32
    %c0_i32_1 = arith.constant 0 : i32
    %c0_i32_2 = arith.constant 0 : i32
    return %c0_i32, %c0_i32_0, %c0_i32_1 : i32, i32, i32
  }
}

module attributes {stable_mosaic.version = 11 : i64} {
  func.func @_decoder_layer_kernel(%arg0: i32, %arg1: memref<1x16x16xf32, #tpu.memory_space<vmem>>, %arg2: memref<1x16x16xf32, #tpu.memory_space<vmem>>, %arg3: memref<16x48xf32, #tpu.memory_space<vmem>>, %arg4: memref<1x48xf32, #tpu.memory_space<vmem>>, %arg5: memref<16x16xf32, #tpu.memory_space<vmem>>, %arg6: memref<1x16xf32, #tpu.memory_space<vmem>>, %arg7: memref<1x16xf32, #tpu.memory_space<vmem>>, %arg8: memref<1x16xf32, #tpu.memory_space<vmem>>, %arg9: memref<16x16xf32, #tpu.memory_space<vmem>>, %arg10: memref<1x16xf32, #tpu.memory_space<vmem>>, %arg11: memref<16x32xf32, #tpu.memory_space<vmem>>, %arg12: memref<1x32xf32, #tpu.memory_space<vmem>>, %arg13: memref<16x16xf32, #tpu.memory_space<vmem>>, %arg14: memref<1x16xf32, #tpu.memory_space<vmem>>, %arg15: memref<1x16xf32, #tpu.memory_space<vmem>>, %arg16: memref<1x16xf32, #tpu.memory_space<vmem>>, %arg17: memref<16x2048xf32, #tpu.memory_space<vmem>>, %arg18: memref<1x2048xf32, #tpu.memory_space<vmem>>, %arg19: memref<2048x16xf32, #tpu.memory_space<vmem>>, %arg20: memref<1x16xf32, #tpu.memory_space<vmem>>, %arg21: memref<1x16xf32, #tpu.memory_space<vmem>>, %arg22: memref<1x16xf32, #tpu.memory_space<vmem>>, %arg23: memref<1x16x16xf32, #tpu.memory_space<vmem>>, %arg24: memref<16x16xf32, #tpu.memory_space<vmem>>) attributes {dimension_semantics = [#tpu.dimension_semantics<parallel>], iteration_bounds = array<i64: 2>, scalar_prefetch = 0 : i64, scratch_operands = 1 : i64, tpu.core_type = #tpu.core_type<tc>, window_params = [{transform_indices = @transform_0, window_bounds = array<i64: 1, 16, 16>}, {transform_indices = @transform_1, window_bounds = array<i64: 1, 16, 16>}, {pipeline_mode = #tpu.pipeline_mode<synchronous>, transform_indices = @transform_2, window_bounds = array<i64: 16, 48>}, {pipeline_mode = #tpu.pipeline_mode<synchronous>, transform_indices = @transform_3, window_bounds = array<i64: 1, 48>}, {pipeline_mode = #tpu.pipeline_mode<synchronous>, transform_indices = @transform_4, window_bounds = array<i64: 16, 16>}, {pipeline_mode = #tpu.pipeline_mode<synchronous>, transform_indices = @transform_5, window_bounds = array<i64: 1, 16>}, {pipeline_mode = #tpu.pipeline_mode<synchronous>, transform_indices = @transform_6, window_bounds = array<i64: 1, 16>}, {pipeline_mode = #tpu.pipeline_mode<synchronous>, transform_indices = @transform_7, window_bounds = array<i64: 1, 16>}, {pipeline_mode = #tpu.pipeline_mode<synchronous>, transform_indices = @transform_8, window_bounds = array<i64: 16, 16>}, {pipeline_mode = #tpu.pipeline_mode<synchronous>, transform_indices = @transform_9, window_bounds = array<i64: 1, 16>}, {pipeline_mode = #tpu.pipeline_mode<synchronous>, transform_indices = @transform_10, window_bounds = array<i64: 16, 32>}, {pipeline_mode = #tpu.pipeline_mode<synchronous>, transform_indices = @transform_11, window_bounds = array<i64: 1, 32>}, {pipeline_mode = #tpu.pipeline_mode<synchronous>, transform_indices = @transform_12, window_bounds = array<i64: 16, 16>}, {pipeline_mode = #tpu.pipeline_mode<synchronous>, transform_indices = @transform_13, window_bounds = array<i64: 1, 16>}, {pipeline_mode = #tpu.pipeline_mode<synchronous>, transform_indices = @transform_14, window_bounds = array<i64: 1, 16>}, {pipeline_mode = #tpu.pipeline_mode<synchronous>, transform_indices = @transform_15, window_bounds = array<i64: 1, 16>}, {pipeline_mode = #tpu.pipeline_mode<synchronous>, transform_indices = @transform_16, window_bounds = array<i64: 16, 2048>}, {pipeline_mode = #tpu.pipeline_mode<synchronous>, transform_indices = @transform_17, window_bounds = array<i64: 1, 2048>}, {pipeline_mode = #tpu.pipeline_mode<synchronous>, transform_indices = @transform_18, window_bounds = array<i64: 2048, 16>}, {pipeline_mode = #tpu.pipeline_mode<synchronous>, transform_indices = @transform_19, window_bounds = array<i64: 1, 16>}, {pipeline_mode = #tpu.pipeline_mode<synchronous>, transform_indices = @transform_20, window_bounds = array<i64: 1, 16>}, {pipeline_mode = #tpu.pipeline_mode<synchronous>, transform_indices = @transform_21, window_bounds = array<i64: 1, 16>}, {transform_indices = @transform_22, window_bounds = array<i64: 1, 16, 16>}]} {
    %c0 = arith.constant 0 : index
    %c0_0 = arith.constant 0 : index
    %c0_1 = arith.constant 0 : index
    %0 = vector.load %arg1[%c0, %c0_0, %c0_1] : memref<1x16x16xf32, #tpu.memory_space<vmem>>, vector<1x16x16xf32>
    %1 = vector.shape_cast %0 : vector<1x16x16xf32> to vector<16x16xf32>
    %c0_2 = arith.constant 0 : index
    %c0_3 = arith.constant 0 : index
    %c0_4 = arith.constant 0 : index
    %2 = vector.load %arg2[%c0_2, %c0_3, %c0_4] : memref<1x16x16xf32, #tpu.memory_space<vmem>>, vector<1x16x16xf32>
    %3 = vector.shape_cast %2 : vector<1x16x16xf32> to vector<16x16xf32>
    %c0_5 = arith.constant 0 : index
    %c0_6 = arith.constant 0 : index
    %4 = vector.load %arg3[%c0_5, %c0_6] : memref<16x48xf32, #tpu.memory_space<vmem>>, vector<16x48xf32>
    %c0_7 = arith.constant 0 : index
    %c0_8 = arith.constant 0 : index
    %5 = vector.load %arg4[%c0_7, %c0_8] : memref<1x48xf32, #tpu.memory_space<vmem>>, vector<1x48xf32>
    %c0_9 = arith.constant 0 : index
    %c0_10 = arith.constant 0 : index
    %6 = vector.load %arg5[%c0_9, %c0_10] : memref<16x16xf32, #tpu.memory_space<vmem>>, vector<16x16xf32>
    %c0_11 = arith.constant 0 : index
    %c0_12 = arith.constant 0 : index
    %7 = vector.load %arg6[%c0_11, %c0_12] : memref<1x16xf32, #tpu.memory_space<vmem>>, vector<1x16xf32>
    %cst = arith.constant dense<0.000000e+00> : vector<16x48xf32>
    %8 = tpu.matmul %1, %4, %cst {dimension_numbers = #tpu.dot_dimension_numbers<[1], [0], [0], [1], [0, 0, 1, 1], [], []>} : vector<16x16xf32>, vector<16x48xf32>, vector<16x48xf32> -> vector<16x48xf32>
    %9 = vector.broadcast %5 : vector<1x48xf32> to vector<16x48xf32>
    %10 = arith.addf %8, %9 : vector<16x48xf32>
    %11 = vector.extract_strided_slice %10 {offsets = [0, 0], sizes = [16, 16], strides = [1, 1]} : vector<16x48xf32> to vector<16x16xf32>
    %12 = vector.extract_strided_slice %10 {offsets = [0, 16], sizes = [16, 16], strides = [1, 1]} : vector<16x48xf32> to vector<16x16xf32>
    %13 = vector.extract_strided_slice %10 {offsets = [0, 32], sizes = [16, 16], strides = [1, 1]} : vector<16x48xf32> to vector<16x16xf32>
    %14 = vector.extract_strided_slice %11 {offsets = [0, 0], sizes = [16, 4], strides = [1, 1]} : vector<16x16xf32> to vector<16x4xf32>
    %15 = vector.extract_strided_slice %12 {offsets = [0, 0], sizes = [16, 4], strides = [1, 1]} : vector<16x16xf32> to vector<16x4xf32>
    %16 = vector.extract_strided_slice %13 {offsets = [0, 0], sizes = [16, 4], strides = [1, 1]} : vector<16x16xf32> to vector<16x4xf32>
    %cst_13 = arith.constant dense<0.000000e+00> : vector<16x16xf32>
    %17 = tpu.matmul %14, %15, %cst_13 {dimension_numbers = #tpu.dot_dimension_numbers<[1], [1], [0], [0], [0, 0, 1, 0], [], []>} : vector<16x4xf32>, vector<16x4xf32>, vector<16x16xf32> -> vector<16x16xf32>
    %cst_14 = arith.constant 5.000000e-01 : f32
    %18 = vector.broadcast %cst_14 : f32 to vector<16x16xf32>
    %19 = arith.mulf %17, %18 : vector<16x16xf32>
    %cst_15 = arith.constant dense<0xFF800000> : vector<16xf32>
    %20 = vector.multi_reduction <maximumf>, %19, %cst_15 [1] : vector<16x16xf32> to vector<16xf32>
    %21 = vector.shape_cast %20 : vector<16xf32> to vector<16x1xf32>
    %22 = vector.broadcast %21 : vector<16x1xf32> to vector<16x16xf32>
    %23 = arith.subf %19, %22 : vector<16x16xf32>
    %24 = math.exp %23 : vector<16x16xf32>
    %cst_16 = arith.constant dense<0.000000e+00> : vector<16xf32>
    %25 = vector.multi_reduction <add>, %24, %cst_16 [1] : vector<16x16xf32> to vector<16xf32>
    %26 = vector.shape_cast %25 : vector<16xf32> to vector<16x1xf32>
    %27 = tpu.reciprocal %26 {approx = true} : vector<16x1xf32> -> vector<16x1xf32>
    %28 = vector.broadcast %27 : vector<16x1xf32> to vector<16x16xf32>
    %29 = arith.mulf %24, %28 : vector<16x16xf32>
    %cst_17 = arith.constant dense<0.000000e+00> : vector<16x4xf32>
    %30 = tpu.matmul %29, %16, %cst_17 {dimension_numbers = #tpu.dot_dimension_numbers<[1], [0], [0], [1], [0, 0, 1, 1], [], []>} : vector<16x16xf32>, vector<16x4xf32>, vector<16x4xf32> -> vector<16x4xf32>
    %c0_18 = arith.constant 0 : index
    %c0_19 = arith.constant 0 : index
    %31 = vector.load %arg24[%c0_18, %c0_19] : memref<16x16xf32, #tpu.memory_space<vmem>>, vector<16x4xf32>
    tpu.vector_store %arg24[%c0_18, %c0_19], %30 {strides = array<i32>} : memref<16x16xf32, #tpu.memory_space<vmem>>, vector<16x4xf32>,
    %32 = vector.extract_strided_slice %11 {offsets = [0, 4], sizes = [16, 4], strides = [1, 1]} : vector<16x16xf32> to vector<16x4xf32>
    %33 = vector.extract_strided_slice %12 {offsets = [0, 4], sizes = [16, 4], strides = [1, 1]} : vector<16x16xf32> to vector<16x4xf32>
    %34 = vector.extract_strided_slice %13 {offsets = [0, 4], sizes = [16, 4], strides = [1, 1]} : vector<16x16xf32> to vector<16x4xf32>
    %cst_20 = arith.constant dense<0.000000e+00> : vector<16x16xf32>
    %35 = tpu.matmul %32, %33, %cst_20 {dimension_numbers = #tpu.dot_dimension_numbers<[1], [1], [0], [0], [0, 0, 1, 0], [], []>} : vector<16x4xf32>, vector<16x4xf32>, vector<16x16xf32> -> vector<16x16xf32>
    %cst_21 = arith.constant 5.000000e-01 : f32
    %36 = vector.broadcast %cst_21 : f32 to vector<16x16xf32>
    %37 = arith.mulf %35, %36 : vector<16x16xf32>
    %cst_22 = arith.constant dense<0xFF800000> : vector<16xf32>
    %38 = vector.multi_reduction <maximumf>, %37, %cst_22 [1] : vector<16x16xf32> to vector<16xf32>
    %39 = vector.shape_cast %38 : vector<16xf32> to vector<16x1xf32>
    %40 = vector.broadcast %39 : vector<16x1xf32> to vector<16x16xf32>
    %41 = arith.subf %37, %40 : vector<16x16xf32>
    %42 = math.exp %41 : vector<16x16xf32>
    %cst_23 = arith.constant dense<0.000000e+00> : vector<16xf32>
    %43 = vector.multi_reduction <add>, %42, %cst_23 [1] : vector<16x16xf32> to vector<16xf32>
    %44 = vector.shape_cast %43 : vector<16xf32> to vector<16x1xf32>
    %45 = tpu.reciprocal %44 {approx = true} : vector<16x1xf32> -> vector<16x1xf32>
    %46 = vector.broadcast %45 : vector<16x1xf32> to vector<16x16xf32>
    %47 = arith.mulf %42, %46 : vector<16x16xf32>
    %cst_24 = arith.constant dense<0.000000e+00> : vector<16x4xf32>
    %48 = tpu.matmul %47, %34, %cst_24 {dimension_numbers = #tpu.dot_dimension_numbers<[1], [0], [0], [1], [0, 0, 1, 1], [], []>} : vector<16x16xf32>, vector<16x4xf32>, vector<16x4xf32> -> vector<16x4xf32>
    %c0_25 = arith.constant 0 : index
    %c4 = arith.constant 4 : index
    %49 = vector.load %arg24[%c0_25, %c4] : memref<16x16xf32, #tpu.memory_space<vmem>>, vector<16x4xf32>
    tpu.vector_store %arg24[%c0_25, %c4], %48 {strides = array<i32>} : memref<16x16xf32, #tpu.memory_space<vmem>>, vector<16x4xf32>,
    %50 = vector.extract_strided_slice %11 {offsets = [0, 8], sizes = [16, 4], strides = [1, 1]} : vector<16x16xf32> to vector<16x4xf32>
    %51 = vector.extract_strided_slice %12 {offsets = [0, 8], sizes = [16, 4], strides = [1, 1]} : vector<16x16xf32> to vector<16x4xf32>
    %52 = vector.extract_strided_slice %13 {offsets = [0, 8], sizes = [16, 4], strides = [1, 1]} : vector<16x16xf32> to vector<16x4xf32>
    %cst_26 = arith.constant dense<0.000000e+00> : vector<16x16xf32>
    %53 = tpu.matmul %50, %51, %cst_26 {dimension_numbers = #tpu.dot_dimension_numbers<[1], [1], [0], [0], [0, 0, 1, 0], [], []>} : vector<16x4xf32>, vector<16x4xf32>, vector<16x16xf32> -> vector<16x16xf32>
    %cst_27 = arith.constant 5.000000e-01 : f32
    %54 = vector.broadcast %cst_27 : f32 to vector<16x16xf32>
    %55 = arith.mulf %53, %54 : vector<16x16xf32>
    %cst_28 = arith.constant dense<0xFF800000> : vector<16xf32>
    %56 = vector.multi_reduction <maximumf>, %55, %cst_28 [1] : vector<16x16xf32> to vector<16xf32>
    %57 = vector.shape_cast %56 : vector<16xf32> to vector<16x1xf32>
    %58 = vector.broadcast %57 : vector<16x1xf32> to vector<16x16xf32>
    %59 = arith.subf %55, %58 : vector<16x16xf32>
    %60 = math.exp %59 : vector<16x16xf32>
    %cst_29 = arith.constant dense<0.000000e+00> : vector<16xf32>
    %61 = vector.multi_reduction <add>, %60, %cst_29 [1] : vector<16x16xf32> to vector<16xf32>
    %62 = vector.shape_cast %61 : vector<16xf32> to vector<16x1xf32>
    %63 = tpu.reciprocal %62 {approx = true} : vector<16x1xf32> -> vector<16x1xf32>
    %64 = vector.broadcast %63 : vector<16x1xf32> to vector<16x16xf32>
    %65 = arith.mulf %60, %64 : vector<16x16xf32>
    %cst_30 = arith.constant dense<0.000000e+00> : vector<16x4xf32>
    %66 = tpu.matmul %65, %52, %cst_30 {dimension_numbers = #tpu.dot_dimension_numbers<[1], [0], [0], [1], [0, 0, 1, 1], [], []>} : vector<16x16xf32>, vector<16x4xf32>, vector<16x4xf32> -> vector<16x4xf32>
    %c0_31 = arith.constant 0 : index
    %c8 = arith.constant 8 : index
    %67 = vector.load %arg24[%c0_31, %c8] : memref<16x16xf32, #tpu.memory_space<vmem>>, vector<16x4xf32>
    tpu.vector_store %arg24[%c0_31, %c8], %66 {strides = array<i32>} : memref<16x16xf32, #tpu.memory_space<vmem>>, vector<16x4xf32>,
    %68 = vector.extract_strided_slice %11 {offsets = [0, 12], sizes = [16, 4], strides = [1, 1]} : vector<16x16xf32> to vector<16x4xf32>
    %69 = vector.extract_strided_slice %12 {offsets = [0, 12], sizes = [16, 4], strides = [1, 1]} : vector<16x16xf32> to vector<16x4xf32>
    %70 = vector.extract_strided_slice %13 {offsets = [0, 12], sizes = [16, 4], strides = [1, 1]} : vector<16x16xf32> to vector<16x4xf32>
    %cst_32 = arith.constant dense<0.000000e+00> : vector<16x16xf32>
    %71 = tpu.matmul %68, %69, %cst_32 {dimension_numbers = #tpu.dot_dimension_numbers<[1], [1], [0], [0], [0, 0, 1, 0], [], []>} : vector<16x4xf32>, vector<16x4xf32>, vector<16x16xf32> -> vector<16x16xf32>
    %cst_33 = arith.constant 5.000000e-01 : f32
    %72 = vector.broadcast %cst_33 : f32 to vector<16x16xf32>
    %73 = arith.mulf %71, %72 : vector<16x16xf32>
    %cst_34 = arith.constant dense<0xFF800000> : vector<16xf32>
    %74 = vector.multi_reduction <maximumf>, %73, %cst_34 [1] : vector<16x16xf32> to vector<16xf32>
    %75 = vector.shape_cast %74 : vector<16xf32> to vector<16x1xf32>
    %76 = vector.broadcast %75 : vector<16x1xf32> to vector<16x16xf32>
    %77 = arith.subf %73, %76 : vector<16x16xf32>
    %78 = math.exp %77 : vector<16x16xf32>
    %cst_35 = arith.constant dense<0.000000e+00> : vector<16xf32>
    %79 = vector.multi_reduction <add>, %78, %cst_35 [1] : vector<16x16xf32> to vector<16xf32>
    %80 = vector.shape_cast %79 : vector<16xf32> to vector<16x1xf32>
    %81 = tpu.reciprocal %80 {approx = true} : vector<16x1xf32> -> vector<16x1xf32>
    %82 = vector.broadcast %81 : vector<16x1xf32> to vector<16x16xf32>
    %83 = arith.mulf %78, %82 : vector<16x16xf32>
    %cst_36 = arith.constant dense<0.000000e+00> : vector<16x4xf32>
    %84 = tpu.matmul %83, %70, %cst_36 {dimension_numbers = #tpu.dot_dimension_numbers<[1], [0], [0], [1], [0, 0, 1, 1], [], []>} : vector<16x16xf32>, vector<16x4xf32>, vector<16x4xf32> -> vector<16x4xf32>
    %c0_37 = arith.constant 0 : index
    %c12 = arith.constant 12 : index
    %85 = vector.load %arg24[%c0_37, %c12] : memref<16x16xf32, #tpu.memory_space<vmem>>, vector<16x4xf32>
    tpu.vector_store %arg24[%c0_37, %c12], %84 {strides = array<i32>} : memref<16x16xf32, #tpu.memory_space<vmem>>, vector<16x4xf32>,
    %c0_38 = arith.constant 0 : index
    %c0_39 = arith.constant 0 : index
    %86 = vector.load %arg24[%c0_38, %c0_39] : memref<16x16xf32, #tpu.memory_space<vmem>>, vector<16x16xf32>
    %cst_40 = arith.constant dense<0.000000e+00> : vector<16x16xf32>
    %87 = tpu.matmul %86, %6, %cst_40 {dimension_numbers = #tpu.dot_dimension_numbers<[1], [0], [0], [1], [0, 0, 1, 1], [], []>} : vector<16x16xf32>, vector<16x16xf32>, vector<16x16xf32> -> vector<16x16xf32>
    %88 = vector.broadcast %7 : vector<1x16xf32> to vector<16x16xf32>
    %89 = arith.addf %87, %88 : vector<16x16xf32>
    %90 = arith.addf %1, %89 : vector<16x16xf32>
    %c0_41 = arith.constant 0 : index
    %c0_42 = arith.constant 0 : index
    %91 = vector.load %arg7[%c0_41, %c0_42] : memref<1x16xf32, #tpu.memory_space<vmem>>, vector<1x16xf32>
    %c0_43 = arith.constant 0 : index
    %c0_44 = arith.constant 0 : index
    %92 = vector.load %arg8[%c0_43, %c0_44] : memref<1x16xf32, #tpu.memory_space<vmem>>, vector<1x16xf32>
    %cst_45 = arith.constant dense<0.000000e+00> : vector<16xf32>
    %93 = vector.multi_reduction <add>, %90, %cst_45 [1] : vector<16x16xf32> to vector<16xf32>
    %94 = vector.shape_cast %93 : vector<16xf32> to vector<16x1xf32>
    %cst_46 = arith.constant 1.600000e+01 : f32
    %95 = vector.broadcast %cst_46 : f32 to vector<16x1xf32>
    %96 = arith.divf %94, %95 : vector<16x1xf32>
    %97 = vector.broadcast %96 : vector<16x1xf32> to vector<16x16xf32>
    %98 = arith.subf %90, %97 : vector<16x16xf32>
    %99 = arith.mulf %98, %98 : vector<16x16xf32>
    %cst_47 = arith.constant dense<0.000000e+00> : vector<16xf32>
    %100 = vector.multi_reduction <add>, %99, %cst_47 [1] : vector<16x16xf32> to vector<16xf32>
    %101 = vector.shape_cast %100 : vector<16xf32> to vector<16x1xf32>
    %cst_48 = arith.constant 1.600000e+01 : f32
    %102 = vector.broadcast %cst_48 : f32 to vector<16x1xf32>
    %103 = arith.divf %101, %102 : vector<16x1xf32>
    %cst_49 = arith.constant 9.99999974E-6 : f32
    %104 = vector.broadcast %cst_49 : f32 to vector<16x1xf32>
    %105 = arith.addf %103, %104 : vector<16x1xf32>
    %106 = math.rsqrt %105 : vector<16x1xf32>
    %107 = vector.broadcast %106 : vector<16x1xf32> to vector<16x16xf32>
    %108 = arith.mulf %98, %107 : vector<16x16xf32>
    %109 = vector.broadcast %91 : vector<1x16xf32> to vector<16x16xf32>
    %110 = arith.mulf %108, %109 : vector<16x16xf32>
    %111 = vector.broadcast %92 : vector<1x16xf32> to vector<16x16xf32>
    %112 = arith.addf %110, %111 : vector<16x16xf32>
    %c0_50 = arith.constant 0 : index
    %c0_51 = arith.constant 0 : index
    %113 = vector.load %arg9[%c0_50, %c0_51] : memref<16x16xf32, #tpu.memory_space<vmem>>, vector<16x16xf32>
    %c0_52 = arith.constant 0 : index
    %c0_53 = arith.constant 0 : index
    %114 = vector.load %arg10[%c0_52, %c0_53] : memref<1x16xf32, #tpu.memory_space<vmem>>, vector<1x16xf32>
    %c0_54 = arith.constant 0 : index
    %c0_55 = arith.constant 0 : index
    %115 = vector.load %arg11[%c0_54, %c0_55] : memref<16x32xf32, #tpu.memory_space<vmem>>, vector<16x32xf32>
    %c0_56 = arith.constant 0 : index
    %c0_57 = arith.constant 0 : index
    %116 = vector.load %arg12[%c0_56, %c0_57] : memref<1x32xf32, #tpu.memory_space<vmem>>, vector<1x32xf32>
    %c0_58 = arith.constant 0 : index
    %c0_59 = arith.constant 0 : index
    %117 = vector.load %arg13[%c0_58, %c0_59] : memref<16x16xf32, #tpu.memory_space<vmem>>, vector<16x16xf32>
    %c0_60 = arith.constant 0 : index
    %c0_61 = arith.constant 0 : index
    %118 = vector.load %arg14[%c0_60, %c0_61] : memref<1x16xf32, #tpu.memory_space<vmem>>, vector<1x16xf32>
    %cst_62 = arith.constant dense<0.000000e+00> : vector<16x16xf32>
    %119 = tpu.matmul %112, %113, %cst_62 {dimension_numbers = #tpu.dot_dimension_numbers<[1], [0], [0], [1], [0, 0, 1, 1], [], []>} : vector<16x16xf32>, vector<16x16xf32>, vector<16x16xf32> -> vector<16x16xf32>
    %120 = vector.broadcast %114 : vector<1x16xf32> to vector<16x16xf32>
    %121 = arith.addf %119, %120 : vector<16x16xf32>
    %cst_63 = arith.constant dense<0.000000e+00> : vector<16x32xf32>
    %122 = tpu.matmul %3, %115, %cst_63 {dimension_numbers = #tpu.dot_dimension_numbers<[1], [0], [0], [1], [0, 0, 1, 1], [], []>} : vector<16x16xf32>, vector<16x32xf32>, vector<16x32xf32> -> vector<16x32xf32>
    %123 = vector.broadcast %116 : vector<1x32xf32> to vector<16x32xf32>
    %124 = arith.addf %122, %123 : vector<16x32xf32>
    %125 = vector.extract_strided_slice %124 {offsets = [0, 0], sizes = [16, 16], strides = [1, 1]} : vector<16x32xf32> to vector<16x16xf32>
    %126 = vector.extract_strided_slice %124 {offsets = [0, 16], sizes = [16, 16], strides = [1, 1]} : vector<16x32xf32> to vector<16x16xf32>
    %127 = vector.extract_strided_slice %121 {offsets = [0, 0], sizes = [16, 4], strides = [1, 1]} : vector<16x16xf32> to vector<16x4xf32>
    %128 = vector.extract_strided_slice %125 {offsets = [0, 0], sizes = [16, 4], strides = [1, 1]} : vector<16x16xf32> to vector<16x4xf32>
    %129 = vector.extract_strided_slice %126 {offsets = [0, 0], sizes = [16, 4], strides = [1, 1]} : vector<16x16xf32> to vector<16x4xf32>
    %cst_64 = arith.constant dense<0.000000e+00> : vector<16x16xf32>
    %130 = tpu.matmul %127, %128, %cst_64 {dimension_numbers = #tpu.dot_dimension_numbers<[1], [1], [0], [0], [0, 0, 1, 0], [], []>} : vector<16x4xf32>, vector<16x4xf32>, vector<16x16xf32> -> vector<16x16xf32>
    %cst_65 = arith.constant 5.000000e-01 : f32
    %131 = vector.broadcast %cst_65 : f32 to vector<16x16xf32>
    %132 = arith.mulf %130, %131 : vector<16x16xf32>
    %cst_66 = arith.constant dense<0xFF800000> : vector<16xf32>
    %133 = vector.multi_reduction <maximumf>, %132, %cst_66 [1] : vector<16x16xf32> to vector<16xf32>
    %134 = vector.shape_cast %133 : vector<16xf32> to vector<16x1xf32>
    %135 = vector.broadcast %134 : vector<16x1xf32> to vector<16x16xf32>
    %136 = arith.subf %132, %135 : vector<16x16xf32>
    %137 = math.exp %136 : vector<16x16xf32>
    %cst_67 = arith.constant dense<0.000000e+00> : vector<16xf32>
    %138 = vector.multi_reduction <add>, %137, %cst_67 [1] : vector<16x16xf32> to vector<16xf32>
    %139 = vector.shape_cast %138 : vector<16xf32> to vector<16x1xf32>
    %140 = tpu.reciprocal %139 {approx = true} : vector<16x1xf32> -> vector<16x1xf32>
    %141 = vector.broadcast %140 : vector<16x1xf32> to vector<16x16xf32>
    %142 = arith.mulf %137, %141 : vector<16x16xf32>
    %cst_68 = arith.constant dense<0.000000e+00> : vector<16x4xf32>
    %143 = tpu.matmul %142, %129, %cst_68 {dimension_numbers = #tpu.dot_dimension_numbers<[1], [0], [0], [1], [0, 0, 1, 1], [], []>} : vector<16x16xf32>, vector<16x4xf32>, vector<16x4xf32> -> vector<16x4xf32>
    %c0_69 = arith.constant 0 : index
    %c0_70 = arith.constant 0 : index
    %144 = vector.load %arg24[%c0_69, %c0_70] : memref<16x16xf32, #tpu.memory_space<vmem>>, vector<16x4xf32>
    tpu.vector_store %arg24[%c0_69, %c0_70], %143 {strides = array<i32>} : memref<16x16xf32, #tpu.memory_space<vmem>>, vector<16x4xf32>,
    %145 = vector.extract_strided_slice %121 {offsets = [0, 4], sizes = [16, 4], strides = [1, 1]} : vector<16x16xf32> to vector<16x4xf32>
    %146 = vector.extract_strided_slice %125 {offsets = [0, 4], sizes = [16, 4], strides = [1, 1]} : vector<16x16xf32> to vector<16x4xf32>
    %147 = vector.extract_strided_slice %126 {offsets = [0, 4], sizes = [16, 4], strides = [1, 1]} : vector<16x16xf32> to vector<16x4xf32>
    %cst_71 = arith.constant dense<0.000000e+00> : vector<16x16xf32>
    %148 = tpu.matmul %145, %146, %cst_71 {dimension_numbers = #tpu.dot_dimension_numbers<[1], [1], [0], [0], [0, 0, 1, 0], [], []>} : vector<16x4xf32>, vector<16x4xf32>, vector<16x16xf32> -> vector<16x16xf32>
    %cst_72 = arith.constant 5.000000e-01 : f32
    %149 = vector.broadcast %cst_72 : f32 to vector<16x16xf32>
    %150 = arith.mulf %148, %149 : vector<16x16xf32>
    %cst_73 = arith.constant dense<0xFF800000> : vector<16xf32>
    %151 = vector.multi_reduction <maximumf>, %150, %cst_73 [1] : vector<16x16xf32> to vector<16xf32>
    %152 = vector.shape_cast %151 : vector<16xf32> to vector<16x1xf32>
    %153 = vector.broadcast %152 : vector<16x1xf32> to vector<16x16xf32>
    %154 = arith.subf %150, %153 : vector<16x16xf32>
    %155 = math.exp %154 : vector<16x16xf32>
    %cst_74 = arith.constant dense<0.000000e+00> : vector<16xf32>
    %156 = vector.multi_reduction <add>, %155, %cst_74 [1] : vector<16x16xf32> to vector<16xf32>
    %157 = vector.shape_cast %156 : vector<16xf32> to vector<16x1xf32>
    %158 = tpu.reciprocal %157 {approx = true} : vector<16x1xf32> -> vector<16x1xf32>
    %159 = vector.broadcast %158 : vector<16x1xf32> to vector<16x16xf32>
    %160 = arith.mulf %155, %159 : vector<16x16xf32>
    %cst_75 = arith.constant dense<0.000000e+00> : vector<16x4xf32>
    %161 = tpu.matmul %160, %147, %cst_75 {dimension_numbers = #tpu.dot_dimension_numbers<[1], [0], [0], [1], [0, 0, 1, 1], [], []>} : vector<16x16xf32>, vector<16x4xf32>, vector<16x4xf32> -> vector<16x4xf32>
    %c0_76 = arith.constant 0 : index
    %c4_77 = arith.constant 4 : index
    %162 = vector.load %arg24[%c0_76, %c4_77] : memref<16x16xf32, #tpu.memory_space<vmem>>, vector<16x4xf32>
    tpu.vector_store %arg24[%c0_76, %c4_77], %161 {strides = array<i32>} : memref<16x16xf32, #tpu.memory_space<vmem>>, vector<16x4xf32>,
    %163 = vector.extract_strided_slice %121 {offsets = [0, 8], sizes = [16, 4], strides = [1, 1]} : vector<16x16xf32> to vector<16x4xf32>
    %164 = vector.extract_strided_slice %125 {offsets = [0, 8], sizes = [16, 4], strides = [1, 1]} : vector<16x16xf32> to vector<16x4xf32>
    %165 = vector.extract_strided_slice %126 {offsets = [0, 8], sizes = [16, 4], strides = [1, 1]} : vector<16x16xf32> to vector<16x4xf32>
    %cst_78 = arith.constant dense<0.000000e+00> : vector<16x16xf32>
    %166 = tpu.matmul %163, %164, %cst_78 {dimension_numbers = #tpu.dot_dimension_numbers<[1], [1], [0], [0], [0, 0, 1, 0], [], []>} : vector<16x4xf32>, vector<16x4xf32>, vector<16x16xf32> -> vector<16x16xf32>
    %cst_79 = arith.constant 5.000000e-01 : f32
    %167 = vector.broadcast %cst_79 : f32 to vector<16x16xf32>
    %168 = arith.mulf %166, %167 : vector<16x16xf32>
    %cst_80 = arith.constant dense<0xFF800000> : vector<16xf32>
    %169 = vector.multi_reduction <maximumf>, %168, %cst_80 [1] : vector<16x16xf32> to vector<16xf32>
    %170 = vector.shape_cast %169 : vector<16xf32> to vector<16x1xf32>
    %171 = vector.broadcast %170 : vector<16x1xf32> to vector<16x16xf32>
    %172 = arith.subf %168, %171 : vector<16x16xf32>
    %173 = math.exp %172 : vector<16x16xf32>
    %cst_81 = arith.constant dense<0.000000e+00> : vector<16xf32>
    %174 = vector.multi_reduction <add>, %173, %cst_81 [1] : vector<16x16xf32> to vector<16xf32>
    %175 = vector.shape_cast %174 : vector<16xf32> to vector<16x1xf32>
    %176 = tpu.reciprocal %175 {approx = true} : vector<16x1xf32> -> vector<16x1xf32>
    %177 = vector.broadcast %176 : vector<16x1xf32> to vector<16x16xf32>
    %178 = arith.mulf %173, %177 : vector<16x16xf32>
    %cst_82 = arith.constant dense<0.000000e+00> : vector<16x4xf32>
    %179 = tpu.matmul %178, %165, %cst_82 {dimension_numbers = #tpu.dot_dimension_numbers<[1], [0], [0], [1], [0, 0, 1, 1], [], []>} : vector<16x16xf32>, vector<16x4xf32>, vector<16x4xf32> -> vector<16x4xf32>
    %c0_83 = arith.constant 0 : index
    %c8_84 = arith.constant 8 : index
    %180 = vector.load %arg24[%c0_83, %c8_84] : memref<16x16xf32, #tpu.memory_space<vmem>>, vector<16x4xf32>
    tpu.vector_store %arg24[%c0_83, %c8_84], %179 {strides = array<i32>} : memref<16x16xf32, #tpu.memory_space<vmem>>, vector<16x4xf32>,
    %181 = vector.extract_strided_slice %121 {offsets = [0, 12], sizes = [16, 4], strides = [1, 1]} : vector<16x16xf32> to vector<16x4xf32>
    %182 = vector.extract_strided_slice %125 {offsets = [0, 12], sizes = [16, 4], strides = [1, 1]} : vector<16x16xf32> to vector<16x4xf32>
    %183 = vector.extract_strided_slice %126 {offsets = [0, 12], sizes = [16, 4], strides = [1, 1]} : vector<16x16xf32> to vector<16x4xf32>
    %cst_85 = arith.constant dense<0.000000e+00> : vector<16x16xf32>
    %184 = tpu.matmul %181, %182, %cst_85 {dimension_numbers = #tpu.dot_dimension_numbers<[1], [1], [0], [0], [0, 0, 1, 0], [], []>} : vector<16x4xf32>, vector<16x4xf32>, vector<16x16xf32> -> vector<16x16xf32>
    %cst_86 = arith.constant 5.000000e-01 : f32
    %185 = vector.broadcast %cst_86 : f32 to vector<16x16xf32>
    %186 = arith.mulf %184, %185 : vector<16x16xf32>
    %cst_87 = arith.constant dense<0xFF800000> : vector<16xf32>
    %187 = vector.multi_reduction <maximumf>, %186, %cst_87 [1] : vector<16x16xf32> to vector<16xf32>
    %188 = vector.shape_cast %187 : vector<16xf32> to vector<16x1xf32>
    %189 = vector.broadcast %188 : vector<16x1xf32> to vector<16x16xf32>
    %190 = arith.subf %186, %189 : vector<16x16xf32>
    %191 = math.exp %190 : vector<16x16xf32>
    %cst_88 = arith.constant dense<0.000000e+00> : vector<16xf32>
    %192 = vector.multi_reduction <add>, %191, %cst_88 [1] : vector<16x16xf32> to vector<16xf32>
    %193 = vector.shape_cast %192 : vector<16xf32> to vector<16x1xf32>
    %194 = tpu.reciprocal %193 {approx = true} : vector<16x1xf32> -> vector<16x1xf32>
    %195 = vector.broadcast %194 : vector<16x1xf32> to vector<16x16xf32>
    %196 = arith.mulf %191, %195 : vector<16x16xf32>
    %cst_89 = arith.constant dense<0.000000e+00> : vector<16x4xf32>
    %197 = tpu.matmul %196, %183, %cst_89 {dimension_numbers = #tpu.dot_dimension_numbers<[1], [0], [0], [1], [0, 0, 1, 1], [], []>} : vector<16x16xf32>, vector<16x4xf32>, vector<16x4xf32> -> vector<16x4xf32>
    %c0_90 = arith.constant 0 : index
    %c12_91 = arith.constant 12 : index
    %198 = vector.load %arg24[%c0_90, %c12_91] : memref<16x16xf32, #tpu.memory_space<vmem>>, vector<16x4xf32>
    tpu.vector_store %arg24[%c0_90, %c12_91], %197 {strides = array<i32>} : memref<16x16xf32, #tpu.memory_space<vmem>>, vector<16x4xf32>,
    %c0_92 = arith.constant 0 : index
    %c0_93 = arith.constant 0 : index
    %199 = vector.load %arg24[%c0_92, %c0_93] : memref<16x16xf32, #tpu.memory_space<vmem>>, vector<16x16xf32>
    %cst_94 = arith.constant dense<0.000000e+00> : vector<16x16xf32>
    %200 = tpu.matmul %199, %117, %cst_94 {dimension_numbers = #tpu.dot_dimension_numbers<[1], [0], [0], [1], [0, 0, 1, 1], [], []>} : vector<16x16xf32>, vector<16x16xf32>, vector<16x16xf32> -> vector<16x16xf32>
    %201 = vector.broadcast %118 : vector<1x16xf32> to vector<16x16xf32>
    %202 = arith.addf %200, %201 : vector<16x16xf32>
    %203 = arith.addf %112, %202 : vector<16x16xf32>
    %c0_95 = arith.constant 0 : index
    %c0_96 = arith.constant 0 : index
    %204 = vector.load %arg15[%c0_95, %c0_96] : memref<1x16xf32, #tpu.memory_space<vmem>>, vector<1x16xf32>
    %c0_97 = arith.constant 0 : index
    %c0_98 = arith.constant 0 : index
    %205 = vector.load %arg16[%c0_97, %c0_98] : memref<1x16xf32, #tpu.memory_space<vmem>>, vector<1x16xf32>
    %cst_99 = arith.constant dense<0.000000e+00> : vector<16xf32>
    %206 = vector.multi_reduction <add>, %203, %cst_99 [1] : vector<16x16xf32> to vector<16xf32>
    %207 = vector.shape_cast %206 : vector<16xf32> to vector<16x1xf32>
    %cst_100 = arith.constant 1.600000e+01 : f32
    %208 = vector.broadcast %cst_100 : f32 to vector<16x1xf32>
    %209 = arith.divf %207, %208 : vector<16x1xf32>
    %210 = vector.broadcast %209 : vector<16x1xf32> to vector<16x16xf32>
    %211 = arith.subf %203, %210 : vector<16x16xf32>
    %212 = arith.mulf %211, %211 : vector<16x16xf32>
    %cst_101 = arith.constant dense<0.000000e+00> : vector<16xf32>
    %213 = vector.multi_reduction <add>, %212, %cst_101 [1] : vector<16x16xf32> to vector<16xf32>
    %214 = vector.shape_cast %213 : vector<16xf32> to vector<16x1xf32>
    %cst_102 = arith.constant 1.600000e+01 : f32
    %215 = vector.broadcast %cst_102 : f32 to vector<16x1xf32>
    %216 = arith.divf %214, %215 : vector<16x1xf32>
    %cst_103 = arith.constant 9.99999974E-6 : f32
    %217 = vector.broadcast %cst_103 : f32 to vector<16x1xf32>
    %218 = arith.addf %216, %217 : vector<16x1xf32>
    %219 = math.rsqrt %218 : vector<16x1xf32>
    %220 = vector.broadcast %219 : vector<16x1xf32> to vector<16x16xf32>
    %221 = arith.mulf %211, %220 : vector<16x16xf32>
    %222 = vector.broadcast %204 : vector<1x16xf32> to vector<16x16xf32>
    %223 = arith.mulf %221, %222 : vector<16x16xf32>
    %224 = vector.broadcast %205 : vector<1x16xf32> to vector<16x16xf32>
    %225 = arith.addf %223, %224 : vector<16x16xf32>
    %c0_104 = arith.constant 0 : index
    %c0_105 = arith.constant 0 : index
    %226 = vector.load %arg17[%c0_104, %c0_105] : memref<16x2048xf32, #tpu.memory_space<vmem>>, vector<16x2048xf32>
    %c0_106 = arith.constant 0 : index
    %c0_107 = arith.constant 0 : index
    %227 = vector.load %arg18[%c0_106, %c0_107] : memref<1x2048xf32, #tpu.memory_space<vmem>>, vector<1x2048xf32>
    %c0_108 = arith.constant 0 : index
    %c0_109 = arith.constant 0 : index
    %228 = vector.load %arg19[%c0_108, %c0_109] : memref<2048x16xf32, #tpu.memory_space<vmem>>, vector<2048x16xf32>
    %c0_110 = arith.constant 0 : index
    %c0_111 = arith.constant 0 : index
    %229 = vector.load %arg20[%c0_110, %c0_111] : memref<1x16xf32, #tpu.memory_space<vmem>>, vector<1x16xf32>
    %cst_112 = arith.constant dense<0.000000e+00> : vector<16x2048xf32>
    %230 = tpu.matmul %225, %226, %cst_112 {dimension_numbers = #tpu.dot_dimension_numbers<[1], [0], [0], [1], [0, 0, 1, 1], [], []>} : vector<16x16xf32>, vector<16x2048xf32>, vector<16x2048xf32> -> vector<16x2048xf32>
    %231 = vector.broadcast %227 : vector<1x2048xf32> to vector<16x2048xf32>
    %232 = arith.addf %230, %231 : vector<16x2048xf32>
    %cst_113 = arith.constant 0.000000e+00 : f32
    %233 = vector.broadcast %cst_113 : f32 to vector<16x2048xf32>
    %234 = arith.maximumf %232, %233 : vector<16x2048xf32>
    %cst_114 = arith.constant dense<0.000000e+00> : vector<16x16xf32>
    %235 = tpu.matmul %234, %228, %cst_114 {dimension_numbers = #tpu.dot_dimension_numbers<[1], [0], [0], [1], [0, 0, 1, 1], [], []>} : vector<16x2048xf32>, vector<2048x16xf32>, vector<16x16xf32> -> vector<16x16xf32>
    %236 = vector.broadcast %229 : vector<1x16xf32> to vector<16x16xf32>
    %237 = arith.addf %235, %236 : vector<16x16xf32>
    %238 = arith.addf %225, %237 : vector<16x16xf32>
    %c0_115 = arith.constant 0 : index
    %c0_116 = arith.constant 0 : index
    %239 = vector.load %arg21[%c0_115, %c0_116] : memref<1x16xf32, #tpu.memory_space<vmem>>, vector<1x16xf32>
    %c0_117 = arith.constant 0 : index
    %c0_118 = arith.constant 0 : index
    %240 = vector.load %arg22[%c0_117, %c0_118] : memref<1x16xf32, #tpu.memory_space<vmem>>, vector<1x16xf32>
    %cst_119 = arith.constant dense<0.000000e+00> : vector<16xf32>
    %241 = vector.multi_reduction <add>, %238, %cst_119 [1] : vector<16x16xf32> to vector<16xf32>
    %242 = vector.shape_cast %241 : vector<16xf32> to vector<16x1xf32>
    %cst_120 = arith.constant 1.600000e+01 : f32
    %243 = vector.broadcast %cst_120 : f32 to vector<16x1xf32>
    %244 = arith.divf %242, %243 : vector<16x1xf32>
    %245 = vector.broadcast %244 : vector<16x1xf32> to vector<16x16xf32>
    %246 = arith.subf %238, %245 : vector<16x16xf32>
    %247 = arith.mulf %246, %246 : vector<16x16xf32>
    %cst_121 = arith.constant dense<0.000000e+00> : vector<16xf32>
    %248 = vector.multi_reduction <add>, %247, %cst_121 [1] : vector<16x16xf32> to vector<16xf32>
    %249 = vector.shape_cast %248 : vector<16xf32> to vector<16x1xf32>
    %cst_122 = arith.constant 1.600000e+01 : f32
    %250 = vector.broadcast %cst_122 : f32 to vector<16x1xf32>
    %251 = arith.divf %249, %250 : vector<16x1xf32>
    %cst_123 = arith.constant 9.99999974E-6 : f32
    %252 = vector.broadcast %cst_123 : f32 to vector<16x1xf32>
    %253 = arith.addf %251, %252 : vector<16x1xf32>
    %254 = math.rsqrt %253 : vector<16x1xf32>
    %255 = vector.broadcast %254 : vector<16x1xf32> to vector<16x16xf32>
    %256 = arith.mulf %246, %255 : vector<16x16xf32>
    %257 = vector.broadcast %239 : vector<1x16xf32> to vector<16x16xf32>
    %258 = arith.mulf %256, %257 : vector<16x16xf32>
    %259 = vector.broadcast %240 : vector<1x16xf32> to vector<16x16xf32>
    %260 = arith.addf %258, %259 : vector<16x16xf32>
    %c0_124 = arith.constant 0 : index
    %c0_125 = arith.constant 0 : index
    %c0_126 = arith.constant 0 : index
    %261 = vector.load %arg23[%c0_124, %c0_125, %c0_126] : memref<1x16x16xf32, #tpu.memory_space<vmem>>, vector<1x16x16xf32>
    %262 = vector.shape_cast %261 : vector<1x16x16xf32> to vector<16x16xf32>
    %263 = vector.shape_cast %260 : vector<16x16xf32> to vector<1x16x16xf32>
    tpu.vector_store %arg23[%c0_124, %c0_125, %c0_126], %263 {strides = array<i32>} : memref<1x16x16xf32, #tpu.memory_space<vmem>>, vector<1x16x16xf32>,
    return
  }
  func.func @transform_0(%arg0: i32) -> (i32, i32, i32) {
    %c0_i32 = arith.constant 0 : i32
    %c0_i32_0 = arith.constant 0 : i32
    %c0_i32_1 = arith.constant 0 : i32
    return %arg0, %c0_i32, %c0_i32_0 : i32, i32, i32
  }
  func.func @transform_1(%arg0: i32) -> (i32, i32, i32) {
    %c0_i32 = arith.constant 0 : i32
    %c0_i32_0 = arith.constant 0 : i32
    %c0_i32_1 = arith.constant 0 : i32
    return %arg0, %c0_i32, %c0_i32_0 : i32, i32, i32
  }
  func.func @transform_2(%arg0: i32) -> (i32, i32) {
    %c0_i32 = arith.constant 0 : i32
    %c0_i32_0 = arith.constant 0 : i32
    %c0_i32_1 = arith.constant 0 : i32
    return %c0_i32, %c0_i32_0 : i32, i32
  }
  func.func @transform_3(%arg0: i32) -> (i32, i32) {
    %c0_i32 = arith.constant 0 : i32
    %c0_i32_0 = arith.constant 0 : i32
    %c0_i32_1 = arith.constant 0 : i32
    return %c0_i32, %c0_i32_0 : i32, i32
  }
  func.func @transform_4(%arg0: i32) -> (i32, i32) {
    %c0_i32 = arith.constant 0 : i32
    %c0_i32_0 = arith.constant 0 : i32
    %c0_i32_1 = arith.constant 0 : i32
    return %c0_i32, %c0_i32_0 : i32, i32
  }
  func.func @transform_5(%arg0: i32) -> (i32, i32) {
    %c0_i32 = arith.constant 0 : i32
    %c0_i32_0 = arith.constant 0 : i32
    %c0_i32_1 = arith.constant 0 : i32
    return %c0_i32, %c0_i32_0 : i32, i32
  }
  func.func @transform_6(%arg0: i32) -> (i32, i32) {
    %c0_i32 = arith.constant 0 : i32
    %c0_i32_0 = arith.constant 0 : i32
    %c0_i32_1 = arith.constant 0 : i32
    return %c0_i32, %c0_i32_0 : i32, i32
  }
  func.func @transform_7(%arg0: i32) -> (i32, i32) {
    %c0_i32 = arith.constant 0 : i32
    %c0_i32_0 = arith.constant 0 : i32
    %c0_i32_1 = arith.constant 0 : i32
    return %c0_i32, %c0_i32_0 : i32, i32
  }
  func.func @transform_8(%arg0: i32) -> (i32, i32) {
    %c0_i32 = arith.constant 0 : i32
    %c0_i32_0 = arith.constant 0 : i32
    %c0_i32_1 = arith.constant 0 : i32
    return %c0_i32, %c0_i32_0 : i32, i32
  }
  func.func @transform_9(%arg0: i32) -> (i32, i32) {
    %c0_i32 = arith.constant 0 : i32
    %c0_i32_0 = arith.constant 0 : i32
    %c0_i32_1 = arith.constant 0 : i32
    return %c0_i32, %c0_i32_0 : i32, i32
  }
  func.func @transform_10(%arg0: i32) -> (i32, i32) {
    %c0_i32 = arith.constant 0 : i32
    %c0_i32_0 = arith.constant 0 : i32
    %c0_i32_1 = arith.constant 0 : i32
    return %c0_i32, %c0_i32_0 : i32, i32
  }
  func.func @transform_11(%arg0: i32) -> (i32, i32) {
    %c0_i32 = arith.constant 0 : i32
    %c0_i32_0 = arith.constant 0 : i32
    %c0_i32_1 = arith.constant 0 : i32
    return %c0_i32, %c0_i32_0 : i32, i32
  }
  func.func @transform_12(%arg0: i32) -> (i32, i32) {
    %c0_i32 = arith.constant 0 : i32
    %c0_i32_0 = arith.constant 0 : i32
    %c0_i32_1 = arith.constant 0 : i32
    return %c0_i32, %c0_i32_0 : i32, i32
  }
  func.func @transform_13(%arg0: i32) -> (i32, i32) {
    %c0_i32 = arith.constant 0 : i32
    %c0_i32_0 = arith.constant 0 : i32
    %c0_i32_1 = arith.constant 0 : i32
    return %c0_i32, %c0_i32_0 : i32, i32
  }
  func.func @transform_14(%arg0: i32) -> (i32, i32) {
    %c0_i32 = arith.constant 0 : i32
    %c0_i32_0 = arith.constant 0 : i32
    %c0_i32_1 = arith.constant 0 : i32
    return %c0_i32, %c0_i32_0 : i32, i32
  }
  func.func @transform_15(%arg0: i32) -> (i32, i32) {
    %c0_i32 = arith.constant 0 : i32
    %c0_i32_0 = arith.constant 0 : i32
    %c0_i32_1 = arith.constant 0 : i32
    return %c0_i32, %c0_i32_0 : i32, i32
  }
  func.func @transform_16(%arg0: i32) -> (i32, i32) {
    %c0_i32 = arith.constant 0 : i32
    %c0_i32_0 = arith.constant 0 : i32
    %c0_i32_1 = arith.constant 0 : i32
    return %c0_i32, %c0_i32_0 : i32, i32
  }
  func.func @transform_17(%arg0: i32) -> (i32, i32) {
    %c0_i32 = arith.constant 0 : i32
    %c0_i32_0 = arith.constant 0 : i32
    %c0_i32_1 = arith.constant 0 : i32
    return %c0_i32, %c0_i32_0 : i32, i32
  }
  func.func @transform_18(%arg0: i32) -> (i32, i32) {
    %c0_i32 = arith.constant 0 : i32
    %c0_i32_0 = arith.constant 0 : i32
    %c0_i32_1 = arith.constant 0 : i32
    return %c0_i32, %c0_i32_0 : i32, i32
  }
  func.func @transform_19(%arg0: i32) -> (i32, i32) {
    %c0_i32 = arith.constant 0 : i32
    %c0_i32_0 = arith.constant 0 : i32
    %c0_i32_1 = arith.constant 0 : i32
    return %c0_i32, %c0_i32_0 : i32, i32
  }
  func.func @transform_20(%arg0: i32) -> (i32, i32) {
    %c0_i32 = arith.constant 0 : i32
    %c0_i32_0 = arith.constant 0 : i32
    %c0_i32_1 = arith.constant 0 : i32
    return %c0_i32, %c0_i32_0 : i32, i32
  }
  func.func @transform_21(%arg0: i32) -> (i32, i32) {
    %c0_i32 = arith.constant 0 : i32
    %c0_i32_0 = arith.constant 0 : i32
    %c0_i32_1 = arith.constant 0 : i32
    return %c0_i32, %c0_i32_0 : i32, i32
  }
  func.func @transform_22(%arg0: i32) -> (i32, i32, i32) {
    %c0_i32 = arith.constant 0 : i32
    %c0_i32_0 = arith.constant 0 : i32
    %c0_i32_1 = arith.constant 0 : i32
    return %arg0, %c0_i32, %c0_i32_0 : i32, i32, i32
  }
}

</mosaic_0001>

<bundles_post_ra>
// kernel: _lambda_.7
= control target key start
LH: loop header
LB: loop body
LE: loop exit
PB: predicated region body
PF: predicated region fallthrough
CT: control target
= control target key end

     0   :  { %vm25_vm0 = vcmask 130048   ;;  %s79_s0 = inlined_call_operand.vmem [shape: f32[2,16,16], index: 0, kind: input, shape index: {}]   ;;  %s80_s1 = inlined_call_operand.vmem [shape: f32[512,16], index: 1, kind: input, shape index: {}]   ;;  %s81_s2 = inlined_call_operand.vmem [shape: f32[2,16,16], index: 2, kind: output, shape index: {}]  }
   0x1   :  { %v11_v0 = vld [vmem:[%s79_s0] sm:$0xff]  ;;  %v12_v2 = vld [vmem:[%s79_s0 + $0x8] sm:$0xff]  ;;  %v13_v6 = vld [vmem:[%s79_s0 + $0x10] sm:$0xff] }
   0x2   :  { %v19_v1 = vld [vmem:[%s80_s1] sm:$0xff]  ;;  %v15_v3 = vmul.f32 4.0, %v11_v0  ;;  %v16_v4 = vmul.f32 4.0, %v12_v2  ;;  %v20_v5 = vld [vmem:[%s80_s1 + $0x8] sm:$0xff]  ;;  %v14_v7 = vld [vmem:[%s79_s0 + $0x18] sm:$0xff]  ;;  %v17_v8 = vmul.f32 4.0, %v13_v6 }
   0x3   :  { %v18_v9 = vmul.f32 4.0, %v14_v7 }
   0x4   :  { %v21_v10 = vadd.f32 %v19_v1, %v15_v3  ;;  %v22_v11 = vadd.f32 %v20_v5, %v16_v4  ;;  %v23_v12 = vadd.f32 %v19_v1, %v17_v8 }
   0x5   :  { %v24_v13 = vadd.f32 %v20_v5, %v18_v9 }
   0x6   :  { %26 = vst.msk [vmem:[%s81_s2] sm:$0xff] %vm25_vm0, %v21_v10  ;;  %27 = vst.msk [vmem:[%s81_s2 + $0x8] sm:$0xff] %vm25_vm0, %v22_v11 }
   0x7   :  { %28 = vst.msk [vmem:[%s81_s2 + $0x10] sm:$0xff] %vm25_vm0, %v23_v12  ;;  %29 = vst.msk [vmem:[%s81_s2 + $0x18] sm:$0xff] %vm25_vm0, %v24_v13 }

// kernel: _lambda_.10
= control target key start
LH: loop header
LB: loop body
LE: loop exit
PB: predicated region body
PF: predicated region fallthrough
CT: control target
= control target key end

     0   :  { %vm20_vm0 = vcmask 130048   ;;  %s174_s0 = inlined_call_operand.vmem [shape: f32[2,16,16], index: 0, kind: input, shape index: {}]   ;;  %s175_s1 = inlined_call_operand.vmem [shape: f32[1,16], index: 1, kind: input, shape index: {}]   ;;  %s176_s2 = inlined_call_operand.vmem [shape: f32[1,16], index: 2, kind: input, shape index: {}]   ;;  %s177_s3 = inlined_call_operand.vmem [shape: f32[2,16,16], index: 3, kind: output, shape index: {}]  }
   0x1   :  { %v14_v0 = vld [vmem:[%s174_s0] sm:$0xff]  ;;  %v16_v1 = vld [vmem:[%s174_s0 + $0x10] sm:$0xff]  ;;  %v15_v2 = vld [vmem:[%s174_s0 + $0x8] sm:$0xff] }
   0x2   :  { %v21_v3 = vsel %vm20_vm0, %v14_v0, 0.0  ;;  %v27_v4 = vsel %vm20_vm0, %v16_v1, 0.0  ;;  %v17_v5 = vld [vmem:[%s174_s0 + $0x18] sm:$0xff]  ;;  %v24_v6 = vsel %vm20_vm0, %v15_v2, 0.0  ;;  %v102_v41 = vld [vmem:[%s175_s1] ss:$0 sm:$0xff] }
   0x3   :  { %22 = vadd.xlane.f32.xlu0 %v21_v3  ;;  %28 = vadd.xlane.f32.xlu1 %v27_v4  ;;  %v30_v7 = vsel %vm20_vm0, %v17_v5, 0.0  ;;  %v103_v43 = vld [vmem:[%s176_s2] ss:$0 sm:$0xff] }
   0x7   :  { %25 = vadd.xlane.f32.xlu0 %v24_v6  ;;  %31 = vadd.xlane.f32.xlu1 %v30_v7 }
  0x90   :  { %v23_v8 = vpop.xlane.xlu0 %22  ;;  %v29_v9 = vpop.xlane.xlu1 %28 }
  0x91   :  { %v34_v10 = vmul.f32 0.0625, %v23_v8  ;;  %v36_v11 = vmul.f32 0.0625, %v29_v9 }
  0x93   :  { %v38_v12 = vsub.f32 %v14_v0, %v34_v10  ;;  %v40_v13 = vsub.f32 %v16_v1, %v36_v11 }
  0x94   :  { %v26_v14 = vpop.xlane.xlu0 %25  ;;  %v32_v15 = vpop.xlane.xlu1 %31 }
  0x95   :  { %v35_v16 = vmul.f32 0.0625, %v26_v14  ;;  %v37_v17 = vmul.f32 0.0625, %v32_v15  ;;  %v42_v18 = vmul.f32 %v38_v12, %v38_v12  ;;  %v44_v19 = vmul.f32 %v40_v13, %v40_v13 }
  0x97   :  { %v39_v20 = vsub.f32 %v15_v2, %v35_v16  ;;  %v41_v21 = vsub.f32 %v17_v5, %v37_v17  ;;  %v46_v22 = vsel %vm20_vm0, %v42_v18, 0.0  ;;  %v52_v23 = vsel %vm20_vm0, %v44_v19, 0.0 }
  0x98   :  { %47 = vadd.xlane.f32.xlu0 %v46_v22 }
  0x99   :  { %v43_v24 = vmul.f32 %v39_v20, %v39_v20  ;;  %v45_v25 = vmul.f32 %v41_v21, %v41_v21 }
  0x9b   :  { %v49_v26 = vsel %vm20_vm0, %v43_v24, 0.0  ;;  %v55_v27 = vsel %vm20_vm0, %v45_v25, 0.0 }
  0x9c   :  { %53 = vadd.xlane.f32.xlu0 %v52_v23  ;;  %50 = vadd.xlane.f32.xlu1 %v49_v26 }
  0xa0   :  { %56 = vadd.xlane.f32.xlu1 %v55_v27 }
 0x125   :  { %v48_v28 = vpop.xlane.xlu0 %47 }
 0x126   :  { %v58_v29 = vmul.f32 0.0625, %v48_v28 }
 0x128   :  { %v62_v30 = vadd.f32 1e-05, %v58_v29 }
 0x129   :  { %v51_v31 = vpop.xlane.xlu1 %50  ;;  %v54_v32 = vpop.xlane.xlu0 %53 }
 0x12a   :  { %104 = vrsqrt.f32 %v62_v30  ;;  %v59_v33 = vmul.f32 0.0625, %v51_v31  ;;  %v60_v34 = vmul.f32 0.0625, %v54_v32 }
 0x12c   :  { %v63_v35 = vadd.f32 1e-05, %v59_v33  ;;  %v64_v36 = vadd.f32 1e-05, %v60_v34 }
 0x12d   :  { %v57_v37 = vpop.xlane.xlu1 %56 }
 0x12e   :  { %106 = vrsqrt.f32 %v63_v35  ;;  %v61_v38 = vmul.f32 0.0625, %v57_v37 }
 0x12f   :  { %108 = vrsqrt.f32 %v64_v36 }
 0x130   :  { %v65_v39 = vadd.f32 1e-05, %v61_v38 }
 0x132   :  { %110 = vrsqrt.f32 %v65_v39 }
 0x134   :  { %v105_v40 = vpop.eup %104 }
 0x135   :  { %v70_v42 = vmul.f32 %v105_v40, %v38_v12 }
 0x137   :  { %v80_v44 = vmul.f32 %v102_v41, %v70_v42 }
 0x138   :  { %v107_v45 = vpop.eup %106 }
 0x139   :  { %v109_v46 = vpop.eup %108  ;;  %v90_v47 = vadd.f32 %v103_v43, %v80_v44  ;;  %v71_v48 = vmul.f32 %v107_v45, %v39_v20 }
 0x13a   :  { %v72_v49 = vmul.f32 %v109_v46, %v40_v13 }
 0x13b   :  { %94 = vst.msk [vmem:[%s177_s3] sm:$0xff] %vm20_vm0, %v90_v47  ;;  %v81_v50 = vmul.f32 %v102_v41, %v71_v48 }
 0x13c   :  { %v111_v51 = vpop.eup %110  ;;  %v82_v52 = vmul.f32 %v102_v41, %v72_v49 }
 0x13d   :  { %v91_v53 = vadd.f32 %v103_v43, %v81_v50  ;;  %v73_v54 = vmul.f32 %v111_v51, %v41_v21 }
 0x13e   :  { %v92_v55 = vadd.f32 %v103_v43, %v82_v52 }
 0x13f   :  { %95 = vst.msk [vmem:[%s177_s3 + $0x8] sm:$0xff] %vm20_vm0, %v91_v53  ;;  %v83_v56 = vmul.f32 %v102_v41, %v73_v54 }
 0x140   :  { %96 = vst.msk [vmem:[%s177_s3 + $0x10] sm:$0xff] %vm20_vm0, %v92_v55 }
 0x141   :  { %v93_v57 = vadd.f32 %v103_v43, %v83_v56 }
 0x143   :  { %97 = vst.msk [vmem:[%s177_s3 + $0x18] sm:$0xff] %vm20_vm0, %v93_v57 }

// kernel: _lambda_.8
= control target key start
LH: loop header
LB: loop body
LE: loop exit
PB: predicated region body
PF: predicated region fallthrough
CT: control target
= control target key end

     0   :  { %s4261_s25 = smov 0   ;;  %s5486_s0 = inlined_call_operand.vmem [shape: f32[2,16,16], index: 0, kind: input, shape index: {}]   ;;  %s5487_s1 = inlined_call_operand.vmem [shape: f32[16,48], index: 1, kind: input, shape index: {}]   ;;  %s5488_s2 = inlined_call_operand.vmem [shape: f32[1,48], index: 2, kind: input, shape index: {}]   ;;  %s5489_s3 = inlined_call_operand.vmem [shape: f32[16,16], index: 3, kind: input, shape index: {}]   ;;  %s5490_s4 = inlined_call_operand.vmem [shape: f32[1,16], index: 4, kind: input, shape index: {}]   ;;  %s5491_s5 = inlined_call_operand.vmem [shape: f32[1,16], index: 5, kind: input, shape index: {}]   ;;  %s5492_s6 = inlined_call_operand.vmem [shape: f32[1,16], index: 6, kind: input, shape index: {}]   ;;  %s5493_s7 = inlined_call_operand.vmem [shape: f32[16,2048], index: 7, kind: input, shape index: {}]   ;;  %s5494_s8 = inlined_call_operand.vmem [shape: f32[1,2048], index: 8, kind: input, shape index: {}]   ;;  %s5495_s9 = inlined_call_operand.vmem [shape: f32[2048,16], index: 9, kind: input, shape index: {}]   ;;  %s5496_s10 = inlined_call_operand.vmem [shape: f32[1,16], index: 10, kind: input, shape index: {}]   ;;  %s5497_s11 = inlined_call_operand.vmem [shape: f32[1,16], index: 11, kind: input, shape index: {}]   ;;  %s5498_s12 = inlined_call_operand.vmem [shape: f32[1,16], index: 12, kind: input, shape index: {}]   ;;  %s5499_s13 = inlined_call_operand.vmem [shape: f32[2,16,16], index: 13, kind: output, shape index: {}]  }
   0x1 LB: > { %s3251_s26 = sadd.s32 4294967295, %s4174_s25   ;;  %p3255_p0 = scmp.ge.s32.totalorder %s4174_s25, 1  ;;  %s4174_s25 = sphi %s4261_s25, %s23_s25  }
   0x2   : > { %p387_p1 = scmp.lt.s32.totalorder %s4174_s25, 3 }
   0x4   : > { %p388_p2 = pnand %p3255_p0, %p387_p1 }
   0x5   : > { %v443_v0 = vld [vmem:[%s5487_s1] sm:$0xff] (!%p388_p2)  ;;  %v444_v1 = vld [vmem:[%s5487_s1 + $0x8] sm:$0xff] (!%p388_p2)  ;;  %p431_p3 = scmp.lt.s32.totalorder (!%p388_p2), %s3251_s26, 1  ;;  %vm455_vm0 = vcmask (!%p388_p2), 130048   ;;  %vm543_vm1 = vcmask (!%p388_p2), 31744   ;;  %s4176_s20 = smov (!%p388_p2), 112  }
   0x6   : > { %391 = sbr.rel (%p388_p2) target bundleno = 4237 (0x108d), region = 72  ;;  %v3729_v2 = vpack.c.bf16 (!%p388_p2), %v444_v1, %v443_v0  ;;  %v3260_v5 = vld [vmem:[%s5488_s2] ss:$0 sm:$0xff] (!%p388_p2)  ;;  %vm4307_vm2 = vmpackc.low (!%p388_p2), %vm543_vm1, %vm543_vm1  ;;  %s4177_s21 = smov (!%p388_p2), 96   ;;  %vm950_vm3 = vcmask (!%p388_p2), 64544   ;;  %vm1163_vm4 = vcmask (!%p388_p2), 97344  }
   0x7   : > { %s4178_s22 = smov (!%p388_p2), 108   ;;  %s4179_s23 = smov (!%p388_p2), 124   ;;  %vm1376_vm5 = vcmask (!%p388_p2), 130144  }
   0x8   : > { %3730 = vmatprep.subr.bf16.mxu0 (!%p388_p2), %v3729_v2  ;;  %s4180_s24 = smov (!%p388_p2), 92   ;;  %s4181_s27 = smov (!%p388_p2), 104  }
   0x9   : > { %3732 = vmatpush3.bf16.msra.mxu0 (!%p388_p2), %v3729_v2  ;;  %s4182_s28 = smov (!%p388_p2), 120   ;;  %s4183_s29 = smov (!%p388_p2), 100  }
   0xa   : > { %s4184_s30 = smov (!%p388_p2), 116   ;;  %s4185_s15 = smov (!%p388_p2), 88  }
   0xb   : > { %s4186_s16 = smov (!%p388_p2), 4   ;;  %s4188_s18 = smov (!%p388_p2), 8  }
   0xd   : > { %s5503_s26 = smov (!%p431_p3, %s3251_s26), 1 }
   0xe   : > { %s3313_s14 = sshll.u32 %s5503_s26, 4 }
   0xf   : > { %s435_s17 = scalar_lea.vmem %s5486_s0, %s3313_s14 }
  0x10   : > { %v4283_v3 = vld [vmem:[%s435_s17] sm:$0xff]  ;;  %v4285_v4 = vld [vmem:[%s435_s17 + $0x8] sm:$0xff]  ;;  %s4187_s17 = smov 84  }
  0x11   : > { %3663 = vmatprep.mubr.msk.f32.mxu0 %vm455_vm0, %v4283_v3 }
  0x12   : > { %3664 = vmatmul.mubr.msk.f32.vlgmr.msra.gmra.mrb[0].mxu0 %vm455_vm0, %v4285_v4 }
  0xe5   : > { %v3665_v6 = vpop.f32.mrb[0].mxu0 }
  0xe6   : > { %v4294_v7 = vadd.f32 %v3665_v6, %v3260_v5  ;;  %v528_v8 = vpop.f32.mrb[1].mxu0 }
  0xe7   : > { %v4296_v9 = vadd.f32 %v3260_v5, %v528_v8 }
  0xe9   : > { %3670 = vmatprep.mubr.msk.f32.mxu1 %vm543_vm1, %v4296_v9  ;;  %v4302_v10 = vpack.i.bf16 %v4294_v7, %v4296_v9 }
  0xeb   : > { %4089 = vrot.lane.b32.xlu0 %v4302_v10, %s4176_s20 }
 0x15d   : > { %v4090_v11 = vpop.permute.xlu0 %4089 }
 0x15e   : > { %v4092_v12 = vunpack.i.h.bf16 %v4090_v11  ;;  %v4091_v13 = vunpack.i.l.bf16 %v4090_v11 }
 0x160   : > { %v3733_v15 = vpack.c.bf16 %v4092_v12, %v4091_v13 }
 0x162   : > { %3735 = vmatprep.subr.msk.bf16.mxu1 %vm4307_vm2, %v3733_v15 }
 0x163   : > { %3738 = vmatpush3.bf16.xpose.msk.msra.mxu1 %vm4307_vm2, %v3733_v15 }
 0x16a   : > { %3671 = vmatmul.mubr.msk.f32.vlgmr.msra.gmra.mrb[0].mxu1 %vm543_vm1, %v4294_v7 }
 0x23d   : > { %v3672_v16 = vpop.f32.mrb[0].mxu1 }
 0x23e   : > { %v628_v17 = vmul.f32 0.5, %v3672_v16  ;;  %v618_v18 = vpop.f32.mrb[1].mxu1 }
 0x23f   : > { %v627_v19 = vmul.f32 0.5, %v618_v18 }
 0x240   : > { %v632_v20 = vsel %vm455_vm0, %v628_v17, -inf }
 0x241   : > { %633 = vmax.xlane.f32.xlu1 %v632_v20  ;;  %v629_v21 = vsel %vm455_vm0, %v627_v19, -inf }
 0x242   : > { %630 = vmax.xlane.f32.xlu0 %v629_v21 }
 0x252   : > { %4094 = vrot.lane.b32.xlu1 %v4302_v10, %s4177_s21 }
 0x256   : > { %4099 = vrot.lane.b32.xlu1 %v4302_v10, %s4178_s22 }
 0x258   : > { %742 = vrot.lane.b32.xlu0 %v4294_v7, %s4179_s23 }
 0x2ce   : > { %v634_v22 = vpop.xlane.xlu1 %633 }
 0x2cf   : > { %v636_v23 = vsub.f32 %v628_v17, %v634_v22  ;;  %v631_v24 = vpop.xlane.xlu0 %630 }
 0x2d0   : > { %v635_v25 = vsub.f32 %v627_v19, %v631_v24 }
 0x2d1   : > { %v639_v26 = vmul.f32 1.442695, %v636_v23 }
 0x2d2   : > { %v637_v27 = vmul.f32 1.442695, %v635_v25  ;;  %v4095_v28 = vpop.permute.xlu1 %4094 }
 0x2d3   : > { %4128 = vpow2.f32 %v639_v26  ;;  %v4097_v29 = vunpack.i.h.bf16 %v4095_v28  ;;  %v4096_v30 = vunpack.i.l.bf16 %v4095_v28  ;;  %v743_v47 = vpop.permute.xlu0 %742 }
 0x2d4   : > { %4130 = vpow2.f32 %v637_v27 }
 0x2d5   : > { %v3739_v31 = vpack.c.bf16 %v4097_v29, %v4096_v30 }
 0x2d6   : > { %v4100_v32 = vpop.permute.xlu1 %4099 }
 0x2d7   : > { %v4102_v33 = vunpack.i.h.bf16 %v4100_v32  ;;  %v4101_v34 = vunpack.i.l.bf16 %v4100_v32  ;;  %3740 = vmatprep.subr.bf16.mxu0 %v3739_v31 }
 0x2d8   : > { %3742 = vmatpush3.bf16.msra.mxu0 %v3739_v31 }
 0x2d9   : > { %v3743_v35 = vpack.c.bf16 %v4102_v33, %v4101_v34 }
 0x2db   : > { %3745 = vmatprep.subr.msk.bf16.mxu0 %vm4307_vm2, %v3743_v35 }
 0x2dd   : > { %v4129_v36 = vpop.eup %4128 }
 0x2de   : > { %v644_v37 = vsel %vm455_vm0, %v4129_v36, 0.0  ;;  %v4131_v38 = vpop.eup %4130 }
 0x2df   : > { %645 = vadd.xlane.f32.xlu1 %v644_v37  ;;  %v641_v39 = vsel %vm455_vm0, %v4131_v38, 0.0 }
 0x2e3   : > { %642 = vadd.xlane.f32.xlu1 %v641_v39 }
 0x2f4   : > { %740 = vrot.lane.b32.xlu1 %v4296_v9, %s4179_s23  ;;  %s4189_s23 = smov 12  }
 0x36c   : > { %v646_v40 = vpop.xlane.xlu1 %645 }
 0x36d   : > { %4132 = vrcp.f32 %v646_v40 }
 0x370   : > { %v643_v41 = vpop.xlane.xlu1 %642 }
 0x371   : > { %4134 = vrcp.f32 %v643_v41 }
 0x374   : > { %v741_v46 = vpop.permute.xlu1 %740 }
 0x377   : > { %v4133_v42 = vpop.eup %4132 }
 0x378   : > { %v650_v45 = vmul.f32 %v4133_v42, %v4129_v36 }
 0x37b   : > { %v4135_v43 = vpop.eup %4134 }
 0x37c   : > { %v649_v44 = vmul.f32 %v4135_v43, %v4131_v38 }
 0x37e   : > { %3677 = vmatprep.mubr.msk.f32.mxu0 %vm455_vm0, %v649_v44 }
 0x37f   : > { %3678 = vmatmul.mubr.msk.f32.vlgmr.msra.gmra.mrb[2].mxu0 %vm455_vm0, %v650_v45 }
 0x380   : > { %3748 = vmatpush3.bf16.xpose.msk.msra.mxu0 %vm4307_vm2, %v3743_v35  ;;  %3684 = vmatprep.mubr.msk.f32.mxu0 %vm543_vm1, %v741_v46 }
 0x387   : > { %3685 = vmatmul.mubr.msk.f32.vlgmr.msra.gmra.mrb[4].mxu0 %vm543_vm1, %v743_v47 }
 0x452   : > { %v3679_v48 = vpop.f32.mrb[2].mxu0 }
 0x453   : > { %739 = vst.msk [vmem:[#allocation2 + $0x8] sm:$0xff] %vm543_vm1, %v3679_v48  ;;  %v729_v49 = vpop.f32.mrb[3].mxu0 }
 0x454   : > { %738 = vst.msk [vmem:[#allocation2] sm:$0xff] %vm543_vm1, %v729_v49 }
 0x45a   : > { %v3686_v50 = vpop.f32.mrb[4].mxu0 }
 0x45b   : > { %v832_v51 = vmul.f32 0.5, %v3686_v50  ;;  %v822_v52 = vpop.f32.mrb[5].mxu0 }
 0x45c   : > { %v831_v53 = vmul.f32 0.5, %v822_v52 }
 0x45d   : > { %v836_v54 = vsel %vm455_vm0, %v832_v51, -inf }
 0x45e   : > { %837 = vmax.xlane.f32.xlu0 %v836_v54  ;;  %v833_v55 = vsel %vm455_vm0, %v831_v53, -inf }
 0x45f   : > { %834 = vmax.xlane.f32.xlu1 %v833_v55 }
 0x470   : > { %4104 = vrot.lane.b32.xlu1 %v4302_v10, %s4180_s24 }
 0x474   : > { %4109 = vrot.lane.b32.xlu0 %v4302_v10, %s4181_s27  ;;  %953 = vrot.lane.b32.xlu1 %v4296_v9, %s4182_s28 }
 0x4eb   : > { %v838_v56 = vpop.xlane.xlu0 %837 }
 0x4ec   : > { %v840_v57 = vsub.f32 %v832_v51, %v838_v56  ;;  %v835_v58 = vpop.xlane.xlu1 %834 }
 0x4ed   : > { %v839_v59 = vsub.f32 %v831_v53, %v835_v58 }
 0x4ee   : > { %v843_v60 = vmul.f32 1.442695, %v840_v57 }
 0x4ef   : > { %v841_v61 = vmul.f32 1.442695, %v839_v59  ;;  %v4110_v62 = vpop.permute.xlu0 %4109 }
 0x4f0   : > { %4136 = vpow2.f32 %v843_v60  ;;  %v4105_v63 = vpop.permute.xlu1 %4104  ;;  %v4112_v0 = vunpack.i.h.bf16 %v4110_v62  ;;  %v4111_v1 = vunpack.i.l.bf16 %v4110_v62 }
 0x4f1   : > { %v4107_v2 = vunpack.i.h.bf16 %v4105_v63  ;;  %v4106_v5 = vunpack.i.l.bf16 %v4105_v63  ;;  %4138 = vpow2.f32 %v841_v61 }
 0x4f2   : > { %v3753_v8 = vpack.c.bf16 %v4112_v0, %v4111_v1 }
 0x4f3   : > { %v3749_v6 = vpack.c.bf16 %v4107_v2, %v4106_v5 }
 0x4f4   : > { %v954_v16 = vpop.permute.xlu1 %953 }
 0x4f5   : > { %3750 = vmatprep.subr.bf16.mxu1 %v3749_v6 }
 0x4f6   : > { %3752 = vmatpush3.bf16.msra.mxu1 %v3749_v6 }
 0x4f7   : > { %3755 = vmatprep.subr.msk.bf16.mxu1 %vm4307_vm2, %v3753_v8 }
 0x4fa   : > { %v4137_v11 = vpop.eup %4136 }
 0x4fb   : > { %v848_v12 = vsel %vm455_vm0, %v4137_v11, 0.0  ;;  %v4139_v13 = vpop.eup %4138 }
 0x4fc   : > { %849 = vadd.xlane.f32.xlu1 %v848_v12  ;;  %v845_v15 = vsel %vm455_vm0, %v4139_v13, 0.0 }
 0x500   : > { %846 = vadd.xlane.f32.xlu1 %v845_v15 }
 0x511   : > { %955 = vrot.lane.b32.xlu1 %v4294_v7, %s4182_s28 }
 0x589   : > { %v850_v17 = vpop.xlane.xlu1 %849 }
 0x58a   : > { %4140 = vrcp.f32 %v850_v17 }
 0x58d   : > { %v847_v18 = vpop.xlane.xlu1 %846 }
 0x58e   : > { %4142 = vrcp.f32 %v847_v18 }
 0x591   : > { %v956_v23 = vpop.permute.xlu1 %955 }
 0x594   : > { %v4141_v19 = vpop.eup %4140 }
 0x595   : > { %v854_v22 = vmul.f32 %v4141_v19, %v4137_v11 }
 0x598   : > { %v4143_v20 = vpop.eup %4142 }
 0x599   : > { %v853_v21 = vmul.f32 %v4143_v20, %v4139_v13 }
 0x59b   : > { %3691 = vmatprep.mubr.msk.f32.mxu1 %vm455_vm0, %v853_v21 }
 0x59c   : > { %3692 = vmatmul.mubr.msk.f32.vlgmr.msra.gmra.mrb[2].mxu1 %vm455_vm0, %v854_v22 }
 0x59d   : > { %3758 = vmatpush3.bf16.xpose.msk.msra.mxu1 %vm4307_vm2, %v3753_v8  ;;  %3698 = vmatprep.mubr.msk.f32.mxu1 %vm543_vm1, %v954_v16 }
 0x5a4   : > { %3699 = vmatmul.mubr.msk.f32.vlgmr.msra.gmra.mrb[4].mxu1 %vm543_vm1, %v956_v23 }
 0x66f   : > { %v4351_v24 = vpop.f32.mrb[2].mxu1 }
 0x670   : > { %v4353_v25 = vpop.f32.mrb[3].mxu1 }
 0x677   : > { %v3700_v26 = vpop.f32.mrb[4].mxu1 }
 0x678   : > { %v1045_v27 = vmul.f32 0.5, %v3700_v26  ;;  %v1035_v28 = vpop.f32.mrb[5].mxu1 }
 0x679   : > { %v1044_v29 = vmul.f32 0.5, %v1035_v28  ;;  %v446_v28 = vld [vmem:[%s5489_s3] sm:$0xff] }
 0x67a   : > { %v1049_v30 = vsel %vm455_vm0, %v1045_v27, -inf }
 0x67b   : > { %1050 = vmax.xlane.f32.xlu0 %v1049_v30  ;;  %v1046_v31 = vsel %vm455_vm0, %v1044_v29, -inf }
 0x67c   : > { %1047 = vmax.xlane.f32.xlu1 %v1046_v31 }
 0x708   : > { %v1051_v32 = vpop.xlane.xlu0 %1050 }
 0x709   : > { %v1053_v33 = vsub.f32 %v1045_v27, %v1051_v32  ;;  %v1048_v34 = vpop.xlane.xlu1 %1047 }
 0x70a   : > { %v1052_v35 = vsub.f32 %v1044_v29, %v1048_v34  ;;  %v447_v29 = vld [vmem:[%s5489_s3 + $0x8] sm:$0xff] }
 0x70b   : > { %v1056_v36 = vmul.f32 1.442695, %v1053_v33  ;;  %v3773_v30 = vpack.c.bf16 %v447_v29, %v446_v28  ;;  %v1526_v28 = vld [vmem:[%s5493_s7 + $0x58] sm:$0xff] }
 0x70c   : > { %v1054_v37 = vmul.f32 1.442695, %v1052_v35  ;;  %v1542_v29 = vld [vmem:[%s5493_s7 + $0xd8] sm:$0xff] }
 0x70d   : > { %4144 = vpow2.f32 %v1056_v36 }
 0x70e   : > { %4146 = vpow2.f32 %v1054_v37  ;;  %v3287_v37 = vld [vmem:[%s5490_s4] ss:$0 sm:$0xff] }
 0x717   : > { %v4145_v38 = vpop.eup %4144 }
 0x718   : > { %v4147_v39 = vpop.eup %4146  ;;  %v1061_v40 = vsel %vm455_vm0, %v4145_v38, 0.0 }
 0x719   : > { %1062 = vadd.xlane.f32.xlu1 %v1061_v40  ;;  %v1058_v41 = vsel %vm455_vm0, %v4147_v39, 0.0 }
 0x71a   : > { %1059 = vadd.xlane.f32.xlu0 %v1058_v41 }
 0x72a   : > { %4119 = vrot.lane.b32.xlu1 %v4302_v10, %s4183_s29 }
 0x72e   : > { %1166 = vrot.lane.b32.xlu1 %v4296_v9, %s4184_s30 }
 0x730   : > { %4114 = vrot.lane.b32.xlu0 %v4302_v10, %s4185_s15 }
 0x734   : > { %1168 = vrot.lane.b32.xlu0 %v4294_v7, %s4184_s30 }
 0x7a6   : > { %v1063_v42 = vpop.xlane.xlu1 %1062 }
 0x7a7   : > { %4148 = vrcp.f32 %v1063_v42  ;;  %v1060_v43 = vpop.xlane.xlu0 %1059 }
 0x7a8   : > { %4150 = vrcp.f32 %v1060_v43 }
 0x7aa   : > { %v4120_v44 = vpop.permute.xlu1 %4119 }
 0x7ab   : > { %v4115_v45 = vpop.permute.xlu0 %4114  ;;  %v4122_v46 = vunpack.i.h.bf16 %v4120_v44  ;;  %v4121_v47 = vunpack.i.l.bf16 %v4120_v44 }
 0x7ac   : > { %v4117_v48 = vunpack.i.h.bf16 %v4115_v45  ;;  %v4116_v49 = vunpack.i.l.bf16 %v4115_v45 }
 0x7ad   : > { %v3763_v51 = vpack.c.bf16 %v4122_v46, %v4121_v47 }
 0x7ae   : > { %v3759_v50 = vpack.c.bf16 %v4117_v48, %v4116_v49  ;;  %v1167_v54 = vpop.permute.xlu1 %1166 }
 0x7af   : > { %v1169_v55 = vpop.permute.xlu0 %1168 }
 0x7b0   : > { %3760 = vmatprep.subr.bf16.mxu0 %v3759_v50 }
 0x7b1   : > { %v4149_v52 = vpop.eup %4148  ;;  %3762 = vmatpush3.bf16.msra.mxu0 %v3759_v50 }
 0x7b2   : > { %v4151_v9 = vpop.eup %4150  ;;  %3765 = vmatprep.subr.msk.bf16.mxu0 %vm4307_vm2, %v3763_v51  ;;  %v1067_v53 = vmul.f32 %v4149_v52, %v4145_v38 }
 0x7b3   : > { %v1066_v7 = vmul.f32 %v4151_v9, %v4147_v39 }
 0x7b5   : > { %3705 = vmatprep.mubr.msk.f32.mxu0 %vm455_vm0, %v1066_v7 }
 0x7b6   : > { %3706 = vmatmul.mubr.msk.f32.vlgmr.msra.gmra.mrb[6].mxu0 %vm455_vm0, %v1067_v53  ;;  %v1532_v53 = vld [vmem:[%s5493_s7 + $0x88] sm:$0xff] }
 0x7b7   : > { %3712 = vmatprep.mubr.msk.f32.mxu0 %vm543_vm1, %v1167_v54  ;;  %v1518_v54 = vld [vmem:[%s5493_s7 + $0x18] sm:$0xff] }
 0x7ba   : > { %3768 = vmatpush3.bf16.xpose.msk.msra.mxu0 %vm4307_vm2, %v3763_v51 }
 0x7c1   : > { %3713 = vmatmul.mubr.msk.f32.vlgmr.msra.gmra.mrb[8].mxu0 %vm543_vm1, %v1169_v55 }
 0x889   : > { %v3707_v56 = vpop.f32.mrb[6].mxu0 }
 0x88a   : > { %v1146_v57 = vpop.f32.mrb[7].mxu0 }
 0x894   : > { %v3714_v58 = vpop.f32.mrb[8].mxu0 }
 0x895   : > { %v1258_v59 = vmul.f32 0.5, %v3714_v58  ;;  %v1248_v60 = vpop.f32.mrb[9].mxu0  ;;  %v1534_v58 = vld [vmem:[%s5493_s7 + $0x98] sm:$0xff] }
 0x896   : > { %v1257_v61 = vmul.f32 0.5, %v1248_v60  ;;  %v3781_v60 = vpack.c.bf16 %v1534_v58, %v1518_v54  ;;  %v1598_v54 = vld [vmem:[%s5495_s9 + $0x188] sm:$0xff] }
 0x897   : > { %v1262_v62 = vsel %vm455_vm0, %v1258_v59, -inf }
 0x898   : > { %1263 = vmax.xlane.f32.xlu0 %v1262_v62  ;;  %v1259_v63 = vsel %vm455_vm0, %v1257_v61, -inf  ;;  %v1533_v62 = vld [vmem:[%s5493_s7 + $0x90] sm:$0xff] }
 0x899   : > { %1260 = vmax.xlane.f32.xlu1 %v1259_v63 }
 0x925   : > { %v1264_v0 = vpop.xlane.xlu0 %1263 }
 0x926   : > { %v1266_v1 = vsub.f32 %v1258_v59, %v1264_v0  ;;  %v1261_v2 = vpop.xlane.xlu1 %1260  ;;  %v4190_v0 = vmov 0.0  }
 0x927   : > { %v1265_v14 = vsub.f32 %v1257_v61, %v1261_v2  ;;  %v1517_v61 = vld [vmem:[%s5493_s7 + $0x10] sm:$0xff]  ;;  %1958 = vmatprep.mubr.f32.mxu0 %v4190_v0  ;;  %v1536_v2 = vld [vmem:[%s5493_s7 + $0xa8] sm:$0xff] }
 0x928   : > { %v1269_v5 = vmul.f32 1.442695, %v1266_v1  ;;  %v3783_v63 = vpack.c.bf16 %v1533_v62, %v1517_v61  ;;  %v1520_v1 = vld [vmem:[%s5493_s7 + $0x28] sm:$0xff]  ;;  %v1581_v61 = vld [vmem:[%s5495_s9 + $0x100] sm:$0xff] }
 0x929   : > { %v1267_v6 = vmul.f32 1.442695, %v1265_v14  ;;  %v1522_v14 = vld [vmem:[%s5493_s7 + $0x38] sm:$0xff]  ;;  %v1582_v62 = vld [vmem:[%s5495_s9 + $0x108] sm:$0xff] }
 0x92a   : > { %4152 = vpow2.f32 %v1269_v5  ;;  %v3785_v5 = vpack.c.bf16 %v1536_v2, %v1520_v1  ;;  %v1568_v1 = vld [vmem:[%s5495_s9 + $0x98] sm:$0xff]  ;;  %v1599_v2 = vld [vmem:[%s5495_s9 + $0x190] sm:$0xff] }
 0x92b   : > { %4154 = vpow2.f32 %v1267_v6  ;;  %v1538_v6 = vld [vmem:[%s5493_s7 + $0xb8] sm:$0xff] }
 0x934   : > { %v4153_v8 = vpop.eup %4152 }
 0x935   : > { %v4155_v11 = vpop.eup %4154  ;;  %v1274_v12 = vsel %vm455_vm0, %v4153_v8, 0.0 }
 0x936   : > { %1275 = vadd.xlane.f32.xlu1 %v1274_v12  ;;  %v1271_v13 = vsel %vm455_vm0, %v4155_v11, 0.0 }
 0x937   : > { %1272 = vadd.xlane.f32.xlu0 %v1271_v13 }
 0x947   : > { %944 = vrot.lane.b32.xlu1 %v4353_v25, %s4186_s16 }
 0x94b   : > { %946 = vrot.lane.b32.xlu1 %v4351_v24, %s4186_s16  ;;  %s440_s16 = scalar_lea.vmem %s5499_s13, %s3313_s14 }
 0x94d   : > { %4124 = vrot.lane.b32.xlu0 %v4302_v10, %s4187_s17 }
 0x94f   : > { %1159 = vrot.lane.b32.xlu1 %v3707_v56, %s4188_s18  ;;  %v1515_v56 = vld [vmem:[%s5493_s7] sm:$0xff] }
 0x951   : > { %1157 = vrot.lane.b32.xlu0 %v1146_v57, %s4188_s18  ;;  %v1531_v57 = vld [vmem:[%s5493_s7 + $0x80] sm:$0xff] }
 0x952   : > { %v3779_v59 = vpack.c.bf16 %v1531_v57, %v1515_v56 }
 0x9c3   : > { %v1276_v15 = vpop.xlane.xlu1 %1275 }
 0x9c4   : > { %4156 = vrcp.f32 %v1276_v15  ;;  %v1273_v16 = vpop.xlane.xlu0 %1272 }
 0x9c5   : > { %4158 = vrcp.f32 %v1273_v16 }
 0x9c7   : > { %v945_v17 = vpop.permute.xlu1 %944 }
 0x9c8   : > { %951 = vst.msk [vmem:[#allocation2] sm:$0xff] %vm950_vm3, %v945_v17  ;;  %v4125_v18 = vpop.permute.xlu0 %4124 }
 0x9c9   : > { %v4127_v19 = vunpack.i.h.bf16 %v4125_v18  ;;  %v4126_v20 = vunpack.i.l.bf16 %v4125_v18 }
 0x9cb   : > { %v3769_v21 = vpack.c.bf16 %v4127_v19, %v4126_v20  ;;  %v947_v22 = vpop.permute.xlu1 %946  ;;  %v3290_v19 = vld [vmem:[%s5491_s5] ss:$0 sm:$0xff] }
 0x9cc   : > { %952 = vst.msk [vmem:[#allocation2 + $0x8] sm:$0xff] %vm950_vm3, %v947_v22  ;;  %v1158_v23 = vpop.permute.xlu0 %1157  ;;  %v3291_v20 = vld [vmem:[%s5492_s6] ss:$0 sm:$0xff] }
 0x9cd   : > { %1164 = vst.msk [vmem:[#allocation2] sm:$0xff] %vm1163_vm4, %v1158_v23  ;;  %3770 = vmatprep.subr.bf16.mxu1 %v3769_v21  ;;  %v1519_v22 = vld [vmem:[%s5493_s7 + $0x20] sm:$0xff] }
 0x9ce   : > { %v4157_v10 = vpop.eup %4156  ;;  %3772 = vmatpush3.bf16.msra.mxu1 %v3769_v21  ;;  %v1535_v23 = vld [vmem:[%s5493_s7 + $0xa0] sm:$0xff] }
 0x9cf   : > { %v4159_v24 = vpop.eup %4158  ;;  %v1160_v25 = vpop.permute.xlu1 %1159  ;;  %v1280_v27 = vmul.f32 %v4157_v10, %v4153_v8  ;;  %3774 = vmatprep.subr.bf16.mxu1 %v3773_v30  ;;  %v3789_v8 = vpack.c.bf16 %v1538_v6, %v1522_v14  ;;  %v1521_v10 = vld [vmem:[%s5493_s7 + $0x30] sm:$0xff]  ;;  %v1600_v14 = vld [vmem:[%s5495_s9 + $0x198] sm:$0xff]  ;;  %v3843_v6 = vpack.c.bf16 %v1582_v62, %v1581_v61  ;;  %v1577_v61 = vld [vmem:[%s5495_s9 + $0xe0] sm:$0xff] }
 0x9d0   : > { %1165 = vst.msk [vmem:[#allocation2 + $0x8] sm:$0xff] %vm1163_vm4, %v1160_v25  ;;  %v1279_v26 = vmul.f32 %v4159_v24, %v4155_v11  ;;  %v1537_v24 = vld [vmem:[%s5493_s7 + $0xb0] sm:$0xff]  ;;  %v1524_v25 = vld [vmem:[%s5493_s7 + $0x48] sm:$0xff] }
 0x9d1   : > { %v1578_v62 = vld [vmem:[%s5495_s9 + $0xe8] sm:$0xff] }
 0x9d2   : > { %3719 = vmatprep.mubr.msk.f32.mxu1 %vm455_vm0, %v1279_v26 }
 0x9d3   : > { %3720 = vmatmul.mubr.msk.f32.vlgmr.msra.gmra.mrb[6].mxu1 %vm455_vm0, %v1280_v27  ;;  %v1540_v27 = vld [vmem:[%s5493_s7 + $0xc8] sm:$0xff] }
 0x9d4   : > { %3776 = vmatpush3.bf16.msra.mxu1 %v3773_v30 }
 0x9d5   : > { %3782 = vmatprep.subr.bf16.mxu1 %v3781_v60  ;;  %v1550_v60 = vld [vmem:[%s5495_s9 + $0x8] sm:$0xff] }
 0xaa6   : > { %v3721_v31 = vpop.f32.mrb[6].mxu1 }
 0xaa7   : > { %1372 = vrot.lane.b32.xlu1 %v3721_v31, %s4189_s23  ;;  %v1359_v32 = vpop.f32.mrb[7].mxu1 }
 0xaa8   : > { %1370 = vrot.lane.b32.xlu0 %v1359_v32, %s4189_s23 }
 0xb19   : > { %v1373_v33 = vpop.permute.xlu1 %1372 }
 0xb1a   : > { %1378 = vst.msk [vmem:[#allocation2 + $0x8] sm:$0xff] %vm1376_vm5, %v1373_v33  ;;  %v1371_v34 = vpop.permute.xlu0 %1370  ;;  %v3787_v33 = vpack.c.bf16 %v1535_v23, %v1519_v22  ;;  %v1553_v23 = vld [vmem:[%s5495_s9 + $0x20] sm:$0xff] }
 0xb1b   : > { %1377 = vst.msk [vmem:[#allocation2] sm:$0xff] %vm1376_vm5, %v1371_v34  ;;  %v3791_v34 = vpack.c.bf16 %v1537_v24, %v1521_v10  ;;  %v1554_v10 = vld [vmem:[%s5495_s9 + $0x28] sm:$0xff] }
 0xb21   : > { %v1380_v36 = vld [vmem:[#allocation2 + $0x8] sm:$0xff] }
 0xb22   : > { %v1379_v35 = vld [vmem:[#allocation2] sm:$0xff] }
 0xb23   : > { %3726 = vmatprep.mubr.msk.f32.mxu1 %vm455_vm0, %v1379_v35  ;;  %v3793_v35 = vpack.c.bf16 %v1540_v27, %v1524_v25  ;;  %v1571_v27 = vld [vmem:[%s5495_s9 + $0xb0] sm:$0xff] }
 0xb24   : > { %3727 = vmatmul.mubr.msk.f32.vlgmr.msra.gmra.mrb[8].mxu1 %vm455_vm0, %v1380_v36  ;;  %v3797_v36 = vpack.c.bf16 %v1542_v29, %v1526_v28  ;;  %v1572_v28 = vld [vmem:[%s5495_s9 + $0xb8] sm:$0xff]  ;;  %v1603_v29 = vld [vmem:[%s5495_s9 + $0x1b0] sm:$0xff] }
 0xb25   : > { %3784 = vmatpush1.bf16.msra.mxu1 %v3783_v63  ;;  %2035 = vmatprep.mubr.f32.mxu1 %v4190_v0  ;;  %v1567_v63 = vld [vmem:[%s5495_s9 + $0x90] sm:$0xff] }
 0xb26   : > { %3790 = vmatprep.subr.bf16.mxu1 %v3789_v8  ;;  %v1551_v8 = vld [vmem:[%s5495_s9 + $0x10] sm:$0xff] }
 0xbf7   : > { %v3728_v38 = vpop.f32.mrb[8].mxu1 }
 0xbf8   : > { %v1465_v39 = vadd.f32 %v3728_v38, %v3287_v37  ;;  %v1459_v40 = vpop.f32.mrb[9].mxu1 }
 0xbf9   : > { %v1460_v41 = vadd.f32 %v3287_v37, %v1459_v40  ;;  %v1539_v40 = vld [vmem:[%s5493_s7 + $0xc0] sm:$0xff] }
 0xbfa   : > { %v1469_v42 = vadd.f32 %v1465_v39, %v4285_v4  ;;  %v1523_v39 = vld [vmem:[%s5493_s7 + $0x40] sm:$0xff] }
 0xbfb   : > { %v1468_v43 = vadd.f32 %v1460_v41, %v4283_v3  ;;  %v1516_v3 = vld [vmem:[%s5493_s7 + $0x8] sm:$0xff]  ;;  %v1525_v41 = vld [vmem:[%s5493_s7 + $0x50] sm:$0xff] }
 0xbfc   : > { %v1475_v44 = vsel %vm455_vm0, %v1469_v42, 0.0  ;;  %v3777_v55 = vpack.c.bf16 %v1532_v53, %v1516_v3  ;;  %v1566_v3 = vld [vmem:[%s5495_s9 + $0x88] sm:$0xff]  ;;  %v1597_v53 = vld [vmem:[%s5495_s9 + $0x180] sm:$0xff] }
 0xbfd   : > { %1476 = vadd.xlane.f32.xlu1 %v1475_v44  ;;  %v1472_v45 = vsel %vm455_vm0, %v1468_v43, 0.0  ;;  %v1544_v44 = vld [vmem:[%s5493_s7 + $0xe8] sm:$0xff]  ;;  %v3841_v58 = vpack.c.bf16 %v1598_v54, %v1597_v53 }
 0xbfe   : > { %1473 = vadd.xlane.f32.xlu0 %v1472_v45  ;;  %3778 = vmatprep.subr.bf16.mxu0 %v3777_v55  ;;  %v1530_v45 = vld [vmem:[%s5493_s7 + $0x78] sm:$0xff] }
 0xbff   : > { %3780 = vmatpush1.bf16.msra.mxu0 %v3779_v59  ;;  %v1549_v59 = vld [vmem:[%s5495_s9] sm:$0xff] }
 0xc00   : > { %3786 = vmatprep.subr.bf16.mxu0 %v3785_v5  ;;  %v3811_v5 = vpack.c.bf16 %v1550_v60, %v1549_v59  ;;  %v1591_v59 = vld [vmem:[%s5495_s9 + $0x150] sm:$0xff]  ;;  %v1592_v60 = vld [vmem:[%s5495_s9 + $0x158] sm:$0xff] }
 0xc8a   : > { %v1477_v46 = vpop.xlane.xlu1 %1476 }
 0xc8b   : > { %v1480_v47 = vmul.f32 0.0625, %v1477_v46  ;;  %v1474_v48 = vpop.xlane.xlu0 %1473  ;;  %v1546_v46 = vld [vmem:[%s5493_s7 + $0xf8] sm:$0xff] }
 0xc8c   : > { %v1479_v49 = vmul.f32 0.0625, %v1474_v48 }
 0xc8d   : > { %v1482_v50 = vsub.f32 %v1469_v42, %v1480_v47  ;;  %v1541_v42 = vld [vmem:[%s5493_s7 + $0xd0] sm:$0xff]  ;;  %v3795_v47 = vpack.c.bf16 %v1539_v40, %v1523_v39  ;;  %v1588_v40 = vld [vmem:[%s5495_s9 + $0x138] sm:$0xff] }
 0xc8e   : > { %v1481_v51 = vsub.f32 %v1468_v43, %v1479_v49  ;;  %v1528_v43 = vld [vmem:[%s5493_s7 + $0x68] sm:$0xff]  ;;  %v3799_v48 = vpack.c.bf16 %v1541_v42, %v1525_v41  ;;  %v1587_v39 = vld [vmem:[%s5495_s9 + $0x130] sm:$0xff]  ;;  %v1573_v41 = vld [vmem:[%s5495_s9 + $0xc0] sm:$0xff] }
 0xc8f   : > { %v1484_v7 = vmul.f32 %v1482_v50, %v1482_v50  ;;  %v3801_v49 = vpack.c.bf16 %v1544_v44, %v1528_v43  ;;  %v1574_v42 = vld [vmem:[%s5495_s9 + $0xc8] sm:$0xff]  ;;  %v1605_v43 = vld [vmem:[%s5495_s9 + $0x1c0] sm:$0xff] }
 0xc90   : > { %v1483_v52 = vmul.f32 %v1481_v51, %v1481_v51  ;;  %v1606_v44 = vld [vmem:[%s5495_s9 + $0x1c8] sm:$0xff] }
 0xc91   : > { %v1488_v4 = vsel %vm455_vm0, %v1484_v7, 0.0  ;;  %v1545_v7 = vld [vmem:[%s5493_s7 + $0xf0] sm:$0xff] }
 0xc92   : > { %v1485_v9 = vsel %vm455_vm0, %v1483_v52, 0.0  ;;  %v1543_v52 = vld [vmem:[%s5493_s7 + $0xe0] sm:$0xff] }
 0xc93   : > { %1486 = vadd.xlane.f32.xlu0 %v1485_v9  ;;  %v1529_v9 = vld [vmem:[%s5493_s7 + $0x70] sm:$0xff] }
 0xc94   : > { %v3807_v56 = vpack.c.bf16 %v1545_v7, %v1529_v9  ;;  %v1575_v9 = vld [vmem:[%s5495_s9 + $0xd0] sm:$0xff]  ;;  %v1576_v7 = vld [vmem:[%s5495_s9 + $0xd8] sm:$0xff] }
 0xc97   : > { %1489 = vadd.xlane.f32.xlu0 %v1488_v4  ;;  %v1565_v4 = vld [vmem:[%s5495_s9 + $0x80] sm:$0xff] }
 0xc98   : > { %v3809_v57 = vpack.c.bf16 %v1566_v3, %v1565_v4  ;;  %v1607_v4 = vld [vmem:[%s5495_s9 + $0x1d0] sm:$0xff]  ;;  %v1608_v3 = vld [vmem:[%s5495_s9 + $0x1d8] sm:$0xff] }
 0xd20   : > { %v1487_v11 = vpop.xlane.xlu0 %1486 }
 0xd21   : > { %v1491_v12 = vmul.f32 0.0625, %v1487_v11  ;;  %v1552_v11 = vld [vmem:[%s5495_s9 + $0x18] sm:$0xff] }
 0xd23   : > { %v1493_v13 = vadd.f32 1e-05, %v1491_v12  ;;  %v3813_v12 = vpack.c.bf16 %v1568_v1, %v1567_v63  ;;  %v1609_v63 = vld [vmem:[%s5495_s9 + $0x1e0] sm:$0xff]  ;;  %v1610_v1 = vld [vmem:[%s5495_s9 + $0x1e8] sm:$0xff] }
 0xd24   : > { %v1490_v15 = vpop.xlane.xlu0 %1489 }
 0xd25   : > { %4160 = vrsqrt.f32 %v1493_v13  ;;  %v1492_v16 = vmul.f32 0.0625, %v1490_v15  ;;  %v3845_v13 = vpack.c.bf16 %v1600_v14, %v1599_v2  ;;  %v1583_v15 = vld [vmem:[%s5495_s9 + $0x110] sm:$0xff]  ;;  %v3863_v14 = vpack.c.bf16 %v1592_v60, %v1591_v59 }
 0xd27   : > { %v1494_v17 = vadd.f32 1e-05, %v1492_v16  ;;  %v1584_v16 = vld [vmem:[%s5495_s9 + $0x118] sm:$0xff] }
 0xd28   : > { %v3847_v22 = vpack.c.bf16 %v1584_v16, %v1583_v15 }
 0xd29   : > { %4162 = vrsqrt.f32 %v1494_v17  ;;  %v1569_v17 = vld [vmem:[%s5495_s9 + $0xa0] sm:$0xff] }
 0xd2f   : > { %v4161_v18 = vpop.eup %4160 }
 0xd30   : > { %v1497_v21 = vmul.f32 %v4161_v18, %v1481_v51  ;;  %v1527_v51 = vld [vmem:[%s5493_s7 + $0x60] sm:$0xff]  ;;  %v1570_v18 = vld [vmem:[%s5495_s9 + $0xa8] sm:$0xff] }
 0xd31   : > { %v3803_v55 = vpack.c.bf16 %v1543_v52, %v1527_v51  ;;  %v3817_v24 = vpack.c.bf16 %v1570_v18, %v1569_v17  ;;  %v1589_v51 = vld [vmem:[%s5495_s9 + $0x140] sm:$0xff]  ;;  %v1590_v52 = vld [vmem:[%s5495_s9 + $0x148] sm:$0xff]  ;;  %v1579_v17 = vld [vmem:[%s5495_s9 + $0xf0] sm:$0xff] }
 0xd32   : > { %v1505_v26 = vmul.f32 %v3290_v19, %v1497_v21  ;;  %v3815_v21 = vpack.c.bf16 %v1552_v11, %v1551_v8  ;;  %v3859_v54 = vpack.c.bf16 %v1590_v52, %v1589_v51  ;;  %v3865_v8 = vpack.c.bf16 %v1610_v1, %v1609_v63  ;;  %v1562_v11 = vld [vmem:[%s5495_s9 + $0x68] sm:$0xff]  ;;  %v1580_v18 = vld [vmem:[%s5495_s9 + $0xf8] sm:$0xff]  ;;  %v1645_v51 = vld [vmem:[%s5495_s9 + $0x300] sm:$0xff] }
 0xd33   : > { %v4163_v30 = vpop.eup %4162  ;;  %v1646_v52 = vld [vmem:[%s5495_s9 + $0x308] sm:$0xff]  ;;  %v1615_v63 = vld [vmem:[%s5495_s9 + $0x210] sm:$0xff] }
 0xd34   : > { %v4465_v31 = vadd.f32 %v3291_v20, %v1505_v26  ;;  %v1498_v32 = vmul.f32 %v4163_v30, %v1482_v50  ;;  %v3805_v50 = vpack.c.bf16 %v1546_v46, %v1530_v45  ;;  %v1586_v26 = vld [vmem:[%s5495_s9 + $0x128] sm:$0xff]  ;;  %v1604_v30 = vld [vmem:[%s5495_s9 + $0x1b8] sm:$0xff]  ;;  %v3855_v46 = vpack.c.bf16 %v1588_v40, %v1587_v39  ;;  %v4762_v39 = vld [vmem:[%s5494_s8] sm:$0xff] }
 0xd36   : > { %v1506_v37 = vmul.f32 %v3290_v19, %v1498_v32  ;;  %3292 = vmatmul.mubr.msk.f32.vlgmr.msra.gmra.mrb[10].mxu0 %vm455_vm0, %v4465_v31  ;;  %3294 = vmatmul.mubr.msk.f32.vlgmr.msra.gmra.mrb[10].mxu1 %vm455_vm0, %v4465_v31  ;;  %v1601_v19 = vld [vmem:[%s5495_s9 + $0x1a0] sm:$0xff]  ;;  %v3819_v32 = vpack.c.bf16 %v1554_v10, %v1553_v23  ;;  %v1564_v23 = vld [vmem:[%s5495_s9 + $0x78] sm:$0xff] }
 0xd37   : > { %1964 = vmatprep.mubr.f32.mxu0 %v4190_v0  ;;  %2041 = vmatprep.mubr.f32.mxu1 %v4190_v0 }
 0xd38   : > { %v4473_v38 = vadd.f32 %v3291_v20, %v1506_v37  ;;  %3788 = vmatpush1.bf16.msra.mxu0 %v3787_v33  ;;  %3792 = vmatpush1.bf16.msra.mxu1 %v3791_v34  ;;  %v1602_v20 = vld [vmem:[%s5495_s9 + $0x1a8] sm:$0xff]  ;;  %v1555_v34 = vld [vmem:[%s5495_s9 + $0x30] sm:$0xff]  ;;  %v3853_v37 = vpack.c.bf16 %v1604_v30, %v1603_v29  ;;  %v1661_v29 = vld [vmem:[%s5495_s9 + $0x380] sm:$0xff] }
 0xd39   : > { %3794 = vmatprep.subr.bf16.mxu0 %v3793_v35  ;;  %3798 = vmatprep.subr.bf16.mxu1 %v3797_v36  ;;  %v3849_v25 = vpack.c.bf16 %v1602_v20, %v1601_v19  ;;  %v1556_v35 = vld [vmem:[%s5495_s9 + $0x38] sm:$0xff]  ;;  %v3821_v36 = vpack.c.bf16 %v1572_v28, %v1571_v27  ;;  %v1611_v19 = vld [vmem:[%s5495_s9 + $0x1f0] sm:$0xff]  ;;  %v3837_v20 = vpack.c.bf16 %v1580_v18, %v1579_v17  ;;  %v1629_v27 = vld [vmem:[%s5495_s9 + $0x280] sm:$0xff] }
 0xd3a   : > { %3293 = vmatmul.mubr.msk.f32.gmra.mrb[12].mxu0 %vm455_vm0, %v4473_v38  ;;  %3295 = vmatmul.mubr.msk.f32.gmra.mrb[12].mxu1 %vm455_vm0, %v4473_v38  ;;  %v3823_v45 = vpack.c.bf16 %v1556_v35, %v1555_v34  ;;  %v1630_v28 = vld [vmem:[%s5495_s9 + $0x288] sm:$0xff]  ;;  %v1808_v34 = vlaneseq }
 0xd3b   : > { %2112 = vmatprep.mubr.f32.mxu0 %v4190_v0  ;;  %2189 = vmatprep.mubr.f32.mxu1 %v4190_v0  ;;  %v3873_v30 = vpack.c.bf16 %v1630_v28, %v1629_v27  ;;  %v1618_v27 = vld [vmem:[%s5495_s9 + $0x228] sm:$0xff] }
 0xd3c   : > { %v4755_v35 = vshrl.u32 %v1808_v34, 7 }
 0xd3e   : > { %3296 = vmatmul.mubr.msk.f32.vlgmr.msra.gmra.mrb[14].mxu0 %vm455_vm0, %v4465_v31  ;;  %3298 = vmatmul.mubr.msk.f32.vlgmr.msra.gmra.mrb[14].mxu1 %vm455_vm0, %v4465_v31  ;;  %v1814_v40 = vsub.s32 1, %v4755_v35  ;;  %v1838_v59 = vsub.s32 7, %v4755_v35 }
 0xd3f   : > { %2118 = vmatprep.mubr.f32.mxu0 %v4190_v0  ;;  %2195 = vmatprep.mubr.f32.mxu1 %v4190_v0 }
 0xd40   : > { %3796 = vmatpush1.bf16.msra.mxu0 %v3795_v47  ;;  %3800 = vmatpush1.bf16.msra.mxu1 %v3799_v48  ;;  %v1557_v47 = vld [vmem:[%s5495_s9 + $0x40] sm:$0xff]  ;;  %v1558_v48 = vld [vmem:[%s5495_s9 + $0x48] sm:$0xff] }
 0xd41   : > { %3802 = vmatprep.subr.bf16.mxu0 %v3801_v49  ;;  %3806 = vmatprep.subr.bf16.mxu1 %v3805_v50  ;;  %v3825_v49 = vpack.c.bf16 %v1574_v42, %v1573_v41  ;;  %v3857_v50 = vpack.c.bf16 %v1606_v44, %v1605_v43  ;;  %v3827_v53 = vpack.c.bf16 %v1558_v48, %v1557_v47  ;;  %v1822_v41 = vsub.s32 3, %v4755_v35  ;;  %v1614_v47 = vld [vmem:[%s5495_s9 + $0x208] sm:$0xff] }
 0xd42   : > { %3297 = vmatmul.mubr.msk.f32.gmra.mrb[16].mxu0 %vm455_vm0, %v4473_v38  ;;  %3299 = vmatmul.mubr.msk.f32.gmra.mrb[16].mxu1 %vm455_vm0, %v4473_v38  ;;  %v1815_v44 = vrot.slane %v4762_v39, %v1814_v40  ;;  %v1830_v48 = vsub.s32 5, %v4755_v35 }
 0xd43   : > { %2266 = vmatprep.mubr.f32.mxu0 %v4190_v0  ;;  %2343 = vmatprep.mubr.f32.mxu1 %v4190_v0 }
 0xd46   : > { %3300 = vmatmul.mubr.msk.f32.vlgmr.msra.gmra.mrb[18].mxu0 %vm455_vm0, %v4465_v31  ;;  %3302 = vmatmul.mubr.msk.f32.vlgmr.msra.gmra.mrb[18].mxu1 %vm455_vm0, %v4465_v31 }
 0xd47   : > { %2272 = vmatprep.mubr.f32.mxu0 %v4190_v0  ;;  %2349 = vmatprep.mubr.f32.mxu1 %v4190_v0 }
 0xd48   : > { %3804 = vmatpush1.bf16.msra.mxu0 %v3803_v55  ;;  %3808 = vmatpush1.bf16.msra.mxu1 %v3807_v56  ;;  %v1559_v55 = vld [vmem:[%s5495_s9 + $0x50] sm:$0xff]  ;;  %v1560_v56 = vld [vmem:[%s5495_s9 + $0x58] sm:$0xff] }
 0xd49   : > { %3810 = vmatprep.subr.bf16.mxu0 %v3809_v57  ;;  %3842 = vmatprep.subr.bf16.mxu1 %v3841_v58  ;;  %v3829_v57 = vpack.c.bf16 %v1576_v7, %v1575_v9  ;;  %v3861_v58 = vpack.c.bf16 %v1608_v3, %v1607_v4  ;;  %v3831_v2 = vpack.c.bf16 %v1560_v56, %v1559_v55  ;;  %v1631_v9 = vld [vmem:[%s5495_s9 + $0x290] sm:$0xff]  ;;  %v1664_v56 = vld [vmem:[%s5495_s9 + $0x398] sm:$0xff] }
 0xd4a   : > { %3301 = vmatmul.mubr.msk.f32.gmra.mrb[20].mxu0 %vm455_vm0, %v4473_v38  ;;  %3303 = vmatmul.mubr.msk.f32.gmra.mrb[20].mxu1 %vm455_vm0, %v4473_v38  ;;  %v1663_v55 = vld [vmem:[%s5495_s9 + $0x390] sm:$0xff] }
 0xd4b   : > { %2420 = vmatprep.mubr.f32.mxu0 %v4190_v0  ;;  %2497 = vmatprep.mubr.f32.mxu1 %v4190_v0 }
 0xd4e   : > { %3304 = vmatmul.mubr.msk.f32.vlgmr.msra.gmra.mrb[22].mxu0 %vm455_vm0, %v4465_v31  ;;  %3306 = vmatmul.mubr.msk.f32.vlgmr.msra.gmra.mrb[22].mxu1 %vm455_vm0, %v4465_v31 }
 0xd4f   : > { %2426 = vmatprep.mubr.f32.mxu0 %v4190_v0  ;;  %2503 = vmatprep.mubr.f32.mxu1 %v4190_v0  ;;  %v1585_v0 = vld [vmem:[%s5495_s9 + $0x120] sm:$0xff] }
 0xd50   : > { %3812 = vmatpush3.bf16.msra.mxu0 %v3811_v5  ;;  %3844 = vmatpush3.bf16.msra.mxu1 %v3843_v6  ;;  %v3851_v33 = vpack.c.bf16 %v1586_v26, %v1585_v0  ;;  %v1561_v5 = vld [vmem:[%s5495_s9 + $0x60] sm:$0xff]  ;;  %v3833_v6 = vpack.c.bf16 %v1578_v62, %v1577_v61  ;;  %v1596_v0 = vld [vmem:[%s5495_s9 + $0x178] sm:$0xff]  ;;  %v3907_v61 = vpack.c.bf16 %v1646_v52, %v1645_v51  ;;  %v4857_v51 = vld [vmem:[%s5494_s8 + $0x8] sm:$0xff] }
 0xd51   : > { %3814 = vmatprep.subr.bf16.mxu0 %v3813_v12  ;;  %3846 = vmatprep.subr.bf16.mxu1 %v3845_v13  ;;  %v1593_v12 = vld [vmem:[%s5495_s9 + $0x160] sm:$0xff]  ;;  %v1594_v13 = vld [vmem:[%s5495_s9 + $0x168] sm:$0xff]  ;;  %v3835_v15 = vpack.c.bf16 %v1562_v11, %v1561_v5  ;;  %v4807_v62 = vrot.slane %v4762_v39, %v1830_v48  ;;  %v1616_v11 = vld [vmem:[%s5495_s9 + $0x218] sm:$0xff] }
 0xd52   : > { %3305 = vmatmul.mubr.msk.f32.gmra.mrb[24].mxu0 %vm455_vm0, %v4473_v38  ;;  %3307 = vmatmul.mubr.msk.f32.gmra.mrb[24].mxu1 %vm455_vm0, %v4473_v38  ;;  %v3867_v16 = vpack.c.bf16 %v1594_v13, %v1593_v12  ;;  %v1647_v12 = vld [vmem:[%s5495_s9 + $0x310] sm:$0xff] }
 0xd53   : > { %v1635_v52 = vld [vmem:[%s5495_s9 + $0x2b0] sm:$0xff] }
 0xd54   : > { %3816 = vmatpush3.bf16.msra.mxu0 %v3815_v21  ;;  %3848 = vmatpush3.bf16.msra.mxu1 %v3847_v22  ;;  %v1612_v21 = vld [vmem:[%s5495_s9 + $0x1f8] sm:$0xff]  ;;  %v1563_v22 = vld [vmem:[%s5495_s9 + $0x70] sm:$0xff] }
 0xd55   : > { %3818 = vmatprep.subr.bf16.mxu0 %v3817_v24  ;;  %3850 = vmatprep.subr.bf16.mxu1 %v3849_v25  ;;  %v3869_v10 = vpack.c.bf16 %v1612_v21, %v1611_v19  ;;  %v3839_v24 = vpack.c.bf16 %v1564_v23, %v1563_v22  ;;  %v1595_v25 = vld [vmem:[%s5495_s9 + $0x170] sm:$0xff]  ;;  %v1633_v21 = vld [vmem:[%s5495_s9 + $0x2a0] sm:$0xff] }
 0xd56   : > { %v3871_v26 = vpack.c.bf16 %v1596_v0, %v1595_v25  ;;  %v1665_v25 = vld [vmem:[%s5495_s9 + $0x3a0] sm:$0xff]  ;;  %v1666_v0 = vld [vmem:[%s5495_s9 + $0x3a8] sm:$0xff] }
 0xd58   : > { %3820 = vmatpush3.bf16.msra.mxu0 %v3819_v32  ;;  %3852 = vmatpush3.bf16.msra.mxu1 %v3851_v33  ;;  %v1662_v32 = vld [vmem:[%s5495_s9 + $0x388] sm:$0xff] }
 0xd59   : > { %3822 = vmatprep.subr.bf16.mxu0 %v3821_v36  ;;  %3854 = vmatprep.subr.bf16.mxu1 %v3853_v37  ;;  %v3905_v33 = vpack.c.bf16 %v1662_v32, %v1661_v29  ;;  %v1810_v36 = vsub.s32 0, %v4755_v35  ;;  %v1818_v37 = vsub.s32 2, %v4755_v35 }
 0xd5b   : > { %v1811_v42 = vrot.slane %v4762_v39, %v1810_v36  ;;  %v1819_v43 = vrot.slane %v4762_v39, %v1818_v37 }
 0xd5c   : > { %3824 = vmatpush3.bf16.msra.mxu0 %v3823_v45  ;;  %3856 = vmatpush3.bf16.msra.mxu1 %v3855_v46  ;;  %v1823_v45 = vrot.slane %v4762_v39, %v1822_v41  ;;  %v1613_v46 = vld [vmem:[%s5495_s9 + $0x200] sm:$0xff] }
 0xd5d   : > { %3826 = vmatprep.subr.bf16.mxu0 %v3825_v49  ;;  %3858 = vmatprep.subr.bf16.mxu1 %v3857_v50  ;;  %v3875_v60 = vpack.c.bf16 %v1614_v47, %v1613_v46 }
 0xd60   : > { %3828 = vmatpush3.bf16.msra.mxu0 %v3827_v53  ;;  %3860 = vmatpush3.bf16.msra.mxu1 %v3859_v54  ;;  %v1632_v54 = vld [vmem:[%s5495_s9 + $0x298] sm:$0xff] }
 0xd61   : > { %3830 = vmatprep.subr.bf16.mxu0 %v3829_v57  ;;  %3862 = vmatprep.subr.bf16.mxu1 %v3861_v58 }
 0xd64   : > { %3832 = vmatpush3.bf16.msra.mxu0 %v3831_v2  ;;  %3864 = vmatpush3.bf16.msra.mxu1 %v3863_v14 }
 0xd65   : > { %3834 = vmatprep.subr.bf16.mxu0 %v3833_v6  ;;  %3866 = vmatprep.subr.bf16.mxu1 %v3865_v8  ;;  %v3877_v6 = vpack.c.bf16 %v1632_v54, %v1631_v9  ;;  %v3909_v8 = vpack.c.bf16 %v1664_v56, %v1663_v55 }
 0xd68   : > { %3836 = vmatpush3.bf16.msra.mxu0 %v3835_v15  ;;  %3868 = vmatpush3.bf16.msra.mxu1 %v3867_v16 }
 0xd69   : > { %3838 = vmatprep.subr.bf16.mxu0 %v3837_v20  ;;  %3870 = vmatprep.subr.bf16.mxu1 %v3869_v10  ;;  %v1648_v20 = vld [vmem:[%s5495_s9 + $0x318] sm:$0xff]  ;;  %v4827_v10 = vrot.slane %v4762_v39, %v1838_v59 }
 0xd6a   : > { %v3911_v34 = vpack.c.bf16 %v1648_v20, %v1647_v12  ;;  %v1637_v12 = vld [vmem:[%s5495_s9 + $0x2c0] sm:$0xff] }
 0xd6b   : > { %v1621_v20 = vld [vmem:[%s5495_s9 + $0x240] sm:$0xff] }
 0xd6c   : > { %3840 = vmatpush3.bf16.msra.mxu0 %v3839_v24  ;;  %3872 = vmatpush3.bf16.msra.mxu1 %v3871_v26  ;;  %v1634_v24 = vld [vmem:[%s5495_s9 + $0x2a8] sm:$0xff]  ;;  %v1617_v26 = vld [vmem:[%s5495_s9 + $0x220] sm:$0xff] }
 0xd6d   : > { %3874 = vmatprep.subr.bf16.mxu0 %v3873_v30  ;;  %3906 = vmatprep.subr.bf16.mxu1 %v3905_v33  ;;  %v3879_v33 = vpack.c.bf16 %v1616_v11, %v1615_v63  ;;  %v1620_v63 = vld [vmem:[%s5495_s9 + $0x238] sm:$0xff] }
 0xd6e   : > { %v1652_v11 = vld [vmem:[%s5495_s9 + $0x338] sm:$0xff] }
 0xe09   : > { %v1960_v49 = vpop.f32.mrb[10].mxu0  ;;  %v2037_v50 = vpop.f32.mrb[10].mxu1 }
 0xe0a   : > { %v1961_v7 = vadd.f32 %v1960_v49, %v1811_v42  ;;  %v2038_v4 = vadd.f32 %v2037_v50, %v1819_v43  ;;  %v1962_v3 = vpop.f32.mrb[11].mxu0  ;;  %v2039_v53 = vpop.f32.mrb[11].mxu1  ;;  %v3881_v49 = vpack.c.bf16 %v1634_v24, %v1633_v21  ;;  %v3913_v50 = vpack.c.bf16 %v1666_v0, %v1665_v25  ;;  %v1622_v21 = vld [vmem:[%s5495_s9 + $0x248] sm:$0xff] }
 0xe0b   : > { %v1963_v57 = vadd.f32 %v1962_v3, %v1815_v44  ;;  %v2040_v58 = vadd.f32 %v2039_v53, %v1823_v45  ;;  %v1667_v3 = vld [vmem:[%s5495_s9 + $0x3b0] sm:$0xff]  ;;  %v1668_v53 = vld [vmem:[%s5495_s9 + $0x3b8] sm:$0xff] }
 0xe0c   : > { %v2510_v13 = vmax.f32 %v1961_v7, 0.0  ;;  %v2512_v15 = vmax.f32 %v2038_v4, 0.0  ;;  %v1636_v4 = vld [vmem:[%s5495_s9 + $0x2b8] sm:$0xff] }
 0xe0d   : > { %v2511_v1 = vmax.f32 %v1963_v57, 0.0  ;;  %v2513_v2 = vmax.f32 %v2040_v58, 0.0  ;;  %v1966_v14 = vpop.f32.mrb[12].mxu0  ;;  %v2043_v5 = vpop.f32.mrb[12].mxu1  ;;  %v3883_v58 = vpack.c.bf16 %v1618_v27, %v1617_v26  ;;  %v1653_v26 = vld [vmem:[%s5495_s9 + $0x340] sm:$0xff]  ;;  %v1654_v27 = vld [vmem:[%s5495_s9 + $0x348] sm:$0xff] }
 0xe0e   : > { %v1967_v16 = vadd.f32 %v1966_v14, %v1811_v42  ;;  %v2044_v17 = vadd.f32 %v2043_v5, %v1819_v43  ;;  %v1968_v18 = vpop.f32.mrb[13].mxu0  ;;  %v2045_v19 = vpop.f32.mrb[13].mxu1  ;;  %v1649_v42 = vld [vmem:[%s5495_s9 + $0x320] sm:$0xff]  ;;  %v1650_v43 = vld [vmem:[%s5495_s9 + $0x328] sm:$0xff]  ;;  %v1851_v14 = vrot.slane %v4857_v51, %v1818_v37  ;;  %v3885_v5 = vpack.c.bf16 %v1636_v4, %v1635_v52  ;;  %v1623_v52 = vld [vmem:[%s5495_s9 + $0x250] sm:$0xff] }
 0xe0f   : > { %v1969_v22 = vadd.f32 %v1968_v18, %v1815_v44  ;;  %v2046_v23 = vadd.f32 %v2045_v19, %v1823_v45  ;;  %2612 = vmatprep.mubr.f32.mxu0 %v2511_v1  ;;  %2687 = vmatprep.mubr.f32.mxu1 %v2513_v2  ;;  %v1638_v37 = vld [vmem:[%s5495_s9 + $0x2c8] sm:$0xff] }
 0xe10   : > { %2613 = vmatmul.mubr.f32.vlgmr.msra.gmra.mrb[26].mxu0 %v2510_v13  ;;  %2688 = vmatmul.mubr.f32.vlgmr.msra.gmra.mrb[26].mxu1 %v2512_v15  ;;  %v2526_v44 = vmax.f32 %v1967_v16, 0.0  ;;  %v2528_v45 = vmax.f32 %v2044_v17, 0.0  ;;  %v1669_v13 = vld [vmem:[%s5495_s9 + $0x3c0] sm:$0xff]  ;;  %v1670_v15 = vld [vmem:[%s5495_s9 + $0x3c8] sm:$0xff]  ;;  %v3889_v25 = vpack.c.bf16 %v1638_v37, %v1637_v12 }
 0xe11   : > { %v2527_v28 = vmax.f32 %v1969_v22, 0.0  ;;  %v2529_v29 = vmax.f32 %v2046_v23, 0.0  ;;  %3876 = vmatpush3.bf16.msra.mxu0 %v3875_v60  ;;  %3908 = vmatpush3.bf16.msra.mxu1 %v3907_v61  ;;  %v4844_v30 = vpop.f32.mrb[14].mxu0  ;;  %v4846_v32 = vpop.f32.mrb[14].mxu1  ;;  %v3915_v60 = vpack.c.bf16 %v1650_v43, %v1649_v42  ;;  %v1619_v61 = vld [vmem:[%s5495_s9 + $0x230] sm:$0xff]  ;;  %v3921_v0 = vpack.c.bf16 %v1670_v15, %v1669_v13  ;;  %v1672_v43 = vld [vmem:[%s5495_s9 + $0x3d8] sm:$0xff] }
 0xe12   : > { %v2116_v46 = vpop.f32.mrb[15].mxu0  ;;  %v2193_v47 = vpop.f32.mrb[15].mxu1  ;;  %3878 = vmatprep.subr.bf16.mxu0 %v3877_v6  ;;  %3910 = vmatprep.subr.bf16.mxu1 %v3909_v8  ;;  %v3917_v6 = vpack.c.bf16 %v1668_v53, %v1667_v3  ;;  %v1651_v8 = vld [vmem:[%s5495_s9 + $0x330] sm:$0xff]  ;;  %v3887_v18 = vpack.c.bf16 %v1620_v63, %v1619_v61  ;;  %v1642_v61 = vld [vmem:[%s5495_s9 + $0x2e8] sm:$0xff]  ;;  %v1863_v63 = vrot.slane %v4857_v51, %v1830_v48  ;;  %v1625_v48 = vld [vmem:[%s5495_s9 + $0x260] sm:$0xff] }
 0xe13   : > { %v2117_v9 = vadd.f32 %v2116_v46, %v4807_v62  ;;  %v2194_v7 = vadd.f32 %v2193_v47, %v4827_v10  ;;  %2617 = vmatprep.mubr.f32.mxu0 %v2527_v28  ;;  %2692 = vmatprep.mubr.f32.mxu1 %v2529_v29  ;;  %v3919_v19 = vpack.c.bf16 %v1652_v11, %v1651_v8  ;;  %v1639_v28 = vld [vmem:[%s5495_s9 + $0x2d0] sm:$0xff]  ;;  %v1826_v29 = vsub.s32 4, %v4755_v35  ;;  %v1657_v15 = vld [vmem:[%s5495_s9 + $0x360] sm:$0xff] }
 0xe14   : > { %2618 = vmatmul.mubr.f32.gmra.mrb[28].mxu0 %v2526_v44  ;;  %2693 = vmatmul.mubr.f32.gmra.mrb[28].mxu1 %v2528_v45  ;;  %v1671_v42 = vld [vmem:[%s5495_s9 + $0x3d0] sm:$0xff]  ;;  %v3891_v44 = vpack.c.bf16 %v1622_v21, %v1621_v20  ;;  %v3923_v47 = vpack.c.bf16 %v1654_v27, %v1653_v26  ;;  %v1644_v26 = vld [vmem:[%s5495_s9 + $0x2f8] sm:$0xff] }
 0xe15   : > { %v2515_v54 = vmax.f32 %v2117_v9, 0.0  ;;  %v2517_v55 = vmax.f32 %v2194_v7, 0.0  ;;  %3880 = vmatpush3.bf16.msra.mxu0 %v3879_v33  ;;  %3912 = vmatpush3.bf16.msra.mxu1 %v3911_v34  ;;  %v4873_v56 = vpop.f32.mrb[16].mxu0  ;;  %v4875_v57 = vpop.f32.mrb[16].mxu1  ;;  %v1834_v33 = vsub.s32 6, %v4755_v35  ;;  %v1640_v34 = vld [vmem:[%s5495_s9 + $0x2d8] sm:$0xff] }
 0xe16   : > { %v4883_v1 = vpop.f32.mrb[17].mxu0  ;;  %v4885_v2 = vpop.f32.mrb[17].mxu1  ;;  %3882 = vmatprep.subr.bf16.mxu0 %v3881_v49  ;;  %3914 = vmatprep.subr.bf16.mxu1 %v3913_v50  ;;  %v1859_v49 = vrot.slane %v4857_v51, %v1826_v29  ;;  %v1624_v9 = vld [vmem:[%s5495_s9 + $0x258] sm:$0xff]  ;;  %v1655_v7 = vld [vmem:[%s5495_s9 + $0x350] sm:$0xff]  ;;  %v1758_v35 = vld [vmem:[%s5495_s9 + $0x688] sm:$0xff] }
 0xe17   : > { %2762 = vmatprep.mubr.f32.mxu0 %v2515_v54  ;;  %2837 = vmatprep.mubr.f32.mxu1 %v2517_v55  ;;  %v1867_v50 = vrot.slane %v4857_v51, %v1834_v33  ;;  %v3893_v54 = vpack.c.bf16 %v1640_v34, %v1639_v28  ;;  %v3925_v55 = vpack.c.bf16 %v1672_v43, %v1671_v42  ;;  %v1675_v34 = vld [vmem:[%s5495_s9 + $0x3f0] sm:$0xff]  ;;  %v1676_v42 = vld [vmem:[%s5495_s9 + $0x3f8] sm:$0xff] }
 0xe18   : > { %v3895_v12 = vpack.c.bf16 %v1624_v9, %v1623_v52  ;;  %v1827_v43 = vrot.slane %v4762_v39, %v1826_v29  ;;  %v1659_v29 = vld [vmem:[%s5495_s9 + $0x370] sm:$0xff] }
 0xe19   : > { %3884 = vmatpush3.bf16.msra.mxu0 %v3883_v58  ;;  %3916 = vmatpush3.bf16.msra.mxu1 %v3915_v60  ;;  %v4908_v16 = vpop.f32.mrb[18].mxu0  ;;  %v2345_v17 = vpop.f32.mrb[18].mxu1  ;;  %v1656_v58 = vld [vmem:[%s5495_s9 + $0x358] sm:$0xff]  ;;  %v1641_v60 = vld [vmem:[%s5495_s9 + $0x2e0] sm:$0xff] }
 0xe1a   : > { %v4916_v22 = vadd.f32 %v2345_v17, %v1851_v14  ;;  %v4918_v23 = vpop.f32.mrb[19].mxu0  ;;  %v4920_v24 = vpop.f32.mrb[19].mxu1  ;;  %3886 = vmatprep.subr.bf16.mxu0 %v3885_v5  ;;  %3918 = vmatprep.subr.bf16.mxu1 %v3917_v6  ;;  %v1673_v5 = vld [vmem:[%s5495_s9 + $0x3e0] sm:$0xff]  ;;  %v1674_v6 = vld [vmem:[%s5495_s9 + $0x3e8] sm:$0xff]  ;;  %v3927_v37 = vpack.c.bf16 %v1656_v58, %v1655_v7  ;;  %v3897_v13 = vpack.c.bf16 %v1642_v61, %v1641_v60 }
 0xe1b   : > { %v3929_v21 = vpack.c.bf16 %v1674_v6, %v1673_v5  ;;  %v3933_v61 = vpack.c.bf16 %v1676_v42, %v1675_v34  ;;  %v1660_v5 = vld [vmem:[%s5495_s9 + $0x378] sm:$0xff]  ;;  %v1693_v6 = vld [vmem:[%s5495_s9 + $0x480] sm:$0xff]  ;;  %v5081_v42 = vrot.slane %v4857_v51, %v1814_v40  ;;  %v1679_v40 = vld [vmem:[%s5495_s9 + $0x410] sm:$0xff] }
 0xe1c   : > { %v1728_v34 = vld [vmem:[%s5495_s9 + $0x598] sm:$0xff] }
 0xe1d   : > { %3888 = vmatpush3.bf16.msra.mxu0 %v3887_v18  ;;  %3920 = vmatpush3.bf16.msra.mxu1 %v3919_v19  ;;  %v4942_v45 = vpop.f32.mrb[20].mxu0  ;;  %v2351_v46 = vpop.f32.mrb[20].mxu1 }
 0xe1e   : > { %v4955_v4 = vadd.f32 %v2351_v46, %v1851_v14  ;;  %v4957_v3 = vpop.f32.mrb[21].mxu0  ;;  %v4959_v53 = vpop.f32.mrb[21].mxu1  ;;  %3890 = vmatprep.subr.bf16.mxu0 %v3889_v25  ;;  %3922 = vmatprep.subr.bf16.mxu1 %v3921_v0  ;;  %v1871_v14 = vrot.slane %v4857_v51, %v1838_v59  ;;  %v1626_v59 = vld [vmem:[%s5495_s9 + $0x268] sm:$0xff]  ;;  %v1643_v0 = vld [vmem:[%s5495_s9 + $0x2f0] sm:$0xff] }
 0xe1f   : > { %v1658_v25 = vld [vmem:[%s5495_s9 + $0x368] sm:$0xff]  ;;  %v3899_v52 = vpack.c.bf16 %v1626_v59, %v1625_v48  ;;  %v3901_v7 = vpack.c.bf16 %v1644_v26, %v1643_v0  ;;  %v1709_v59 = vld [vmem:[%s5495_s9 + $0x500] sm:$0xff]  ;;  %v1696_v0 = vld [vmem:[%s5495_s9 + $0x498] sm:$0xff] }
 0xe20   : > { %v3931_v9 = vpack.c.bf16 %v1658_v25, %v1657_v15  ;;  %v1710_v15 = vld [vmem:[%s5495_s9 + $0x508] sm:$0xff]  ;;  %v1727_v26 = vld [vmem:[%s5495_s9 + $0x590] sm:$0xff] }
 0xe21   : > { %3892 = vmatpush3.bf16.msra.mxu0 %v3891_v44  ;;  %3924 = vmatpush3.bf16.msra.mxu1 %v3923_v47  ;;  %v2422_v8 = vpop.f32.mrb[22].mxu0  ;;  %v2499_v11 = vpop.f32.mrb[22].mxu1  ;;  %v1835_v44 = vrot.slane %v4762_v39, %v1834_v33 }
 0xe22   : > { %v4991_v17 = vadd.f32 %v2422_v8, %v1859_v49  ;;  %v4993_v18 = vadd.f32 %v2499_v11, %v1867_v50  ;;  %v2424_v19 = vpop.f32.mrb[23].mxu0  ;;  %v2501_v20 = vpop.f32.mrb[23].mxu1  ;;  %3894 = vmatprep.subr.bf16.mxu0 %v3893_v54  ;;  %3926 = vmatprep.subr.bf16.mxu1 %v3925_v55  ;;  %v1627_v54 = vld [vmem:[%s5495_s9 + $0x270] sm:$0xff]  ;;  %v1628_v55 = vld [vmem:[%s5495_s9 + $0x278] sm:$0xff]  ;;  %v1725_v11 = vld [vmem:[%s5495_s9 + $0x580] sm:$0xff] }
 0xe23   : > { %v5004_v27 = vadd.f32 %v2424_v19, %v1863_v63  ;;  %v5006_v28 = vadd.f32 %v2501_v20, %v1871_v14  ;;  %v1695_v19 = vld [vmem:[%s5495_s9 + $0x490] sm:$0xff]  ;;  %v2115_v20 = vadd.f32 %v4844_v30, %v1827_v43  ;;  %v2123_v30 = vadd.f32 %v4883_v1, %v4807_v62 }
 0xe25   : > { %3896 = vmatpush3.bf16.msra.mxu0 %v3895_v12  ;;  %3928 = vmatpush3.bf16.msra.mxu1 %v3927_v37  ;;  %v2428_v46 = vpop.f32.mrb[24].mxu0  ;;  %v2505_v47 = vpop.f32.mrb[24].mxu1  ;;  %v1726_v12 = vld [vmem:[%s5495_s9 + $0x588] sm:$0xff]  ;;  %v1677_v37 = vld [vmem:[%s5495_s9 + $0x400] sm:$0xff]  ;;  %v2514_v62 = vmax.f32 %v2115_v20, 0.0  ;;  %v1732_v20 = vld [vmem:[%s5495_s9 + $0x5b8] sm:$0xff] }
 0xe26   : > { %v5025_v39 = vadd.f32 %v2428_v46, %v1859_v49  ;;  %v5027_v33 = vadd.f32 %v2505_v47, %v1867_v50  ;;  %v2430_v58 = vpop.f32.mrb[25].mxu0  ;;  %v2507_v60 = vpop.f32.mrb[25].mxu1  ;;  %3898 = vmatprep.subr.bf16.mxu0 %v3897_v13  ;;  %3930 = vmatprep.subr.bf16.mxu1 %v3929_v21  ;;  %v1694_v49 = vld [vmem:[%s5495_s9 + $0x488] sm:$0xff]  ;;  %v2192_v21 = vadd.f32 %v4846_v32, %v1835_v44 }
 0xe27   : > { %v5038_v8 = vadd.f32 %v2430_v58, %v1863_v63  ;;  %v5040_v50 = vadd.f32 %v2507_v60, %v1871_v14  ;;  %v1678_v13 = vld [vmem:[%s5495_s9 + $0x408] sm:$0xff]  ;;  %v3903_v63 = vpack.c.bf16 %v1628_v55, %v1627_v54  ;;  %v3935_v14 = vpack.c.bf16 %v1660_v5, %v1659_v29 }
 0xe28   : > { %v3937_v48 = vpack.c.bf16 %v1694_v49, %v1693_v6  ;;  %v3969_v25 = vpack.c.bf16 %v1726_v12, %v1725_v11  ;;  %v2200_v32 = vadd.f32 %v4885_v2, %v4827_v10  ;;  %v5086_v46 = vrot.slane %v4857_v51, %v1822_v41  ;;  %v1680_v41 = vld [vmem:[%s5495_s9 + $0x418] sm:$0xff]  ;;  %v1730_v58 = vld [vmem:[%s5495_s9 + $0x5a8] sm:$0xff]  ;;  %v1681_v49 = vld [vmem:[%s5495_s9 + $0x420] sm:$0xff] }
 0xe29   : > { %3900 = vmatpush3.bf16.msra.mxu0 %v3899_v52  ;;  %3932 = vmatpush3.bf16.msra.mxu1 %v3931_v9  ;;  %v3939_v47 = vpack.c.bf16 %v1678_v13, %v1677_v37  ;;  %v3971_v52 = vpack.c.bf16 %v1710_v15, %v1709_v59  ;;  %v3941_v9 = vpack.c.bf16 %v1696_v0, %v1695_v19  ;;  %v2516_v1 = vmax.f32 %v2192_v21, 0.0  ;;  %v1682_v11 = vld [vmem:[%s5495_s9 + $0x428] sm:$0xff]  ;;  %v1699_v59 = vld [vmem:[%s5495_s9 + $0x4b0] sm:$0xff]  ;;  %v1700_v15 = vld [vmem:[%s5495_s9 + $0x4b8] sm:$0xff] }
 0xe2a   : > { %3902 = vmatprep.subr.bf16.mxu0 %v3901_v7  ;;  %3934 = vmatprep.subr.bf16.mxu1 %v3933_v61  ;;  %v3973_v7 = vpack.c.bf16 %v1728_v34, %v1727_v26  ;;  %v2121_v10 = vadd.f32 %v4873_v56, %v1827_v43  ;;  %v2198_v2 = vadd.f32 %v4875_v57, %v1835_v44  ;;  %v2531_v54 = vmax.f32 %v2123_v30, 0.0  ;;  %v1711_v57 = vld [vmem:[%s5495_s9 + $0x510] sm:$0xff]  ;;  %v1712_v43 = vld [vmem:[%s5495_s9 + $0x518] sm:$0xff]  ;;  %v1697_v44 = vld [vmem:[%s5495_s9 + $0x4a0] sm:$0xff] }
 0xe2b   : > { %v2533_v55 = vmax.f32 %v2200_v32, 0.0  ;;  %v2271_v29 = vadd.f32 %v4918_v23, %v5081_v42  ;;  %v2348_v56 = vadd.f32 %v4920_v24, %v5086_v46  ;;  %v1698_v23 = vld [vmem:[%s5495_s9 + $0x4a8] sm:$0xff]  ;;  %v1729_v24 = vld [vmem:[%s5495_s9 + $0x5a0] sm:$0xff]  ;;  %v3943_v5 = vpack.c.bf16 %v1680_v41, %v1679_v40  ;;  %v1731_v19 = vld [vmem:[%s5495_s9 + $0x5b0] sm:$0xff] }
 0xe2c   : > { %v2530_v60 = vmax.f32 %v2121_v10, 0.0  ;;  %v2532_v61 = vmax.f32 %v2198_v2, 0.0  ;;  %v3975_v6 = vpack.c.bf16 %v1712_v43, %v1711_v57  ;;  %v3945_v13 = vpack.c.bf16 %v1698_v23, %v1697_v44  ;;  %v1683_v0 = vld [vmem:[%s5495_s9 + $0x430] sm:$0xff]  ;;  %v1684_v26 = vld [vmem:[%s5495_s9 + $0x438] sm:$0xff]  ;;  %v1685_v2 = vld [vmem:[%s5495_s9 + $0x440] sm:$0xff] }
 0xe2d   : > { %3904 = vmatpush3.bf16.msra.mxu0 %v3903_v63  ;;  %3936 = vmatpush3.bf16.msra.mxu1 %v3935_v14  ;;  %v2519_v12 = vmax.f32 %v2271_v29, 0.0  ;;  %v2521_v37 = vmax.f32 %v2348_v56, 0.0  ;;  %v3977_v63 = vpack.c.bf16 %v1730_v58, %v1729_v24  ;;  %v1713_v14 = vld [vmem:[%s5495_s9 + $0x520] sm:$0xff]  ;;  %v3947_v21 = vpack.c.bf16 %v1682_v11, %v1681_v49  ;;  %v1715_v32 = vld [vmem:[%s5495_s9 + $0x530] sm:$0xff]  ;;  %v1686_v40 = vld [vmem:[%s5495_s9 + $0x448] sm:$0xff] }
 0xe2e   : > { %3938 = vmatprep.subr.bf16.mxu0 %v3937_v48  ;;  %3970 = vmatprep.subr.bf16.mxu1 %v3969_v25  ;;  %v1714_v48 = vld [vmem:[%s5495_s9 + $0x528] sm:$0xff]  ;;  %v3949_v34 = vpack.c.bf16 %v1700_v15, %v1699_v59  ;;  %v3981_v30 = vpack.c.bf16 %v1732_v20, %v1731_v19  ;;  %v1703_v56 = vld [vmem:[%s5495_s9 + $0x4d0] sm:$0xff]  ;;  %v1704_v57 = vld [vmem:[%s5495_s9 + $0x4d8] sm:$0xff]  ;;  %v3955_v23 = vpack.c.bf16 %v1686_v40, %v1685_v2 }
 0xe2f   : > { %v3979_v25 = vpack.c.bf16 %v1714_v48, %v1713_v14  ;;  %v1718_v29 = vld [vmem:[%s5495_s9 + $0x548] sm:$0xff]  ;;  %v1735_v43 = vld [vmem:[%s5495_s9 + $0x5d0] sm:$0xff]  ;;  %v1736_v44 = vld [vmem:[%s5495_s9 + $0x5d8] sm:$0xff] }
 0xe30   : > { %2763 = vmatmul.mubr.f32.vlgmr.msra.gmra.mrb[30].mxu0 %v2514_v62  ;;  %2838 = vmatmul.mubr.f32.vlgmr.msra.gmra.mrb[30].mxu1 %v2516_v1  ;;  %v1734_v62 = vld [vmem:[%s5495_s9 + $0x5c8] sm:$0xff]  ;;  %v3951_v1 = vpack.c.bf16 %v1684_v26, %v1683_v0  ;;  %v1687_v58 = vld [vmem:[%s5495_s9 + $0x450] sm:$0xff]  ;;  %v1720_v49 = vld [vmem:[%s5495_s9 + $0x558] sm:$0xff] }
 0xe31   : > { %2767 = vmatprep.mubr.f32.mxu0 %v2531_v54  ;;  %2842 = vmatprep.mubr.f32.mxu1 %v2533_v55  ;;  %v1717_v55 = vld [vmem:[%s5495_s9 + $0x540] sm:$0xff]  ;;  %v1690_v59 = vld [vmem:[%s5495_s9 + $0x468] sm:$0xff]  ;;  %v1708_v0 = vld [vmem:[%s5495_s9 + $0x4f8] sm:$0xff] }
 0xe32   : > { %3940 = vmatpush3.bf16.msra.mxu0 %v3939_v47  ;;  %3972 = vmatpush3.bf16.msra.mxu1 %v3971_v52  ;;  %v1716_v47 = vld [vmem:[%s5495_s9 + $0x538] sm:$0xff]  ;;  %v1701_v52 = vld [vmem:[%s5495_s9 + $0x4c0] sm:$0xff]  ;;  %v3987_v24 = vpack.c.bf16 %v1718_v29, %v1717_v55  ;;  %v1739_v26 = vld [vmem:[%s5495_s9 + $0x5f0] sm:$0xff] }
 0xe33   : > { %3942 = vmatprep.subr.bf16.mxu0 %v3941_v9  ;;  %3974 = vmatprep.subr.bf16.mxu1 %v3973_v7  ;;  %v1702_v9 = vld [vmem:[%s5495_s9 + $0x4c8] sm:$0xff]  ;;  %v1733_v7 = vld [vmem:[%s5495_s9 + $0x5c0] sm:$0xff]  ;;  %v3983_v10 = vpack.c.bf16 %v1716_v47, %v1715_v32  ;;  %v1691_v47 = vld [vmem:[%s5495_s9 + $0x470] sm:$0xff] }
 0xe34   : > { %2768 = vmatmul.mubr.f32.gmra.mrb[32].mxu0 %v2530_v60  ;;  %2843 = vmatmul.mubr.f32.gmra.mrb[32].mxu1 %v2532_v61  ;;  %v3953_v41 = vpack.c.bf16 %v1702_v9, %v1701_v52  ;;  %v3985_v54 = vpack.c.bf16 %v1734_v62, %v1733_v7  ;;  %v1688_v60 = vld [vmem:[%s5495_s9 + $0x458] sm:$0xff]  ;;  %v3957_v61 = vpack.c.bf16 %v1704_v57, %v1703_v56  ;;  %v1705_v11 = vld [vmem:[%s5495_s9 + $0x4e0] sm:$0xff]  ;;  %v1742_v57 = vld [vmem:[%s5495_s9 + $0x608] sm:$0xff] }
 0xe35   : > { %2912 = vmatprep.mubr.f32.mxu0 %v2519_v12  ;;  %2987 = vmatprep.mubr.f32.mxu1 %v2521_v37  ;;  %v1706_v12 = vld [vmem:[%s5495_s9 + $0x4e8] sm:$0xff]  ;;  %v1737_v37 = vld [vmem:[%s5495_s9 + $0x5e0] sm:$0xff]  ;;  %v1692_v52 = vld [vmem:[%s5495_s9 + $0x478] sm:$0xff]  ;;  %v1843_v9 = vrot.slane %v4857_v51, %v1810_v36 }
 0xe36   : > { %3944 = vmatpush3.bf16.msra.mxu0 %v3943_v5  ;;  %3976 = vmatpush3.bf16.msra.mxu1 %v3975_v6  ;;  %v3989_v5 = vpack.c.bf16 %v1736_v44, %v1735_v43  ;;  %v1719_v6 = vld [vmem:[%s5495_s9 + $0x550] sm:$0xff]  ;;  %v1689_v48 = vld [vmem:[%s5495_s9 + $0x460] sm:$0xff]  ;;  %v3961_v15 = vpack.c.bf16 %v1706_v12, %v1705_v11  ;;  %v1790_v51 = vld [vmem:[%s5495_s9 + $0x788] sm:$0xff]  ;;  %v3967_v40 = vpack.c.bf16 %v1692_v52, %v1691_v47 }
 0xe37   : > { %3946 = vmatprep.subr.bf16.mxu0 %v3945_v13  ;;  %3978 = vmatprep.subr.bf16.mxu1 %v3977_v63  ;;  %v1738_v13 = vld [vmem:[%s5495_s9 + $0x5e8] sm:$0xff]  ;;  %v3959_v63 = vpack.c.bf16 %v1688_v60, %v1687_v58  ;;  %v3991_v14 = vpack.c.bf16 %v1720_v49, %v1719_v6  ;;  %v1721_v20 = vld [vmem:[%s5495_s9 + $0x560] sm:$0xff]  ;;  %v2277_v43 = vadd.f32 %v4957_v3, %v5081_v42  ;;  %v1760_v58 = vld [vmem:[%s5495_s9 + $0x698] sm:$0xff]  ;;  %v2520_v60 = vmax.f32 %v4916_v22, 0.0 }
 0xe38   : > { %v3993_v19 = vpack.c.bf16 %v1738_v13, %v1737_v37  ;;  %v1757_v2 = vld [vmem:[%s5495_s9 + $0x680] sm:$0xff]  ;;  %v2354_v44 = vadd.f32 %v4959_v53, %v5086_v46  ;;  %v1791_v3 = vld [vmem:[%s5495_s9 + $0x790] sm:$0xff]  ;;  %v1792_v53 = vld [vmem:[%s5495_s9 + $0x798] sm:$0xff] }
 0xe39   : > { %v1789_v36 = vld [vmem:[%s5495_s9 + $0x780] sm:$0xff]  ;;  %v4001_v55 = vpack.c.bf16 %v1758_v35, %v1757_v2  ;;  %v1743_v6 = vld [vmem:[%s5495_s9 + $0x610] sm:$0xff]  ;;  %v1744_v49 = vld [vmem:[%s5495_s9 + $0x618] sm:$0xff]  ;;  %v2535_v11 = vmax.f32 %v2277_v43, 0.0  ;;  %v4037_v13 = vpack.c.bf16 %v1792_v53, %v1791_v3 }
 0xe3a   : > { %3948 = vmatpush3.bf16.msra.mxu0 %v3947_v21  ;;  %3980 = vmatpush3.bf16.msra.mxu1 %v3979_v25  ;;  %v1722_v21 = vld [vmem:[%s5495_s9 + $0x568] sm:$0xff]  ;;  %v1707_v25 = vld [vmem:[%s5495_s9 + $0x4f0] sm:$0xff]  ;;  %v4033_v29 = vpack.c.bf16 %v1790_v51, %v1789_v36  ;;  %v1741_v56 = vld [vmem:[%s5495_s9 + $0x600] sm:$0xff]  ;;  %v2537_v12 = vmax.f32 %v2354_v44, 0.0 }
 0xe3b   : > { %3950 = vmatprep.subr.bf16.mxu0 %v3949_v34  ;;  %3982 = vmatprep.subr.bf16.mxu1 %v3981_v30  ;;  %v1740_v34 = vld [vmem:[%s5495_s9 + $0x5f8] sm:$0xff]  ;;  %v3963_v30 = vpack.c.bf16 %v1690_v59, %v1689_v48  ;;  %v3995_v32 = vpack.c.bf16 %v1722_v21, %v1721_v20  ;;  %v3965_v7 = vpack.c.bf16 %v1708_v0, %v1707_v25  ;;  %v1775_v22 = vld [vmem:[%s5495_s9 + $0x710] sm:$0xff]  ;;  %v1793_v48 = vld [vmem:[%s5495_s9 + $0x7a0] sm:$0xff] }
 0xe3c   : > { %v3997_v62 = vpack.c.bf16 %v1740_v34, %v1739_v26  ;;  %v4003_v42 = vpack.c.bf16 %v1742_v57, %v1741_v56  ;;  %v1794_v59 = vld [vmem:[%s5495_s9 + $0x7a8] sm:$0xff]  ;;  %v4007_v20 = vpack.c.bf16 %v1744_v49, %v1743_v6  ;;  %v1745_v25 = vld [vmem:[%s5495_s9 + $0x620] sm:$0xff]  ;;  %v2523_v26 = vmax.f32 %v5004_v27, 0.0  ;;  %v1763_v52 = vld [vmem:[%s5495_s9 + $0x6b0] sm:$0xff] }
 0xe3d   : > { %v1746_v0 = vld [vmem:[%s5495_s9 + $0x628] sm:$0xff]  ;;  %v2525_v34 = vmax.f32 %v5006_v28, 0.0  ;;  %v1764_v27 = vld [vmem:[%s5495_s9 + $0x6b8] sm:$0xff]  ;;  %v1795_v28 = vld [vmem:[%s5495_s9 + $0x7b0] sm:$0xff] }
 0xe3e   : > { %3952 = vmatpush3.bf16.msra.mxu0 %v3951_v1  ;;  %3984 = vmatpush3.bf16.msra.mxu1 %v3983_v10  ;;  %v1723_v1 = vld [vmem:[%s5495_s9 + $0x570] sm:$0xff]  ;;  %v1724_v10 = vld [vmem:[%s5495_s9 + $0x578] sm:$0xff]  ;;  %v1778_v47 = vld [vmem:[%s5495_s9 + $0x728] sm:$0xff]  ;;  %v4013_v2 = vpack.c.bf16 %v1764_v27, %v1763_v52 }
 0xe3f   : > { %3954 = vmatprep.subr.bf16.mxu0 %v3953_v41  ;;  %3986 = vmatprep.subr.bf16.mxu1 %v3985_v54  ;;  %v3999_v41 = vpack.c.bf16 %v1724_v10, %v1723_v1  ;;  %v2269_v54 = vadd.f32 %v4908_v16, %v1843_v9  ;;  %v1773_v16 = vld [vmem:[%s5495_s9 + $0x700] sm:$0xff]  ;;  %v1747_v1 = vld [vmem:[%s5495_s9 + $0x630] sm:$0xff]  ;;  %v1748_v10 = vld [vmem:[%s5495_s9 + $0x638] sm:$0xff] }
 0xe40   : > { %v1779_v36 = vld [vmem:[%s5495_s9 + $0x730] sm:$0xff]  ;;  %v1780_v51 = vld [vmem:[%s5495_s9 + $0x738] sm:$0xff]  ;;  %v1749_v57 = vld [vmem:[%s5495_s9 + $0x640] sm:$0xff] }
 0xe41   : > { %v2518_v46 = vmax.f32 %v2269_v54, 0.0  ;;  %v1797_v54 = vld [vmem:[%s5495_s9 + $0x7c0] sm:$0xff]  ;;  %v4047_v56 = vpack.c.bf16 %v1780_v51, %v1779_v36  ;;  %v1750_v43 = vld [vmem:[%s5495_s9 + $0x648] sm:$0xff]  ;;  %v1768_v3 = vld [vmem:[%s5495_s9 + $0x6d8] sm:$0xff]  ;;  %v2538_v36 = vmax.f32 %v5025_v39, 0.0  ;;  %v2540_v51 = vmax.f32 %v5027_v33, 0.0 }
 0xe42   : > { %3956 = vmatpush3.bf16.msra.mxu0 %v3955_v23  ;;  %3988 = vmatpush3.bf16.msra.mxu1 %v3987_v24  ;;  %v1774_v23 = vld [vmem:[%s5495_s9 + $0x708] sm:$0xff]  ;;  %v1759_v24 = vld [vmem:[%s5495_s9 + $0x690] sm:$0xff]  ;;  %v1756_v27 = vld [vmem:[%s5495_s9 + $0x678] sm:$0xff] }
 0xe43   : > { %3958 = vmatprep.subr.bf16.mxu0 %v3957_v61  ;;  %3990 = vmatprep.subr.bf16.mxu1 %v3989_v5  ;;  %v2275_v61 = vadd.f32 %v4942_v45, %v1843_v9  ;;  %v4035_v5 = vpack.c.bf16 %v1774_v23, %v1773_v16  ;;  %v4005_v37 = vpack.c.bf16 %v1760_v58, %v1759_v24  ;;  %v1776_v45 = vld [vmem:[%s5495_s9 + $0x718] sm:$0xff]  ;;  %v1781_v23 = vld [vmem:[%s5495_s9 + $0x740] sm:$0xff]  ;;  %v1782_v24 = vld [vmem:[%s5495_s9 + $0x748] sm:$0xff] }
 0xe44   : > { %v4039_v21 = vpack.c.bf16 %v1776_v45, %v1775_v22  ;;  %v1796_v9 = vld [vmem:[%s5495_s9 + $0x7b8] sm:$0xff]  ;;  %v1767_v58 = vld [vmem:[%s5495_s9 + $0x6d0] sm:$0xff]  ;;  %v1801_v22 = vld [vmem:[%s5495_s9 + $0x7e0] sm:$0xff] }
 0xe45   : > { %v4045_v35 = vpack.c.bf16 %v1796_v9, %v1795_v28  ;;  %v1799_v53 = vld [vmem:[%s5495_s9 + $0x7d0] sm:$0xff]  ;;  %v4021_v6 = vpack.c.bf16 %v1768_v3, %v1767_v58  ;;  %v1802_v45 = vld [vmem:[%s5495_s9 + $0x7e8] sm:$0xff]  ;;  %v1788_v9 = vld [vmem:[%s5495_s9 + $0x778] sm:$0xff] }
 0xe46   : > { %3960 = vmatpush3.bf16.msra.mxu0 %v3959_v63  ;;  %3992 = vmatpush3.bf16.msra.mxu1 %v3991_v14  ;;  %v1761_v63 = vld [vmem:[%s5495_s9 + $0x6a0] sm:$0xff]  ;;  %v1762_v14 = vld [vmem:[%s5495_s9 + $0x6a8] sm:$0xff]  ;;  %v1787_v28 = vld [vmem:[%s5495_s9 + $0x770] sm:$0xff] }
 0xe47   : > { %3962 = vmatprep.subr.bf16.mxu0 %v3961_v15  ;;  %3994 = vmatprep.subr.bf16.mxu1 %v3993_v19  ;;  %v2534_v15 = vmax.f32 %v2275_v61, 0.0  ;;  %v2536_v19 = vmax.f32 %v4955_v4, 0.0  ;;  %v4041_v4 = vpack.c.bf16 %v1794_v59, %v1793_v48  ;;  %v1751_v61 = vld [vmem:[%s5495_s9 + $0x650] sm:$0xff]  ;;  %v1753_v48 = vld [vmem:[%s5495_s9 + $0x660] sm:$0xff]  ;;  %v1754_v59 = vld [vmem:[%s5495_s9 + $0x668] sm:$0xff] }
 0xe4a   : > { %3964 = vmatpush3.bf16.msra.mxu0 %v3963_v30  ;;  %3996 = vmatpush3.bf16.msra.mxu1 %v3995_v32  ;;  %v4009_v30 = vpack.c.bf16 %v1762_v14, %v1761_v63  ;;  %v1777_v32 = vld [vmem:[%s5495_s9 + $0x720] sm:$0xff] }
 0xe4b   : > { %3966 = vmatprep.subr.bf16.mxu0 %v3965_v7  ;;  %3998 = vmatprep.subr.bf16.mxu1 %v3997_v62  ;;  %v4011_v7 = vpack.c.bf16 %v1746_v0, %v1745_v25  ;;  %v4043_v62 = vpack.c.bf16 %v1778_v47, %v1777_v32  ;;  %v1771_v25 = vld [vmem:[%s5495_s9 + $0x6f0] sm:$0xff]  ;;  %v1772_v0 = vld [vmem:[%s5495_s9 + $0x6f8] sm:$0xff] }
 0xe4c   : > { %v1755_v32 = vld [vmem:[%s5495_s9 + $0x670] sm:$0xff]  ;;  %v4029_v47 = vpack.c.bf16 %v1772_v0, %v1771_v25 }
 0xe4e   : > { %3968 = vmatpush3.bf16.msra.mxu0 %v3967_v40  ;;  %4000 = vmatpush3.bf16.msra.mxu1 %v3999_v41  ;;  %v1765_v40 = vld [vmem:[%s5495_s9 + $0x6c0] sm:$0xff]  ;;  %v1766_v41 = vld [vmem:[%s5495_s9 + $0x6c8] sm:$0xff] }
 0xe4f   : > { %4002 = vmatprep.subr.bf16.mxu0 %v4001_v55  ;;  %4034 = vmatprep.subr.bf16.mxu1 %v4033_v29  ;;  %v1798_v55 = vld [vmem:[%s5495_s9 + $0x7c8] sm:$0xff]  ;;  %v4015_v29 = vpack.c.bf16 %v1748_v10, %v1747_v1  ;;  %v4017_v44 = vpack.c.bf16 %v1766_v41, %v1765_v40  ;;  %v2522_v1 = vmax.f32 %v4991_v17, 0.0  ;;  %v2524_v10 = vmax.f32 %v4993_v18, 0.0  ;;  %v3308_v17 = vld [vmem:[%s5496_s10] ss:$0 sm:$0xff] }
 0xe50   : > { %v4049_v16 = vpack.c.bf16 %v1798_v55, %v1797_v54 }
 0xe51   : > { %2913 = vmatmul.mubr.f32.vlgmr.msra.gmra.mrb[34].mxu0 %v2518_v46  ;;  %2988 = vmatmul.mubr.f32.vlgmr.msra.gmra.mrb[34].mxu1 %v2520_v60  ;;  %v4019_v46 = vpack.c.bf16 %v1750_v43, %v1749_v57  ;;  %v4051_v60 = vpack.c.bf16 %v1782_v24, %v1781_v23 }
 0xe52   : > { %2917 = vmatprep.mubr.f32.mxu0 %v2535_v11  ;;  %2992 = vmatprep.mubr.f32.mxu1 %v2537_v12  ;;  %v1783_v11 = vld [vmem:[%s5495_s9 + $0x750] sm:$0xff]  ;;  %v1784_v12 = vld [vmem:[%s5495_s9 + $0x758] sm:$0xff] }
 0xe53   : > { %4004 = vmatpush3.bf16.msra.mxu0 %v4003_v42  ;;  %4036 = vmatpush3.bf16.msra.mxu1 %v4035_v5  ;;  %v1800_v42 = vld [vmem:[%s5495_s9 + $0x7d8] sm:$0xff]  ;;  %v4055_v14 = vpack.c.bf16 %v1784_v12, %v1783_v11 }
 0xe54   : > { %4006 = vmatprep.subr.bf16.mxu0 %v4005_v37  ;;  %4038 = vmatprep.subr.bf16.mxu1 %v4037_v13  ;;  %v1752_v5 = vld [vmem:[%s5495_s9 + $0x658] sm:$0xff]  ;;  %v4053_v49 = vpack.c.bf16 %v1800_v42, %v1799_v53  ;;  %v1769_v37 = vld [vmem:[%s5495_s9 + $0x6e0] sm:$0xff]  ;;  %v1770_v13 = vld [vmem:[%s5495_s9 + $0x6e8] sm:$0xff] }
 0xe55   : > { %2918 = vmatmul.mubr.f32.gmra.mrb[36].mxu0 %v2534_v15  ;;  %2993 = vmatmul.mubr.f32.gmra.mrb[36].mxu1 %v2536_v19  ;;  %v4023_v63 = vpack.c.bf16 %v1752_v5, %v1751_v61  ;;  %v4025_v15 = vpack.c.bf16 %v1770_v13, %v1769_v37  ;;  %v4057_v19 = vpack.c.bf16 %v1802_v45, %v1801_v22 }
 0xe56   : > { %3062 = vmatprep.mubr.f32.mxu0 %v2523_v26  ;;  %3137 = vmatprep.mubr.f32.mxu1 %v2525_v34  ;;  %v1803_v26 = vld [vmem:[%s5495_s9 + $0x7f0] sm:$0xff]  ;;  %v1804_v34 = vld [vmem:[%s5495_s9 + $0x7f8] sm:$0xff] }
 0xe57   : > { %4008 = vmatpush3.bf16.msra.mxu0 %v4007_v20  ;;  %4040 = vmatpush3.bf16.msra.mxu1 %v4039_v21  ;;  %v1785_v20 = vld [vmem:[%s5495_s9 + $0x760] sm:$0xff]  ;;  %v1786_v21 = vld [vmem:[%s5495_s9 + $0x768] sm:$0xff]  ;;  %v4061_v52 = vpack.c.bf16 %v1804_v34, %v1803_v26 }
 0xe58   : > { %4010 = vmatprep.subr.bf16.mxu0 %v4009_v30  ;;  %4042 = vmatprep.subr.bf16.mxu1 %v4041_v4  ;;  %v4027_v30 = vpack.c.bf16 %v1754_v59, %v1753_v48  ;;  %v4059_v4 = vpack.c.bf16 %v1786_v21, %v1785_v20 }
 0xe5b   : > { %4012 = vmatpush3.bf16.msra.mxu0 %v4011_v7  ;;  %4044 = vmatpush3.bf16.msra.mxu1 %v4043_v62  ;;  %v4031_v7 = vpack.c.bf16 %v1756_v27, %v1755_v32  ;;  %v4063_v62 = vpack.c.bf16 %v1788_v9, %v1787_v28 }
 0xe5c   : > { %4014 = vmatprep.subr.bf16.mxu0 %v4013_v2  ;;  %4046 = vmatprep.subr.bf16.mxu1 %v4045_v35  ;;  %v2539_v2 = vmax.f32 %v5038_v8, 0.0  ;;  %v2541_v35 = vmax.f32 %v5040_v50, 0.0 }
 0xe5f   : > { %4016 = vmatpush3.bf16.msra.mxu0 %v4015_v29  ;;  %4048 = vmatpush3.bf16.msra.mxu1 %v4047_v56 }
 0xe60   : > { %4018 = vmatprep.subr.bf16.mxu0 %v4017_v44  ;;  %4050 = vmatprep.subr.bf16.mxu1 %v4049_v16 }
 0xe63   : > { %4020 = vmatpush3.bf16.msra.mxu0 %v4019_v46  ;;  %4052 = vmatpush3.bf16.msra.mxu1 %v4051_v60 }
 0xe64   : > { %4022 = vmatprep.subr.bf16.mxu0 %v4021_v6  ;;  %4054 = vmatprep.subr.bf16.mxu1 %v4053_v49 }
 0xe67   : > { %4024 = vmatpush3.bf16.msra.mxu0 %v4023_v63  ;;  %4056 = vmatpush3.bf16.msra.mxu1 %v4055_v14 }
 0xe68   : > { %4026 = vmatprep.subr.bf16.mxu0 %v4025_v15  ;;  %4058 = vmatprep.subr.bf16.mxu1 %v4057_v19 }
 0xe6b   : > { %4028 = vmatpush3.bf16.msra.mxu0 %v4027_v30  ;;  %4060 = vmatpush3.bf16.msra.mxu1 %v4059_v4 }
 0xe6c   : > { %4030 = vmatprep.subr.bf16.mxu0 %v4029_v47  ;;  %4062 = vmatprep.subr.bf16.mxu1 %v4061_v52 }
 0xe6f   : > { %4032 = vmatpush3.bf16.msra.mxu0 %v4031_v7  ;;  %4064 = vmatpush3.bf16.msra.mxu1 %v4063_v62 }
 0xe72   : > { %3063 = vmatmul.mubr.f32.vlgmr.msra.gmra.mrb[38].mxu0 %v2522_v1  ;;  %3138 = vmatmul.mubr.f32.vlgmr.msra.gmra.mrb[38].mxu1 %v2524_v10 }
 0xe73   : > { %3067 = vmatprep.mubr.f32.mxu0 %v2539_v2  ;;  %3142 = vmatprep.mubr.f32.mxu1 %v2541_v35 }
 0xe76   : > { %3068 = vmatmul.mubr.f32.gmra.mrb[40].mxu0 %v2538_v36  ;;  %3143 = vmatmul.mubr.f32.gmra.mrb[40].mxu1 %v2540_v51 }
 0xee3   : > { %v3387_v40 = vpop.f32.mrb[26].mxu0  ;;  %v3425_v41 = vpop.f32.mrb[26].mxu1 }
 0xee4   : > { %v3388_v18 = vpop.f32.mrb[27].mxu0  ;;  %v3426_v8 = vpop.f32.mrb[27].mxu1 }
 0xee5   : > { %v3389_v54 = vadd.f32 %v3388_v18, %v3387_v40  ;;  %v3427_v50 = vadd.f32 %v3426_v8, %v3425_v41 }
 0xee7   : > { %v2615_v55 = vadd.f32 %v3389_v54, %v3308_v17  ;;  %v3390_v29 = vpop.f32.mrb[28].mxu0  ;;  %v3428_v56 = vpop.f32.mrb[28].mxu1 }
 0xee8   : > { %v3391_v57 = vpop.f32.mrb[29].mxu0  ;;  %v3429_v43 = vpop.f32.mrb[29].mxu1 }
 0xee9   : > { %v2690_v39 = vadd.f32 %v3427_v50, %v2615_v55  ;;  %v3392_v44 = vadd.f32 %v3391_v57, %v3390_v29  ;;  %v3430_v33 = vadd.f32 %v3429_v43, %v3428_v56 }
 0xeeb   : > { %v2620_v16 = vadd.f32 %v3392_v44, %v3308_v17 }
 0xeed   : > { %v2695_v23 = vadd.f32 %v3430_v33, %v2620_v16 }
 0xf03   : > { %v3463_v24 = vpop.f32.mrb[30].mxu0  ;;  %v3501_v58 = vpop.f32.mrb[30].mxu1 }
 0xf04   : > { %v3464_v3 = vpop.f32.mrb[31].mxu0  ;;  %v3502_v53 = vpop.f32.mrb[31].mxu1 }
 0xf05   : > { %v3465_v42 = vadd.f32 %v3464_v3, %v3463_v24  ;;  %v3503_v46 = vadd.f32 %v3502_v53, %v3501_v58 }
 0xf07   : > { %v2765_v60 = vadd.f32 %v3465_v42, %v2690_v39  ;;  %v3466_v61 = vpop.f32.mrb[32].mxu0  ;;  %v3504_v5 = vpop.f32.mrb[32].mxu1 }
 0xf08   : > { %v3467_v6 = vpop.f32.mrb[33].mxu0  ;;  %v3505_v49 = vpop.f32.mrb[33].mxu1 }
 0xf09   : > { %v2840_v11 = vadd.f32 %v3503_v46, %v2765_v60  ;;  %v3468_v12 = vadd.f32 %v3467_v6, %v3466_v61  ;;  %v3506_v37 = vadd.f32 %v3505_v49, %v3504_v5  ;;  %v3309_v46 = vld [vmem:[%s5497_s11] ss:$0 sm:$0xff] }
 0xf0a   : > { %v3310_v61 = vld [vmem:[%s5498_s12] ss:$0 sm:$0xff] }
 0xf0b   : > { %v2770_v13 = vadd.f32 %v3468_v12, %v2695_v23 }
 0xf0d   : > { %v2845_v22 = vadd.f32 %v3506_v37, %v2770_v13 }
 0xf24   : > { %v3539_v45 = vpop.f32.mrb[34].mxu0  ;;  %v3577_v63 = vpop.f32.mrb[34].mxu1 }
 0xf25   : > { %v3540_v14 = vpop.f32.mrb[35].mxu0  ;;  %v3578_v48 = vpop.f32.mrb[35].mxu1 }
 0xf26   : > { %v3541_v59 = vadd.f32 %v3540_v14, %v3539_v45  ;;  %v3579_v15 = vadd.f32 %v3578_v48, %v3577_v63 }
 0xf28   : > { %v2915_v19 = vadd.f32 %v3541_v59, %v2840_v11  ;;  %v3542_v20 = vpop.f32.mrb[36].mxu0  ;;  %v3580_v21 = vpop.f32.mrb[36].mxu1 }
 0xf29   : > { %v3543_v25 = vpop.f32.mrb[37].mxu0  ;;  %v3581_v0 = vpop.f32.mrb[37].mxu1 }
 0xf2a   : > { %v2990_v26 = vadd.f32 %v3579_v15, %v2915_v19  ;;  %v3544_v34 = vadd.f32 %v3543_v25, %v3542_v20  ;;  %v3582_v30 = vadd.f32 %v3581_v0, %v3580_v21 }
 0xf2c   : > { %v2920_v4 = vadd.f32 %v3544_v34, %v2845_v22 }
 0xf2e   : > { %v2995_v32 = vadd.f32 %v3582_v30, %v2920_v4 }
 0xf45   : > { %v3615_v47 = vpop.f32.mrb[38].mxu0  ;;  %v3653_v52 = vpop.f32.mrb[38].mxu1 }
 0xf46   : > { %v3616_v27 = vpop.f32.mrb[39].mxu0  ;;  %v3654_v28 = vpop.f32.mrb[39].mxu1 }
 0xf47   : > { %v3617_v9 = vadd.f32 %v3616_v27, %v3615_v47  ;;  %v3655_v7 = vadd.f32 %v3654_v28, %v3653_v52 }
 0xf49   : > { %v3065_v62 = vadd.f32 %v3617_v9, %v2990_v26  ;;  %v3618_v1 = vpop.f32.mrb[40].mxu0  ;;  %v3656_v10 = vpop.f32.mrb[40].mxu1 }
 0xf4a   : > { %v3619_v2 = vpop.f32.mrb[41].mxu0  ;;  %v3657_v35 = vpop.f32.mrb[41].mxu1 }
 0xf4b   : > { %v3140_v36 = vadd.f32 %v3655_v7, %v3065_v62  ;;  %v3620_v51 = vadd.f32 %v3619_v2, %v3618_v1  ;;  %v3658_v40 = vadd.f32 %v3657_v35, %v3656_v10 }
 0xf4d   : > { %v3070_v41 = vadd.f32 %v3620_v51, %v2995_v32  ;;  %v3148_v17 = vadd.f32 %v3140_v36, %v4465_v31 }
 0xf4f   : > { %v3145_v18 = vadd.f32 %v3658_v40, %v3070_v41  ;;  %v3152_v8 = vsel %vm455_vm0, %v3148_v17, 0.0 }
 0xf50   : > { %3153 = vadd.xlane.f32.xlu1 %v3152_v8 }
 0xf51   : > { %v3149_v54 = vadd.f32 %v3145_v18, %v4473_v38 }
 0xf53   : > { %v3155_v50 = vsel %vm455_vm0, %v3149_v54, 0.0 }
 0xf54   : > { %3156 = vadd.xlane.f32.xlu0 %v3155_v50 }
 0xfdd   : > { %v3154_v55 = vpop.xlane.xlu1 %3153 }
 0xfde   : > { %v3158_v29 = vmul.f32 0.0625, %v3154_v55 }
 0xfe0   : > { %v3160_v56 = vsub.f32 %v3148_v17, %v3158_v29 }
 0xfe1   : > { %v3157_v57 = vpop.xlane.xlu0 %3156 }
 0xfe2   : > { %v3159_v43 = vmul.f32 0.0625, %v3157_v57  ;;  %v3162_v39 = vmul.f32 %v3160_v56, %v3160_v56 }
 0xfe4   : > { %v3161_v44 = vsub.f32 %v3149_v54, %v3159_v43  ;;  %v3164_v33 = vsel %vm455_vm0, %v3162_v39, 0.0 }
 0xfe5   : > { %3165 = vadd.xlane.f32.xlu1 %v3164_v33 }
 0xfe6   : > { %v3163_v31 = vmul.f32 %v3161_v44, %v3161_v44 }
 0xfe8   : > { %v3167_v16 = vsel %vm455_vm0, %v3163_v31, 0.0 }
 0xfe9   : > { %3168 = vadd.xlane.f32.xlu0 %v3167_v16 }
0x1072   : > { %v3166_v23 = vpop.xlane.xlu1 %3165 }
0x1073   : > { %v3170_v38 = vmul.f32 0.0625, %v3166_v23 }
0x1075   : > { %v3172_v24 = vadd.f32 1e-05, %v3170_v38 }
0x1076   : > { %v3169_v58 = vpop.xlane.xlu0 %3168 }
0x1077   : > { %4164 = vrsqrt.f32 %v3172_v24  ;;  %v3171_v3 = vmul.f32 0.0625, %v3169_v58 }
0x1079   : > { %v3173_v53 = vadd.f32 1e-05, %v3171_v3 }
0x107b   : > { %4166 = vrsqrt.f32 %v3173_v53 }
0x1081   : > { %v4165_v42 = vpop.eup %4164 }
0x1082   : > { %v3176_v60 = vmul.f32 %v4165_v42, %v3160_v56 }
0x1084   : > { %v3184_v5 = vmul.f32 %v3309_v46, %v3176_v60 }
0x1085   : > { %v4167_v6 = vpop.eup %4166 }
0x1086   : > { %v3192_v49 = vadd.f32 %v3310_v61, %v3184_v5  ;;  %v3177_v11 = vmul.f32 %v4167_v6, %v3161_v44 }
0x1088   : > { %3194 = vst.msk [vmem:[%s440_s16] sm:$0xff] %vm455_vm0, %v3192_v49  ;;  %v3185_v12 = vmul.f32 %v3309_v46, %v3177_v11 }
0x108a   : > { %v3193_v37 = vadd.f32 %v3310_v61, %v3185_v12 }
0x108c   : > { %3195 = vst.msk [vmem:[%s440_s16 + $0x8] sm:$0xff] %vm455_vm0, %v3193_v37 }
0x108d PF: > { %s23_s25 = sadd.s32 1, %s4174_s25  }
0x108e   : > { %p20_p4 = scmp.ge.s32.totalorder %s23_s25, 4  }
0x1090   :  { %22 = sbr.rel (!%p20_p4) target bundleno = 1 (0x1), region = 102 }

// kernel: _lambda_.11
= control target key start
LH: loop header
LB: loop body
LE: loop exit
PB: predicated region body
PF: predicated region fallthrough
CT: control target
= control target key end

     0   :  { %s7420_s0 = inlined_call_operand.vmem [shape: f32[2,16,16], index: 0, kind: input, shape index: {}]   ;;  %s7421_s1 = inlined_call_operand.vmem [shape: f32[2,16,16], index: 1, kind: input, shape index: {}]   ;;  %s7422_s2 = inlined_call_operand.vmem [shape: f32[16,48], index: 2, kind: input, shape index: {}]   ;;  %s7423_s3 = inlined_call_operand.vmem [shape: f32[1,48], index: 3, kind: input, shape index: {}]   ;;  %s7424_s4 = inlined_call_operand.vmem [shape: f32[16,16], index: 4, kind: input, shape index: {}]   ;;  %s7425_s5 = inlined_call_operand.vmem [shape: f32[1,16], index: 5, kind: input, shape index: {}]   ;;  %s7426_s6 = inlined_call_operand.vmem [shape: f32[1,16], index: 6, kind: input, shape index: {}]   ;;  %s7427_s7 = inlined_call_operand.vmem [shape: f32[1,16], index: 7, kind: input, shape index: {}]   ;;  %s7428_s8 = inlined_call_operand.vmem [shape: f32[16,16], index: 8, kind: input, shape index: {}]   ;;  %s7429_s9 = inlined_call_operand.vmem [shape: f32[1,16], index: 9, kind: input, shape index: {}]   ;;  %s7430_s10 = inlined_call_operand.vmem [shape: f32[16,32], index: 10, kind: input, shape index: {}]   ;;  %s7431_s11 = inlined_call_operand.vmem [shape: f32[1,32], index: 11, kind: input, shape index: {}]   ;;  %s7432_s12 = inlined_call_operand.vmem [shape: f32[16,16], index: 12, kind: input, shape index: {}]   ;;  %s7433_s13 = inlined_call_operand.vmem [shape: f32[1,16], index: 13, kind: input, shape index: {}]   ;;  %s7434_s14 = inlined_call_operand.vmem [shape: f32[1,16], index: 14, kind: input, shape index: {}]   ;;  %s7435_s15 = inlined_call_operand.vmem [shape: f32[1,16], index: 15, kind: input, shape index: {}]   ;;  %s7436_s16 = inlined_call_operand.vmem [shape: f32[16,2048], index: 16, kind: input, shape index: {}]   ;;  %s7437_s17 = inlined_call_operand.vmem [shape: f32[1,2048], index: 17, kind: input, shape index: {}]   ;;  %s7438_s18 = inlined_call_operand.vmem [shape: f32[2048,16], index: 18, kind: input, shape index: {}]   ;;  %s7439_s19 = inlined_call_operand.vmem [shape: f32[1,16], index: 19, kind: input, shape index: {}]   ;;  %s7440_s20 = inlined_call_operand.vmem [shape: f32[1,16], index: 20, kind: input, shape index: {}]   ;;  %s7441_s21 = inlined_call_operand.vmem [shape: f32[1,16], index: 21, kind: input, shape index: {}]   ;;  %s7442_s22 = inlined_call_operand.vmem [shape: f32[2,16,16], index: 22, kind: output, shape index: {}]  }
   0x1   :  { %7459 = sst [smem:[#allocation3_spill]] %s7420_s0 }
   0x2   :  { %7460 = sst [smem:[#allocation4_spill]] %s7421_s1 }
   0x3   :  { %7461 = sst [smem:[#allocation5_spill]] %s7422_s2 }
   0x4   :  { %7462 = sst [smem:[#allocation6_spill]] %s7423_s3  ;;  %s6019_s3 = smov 0  }
   0x5   :  { %7463 = sst [smem:[#allocation7_spill]] %s7424_s4 }
   0x6   :  { %7464 = sst [smem:[#allocation8_spill]] %s7425_s5 }
   0x7   :  { %7465 = sst [smem:[#allocation9_spill]] %s7426_s6 }
   0x8 LB: > { %s4682_s28 = sadd.s32 4294967295, %s5887_s3   ;;  %p4686_p0 = scmp.ge.s32.totalorder %s5887_s3, 1  ;;  %s5887_s3 = sphi %s6019_s3, %s32_s3  }
   0x9   : > { %p622_p1 = scmp.lt.s32.totalorder %s5887_s3, 3 }
   0xb   : > { %p623_p2 = pnand %p4686_p0, %p622_p1 }
   0xc   : > { %s7466_s4 = sld [smem:[#allocation5_spill]] (!%p623_p2)  ;;  %p689_p3 = scmp.lt.s32.totalorder (!%p623_p2), %s4682_s28, 1  ;;  %vm720_vm0 = vcmask (!%p623_p2), 130048   ;;  %vm808_vm1 = vcmask (!%p623_p2), 31744   ;;  %vm1215_vm3 = vcmask (!%p623_p2), 64544   ;;  %vm1428_vm4 = vcmask (!%p623_p2), 97344  }
   0xd   : > { %626 = sbr.rel (%p623_p2) target bundleno = 7484 (0x1d3c), region = 108  ;;  %s7467_s6 = sld [smem:[#allocation3_spill]] (!%p623_p2)  ;;  %vm6064_vm2 = vmpackc.low (!%p623_p2), %vm808_vm1, %vm808_vm1  ;;  %vm1641_vm5 = vcmask (!%p623_p2), 130144  }
   0xe   : > { %s7468_s27 = sld [smem:[#allocation6_spill]] (!%p623_p2)  ;;  %s5890_s29 = smov (!%p623_p2), 96  }
   0xf   : > { %s7457_s30 = smov (!%p623_p2), 108   ;;  %s5892_s0 = smov (!%p623_p2), 124  }
  0x10   : > { %s5893_s23 = smov (!%p623_p2), 92   ;;  %s7454_s5 = smov (!%p623_p2), 104  }
  0x11   : > { %s7455_s24 = smov (!%p623_p2), 120   ;;  %s5898_s26 = smov (!%p623_p2), 88  }
  0x12   : > { %v708_v0 = vld [vmem:[%s7466_s4] sm:$0xff] (!%p623_p2)  ;;  %v709_v1 = vld [vmem:[%s7466_s4 + $0x8] sm:$0xff] (!%p623_p2)  ;;  %s7447_s2 = smov (!%p623_p2), 4  }
  0x13   : > { %v5319_v2 = vpack.c.bf16 (!%p623_p2), %v709_v1, %v708_v0 }
  0x14   : > { %s7484_s28 = smov (!%p689_p3, %s4682_s28), 1  ;;  %v4693_v5 = vld [vmem:[%s7468_s27] ss:$0 sm:$0xff]  ;;  %s5900_s27 = smov 84  }
  0x15   : > { %5320 = vmatprep.subr.bf16.mxu0 %v5319_v2  ;;  %s6033_s1 = sshll.u32 %s7484_s28, 4  ;;  %s5889_s28 = smov 112  }
  0x16   : > { %5322 = vmatpush3.bf16.msra.mxu0 %v5319_v2  ;;  %s693_s25 = scalar_lea.vmem %s7467_s6, %s6033_s1  ;;  %s7449_s6 = smov 100  }
  0x17   : > { %v6039_v3 = vld [vmem:[%s693_s25] sm:$0xff]  ;;  %v6041_v4 = vld [vmem:[%s693_s25 + $0x8] sm:$0xff]  ;;  %s7452_s25 = smov 116  }
  0x18   : > { %5176 = vmatprep.mubr.msk.f32.mxu0 %vm720_vm0, %v6039_v3 }
  0x19   : > { %5177 = vmatmul.mubr.msk.f32.vlgmr.msra.gmra.mrb[0].mxu0 %vm720_vm0, %v6041_v4 }
  0xec   : > { %v5178_v6 = vpop.f32.mrb[0].mxu0 }
  0xed   : > { %v6050_v7 = vadd.f32 %v5178_v6, %v4693_v5  ;;  %v793_v8 = vpop.f32.mrb[1].mxu0 }
  0xee   : > { %v6052_v9 = vadd.f32 %v4693_v5, %v793_v8 }
  0xf0   : > { %5183 = vmatprep.mubr.msk.f32.mxu1 %vm808_vm1, %v6052_v9  ;;  %v6058_v10 = vpack.i.bf16 %v6050_v7, %v6052_v9 }
  0xf2   : > { %5731 = vrot.lane.b32.xlu0 %v6058_v10, %s5889_s28 }
 0x164   : > { %v5732_v11 = vpop.permute.xlu0 %5731 }
 0x165   : > { %v5734_v12 = vunpack.i.h.bf16 %v5732_v11  ;;  %v5733_v13 = vunpack.i.l.bf16 %v5732_v11 }
 0x167   : > { %v5323_v15 = vpack.c.bf16 %v5734_v12, %v5733_v13 }
 0x169   : > { %5325 = vmatprep.subr.msk.bf16.mxu1 %vm6064_vm2, %v5323_v15 }
 0x16a   : > { %5328 = vmatpush3.bf16.xpose.msk.msra.mxu1 %vm6064_vm2, %v5323_v15 }
 0x171   : > { %5184 = vmatmul.mubr.msk.f32.vlgmr.msra.gmra.mrb[0].mxu1 %vm808_vm1, %v6050_v7 }
 0x244   : > { %v5185_v16 = vpop.f32.mrb[0].mxu1 }
 0x245   : > { %v893_v17 = vmul.f32 0.5, %v5185_v16  ;;  %v883_v18 = vpop.f32.mrb[1].mxu1 }
 0x246   : > { %v892_v19 = vmul.f32 0.5, %v883_v18 }
 0x247   : > { %v897_v20 = vsel %vm720_vm0, %v893_v17, -inf }
 0x248   : > { %898 = vmax.xlane.f32.xlu1 %v897_v20  ;;  %v894_v21 = vsel %vm720_vm0, %v892_v19, -inf }
 0x249   : > { %895 = vmax.xlane.f32.xlu0 %v894_v21 }
 0x259   : > { %5736 = vrot.lane.b32.xlu1 %v6058_v10, %s5890_s29  ;;  %s7445_s29 = smov 8  }
 0x25d   : > { %5741 = vrot.lane.b32.xlu1 %v6058_v10, %s7457_s30  ;;  %s7474_s30 = sld [smem:[#allocation9_spill]] }
 0x25f   : > { %1007 = vrot.lane.b32.xlu0 %v6050_v7, %s5892_s0 }
 0x2d5   : > { %v899_v22 = vpop.xlane.xlu1 %898 }
 0x2d6   : > { %v901_v23 = vsub.f32 %v893_v17, %v899_v22  ;;  %v896_v24 = vpop.xlane.xlu0 %895 }
 0x2d7   : > { %v900_v25 = vsub.f32 %v892_v19, %v896_v24 }
 0x2d8   : > { %v904_v26 = vmul.f32 1.442695, %v901_v23 }
 0x2d9   : > { %v902_v27 = vmul.f32 1.442695, %v900_v25  ;;  %v5737_v28 = vpop.permute.xlu1 %5736 }
 0x2da   : > { %5805 = vpow2.f32 %v904_v26  ;;  %v5739_v29 = vunpack.i.h.bf16 %v5737_v28  ;;  %v5738_v30 = vunpack.i.l.bf16 %v5737_v28  ;;  %v1008_v47 = vpop.permute.xlu0 %1007 }
 0x2db   : > { %5807 = vpow2.f32 %v902_v27 }
 0x2dc   : > { %v5329_v31 = vpack.c.bf16 %v5739_v29, %v5738_v30 }
 0x2dd   : > { %v5742_v32 = vpop.permute.xlu1 %5741 }
 0x2de   : > { %v5744_v33 = vunpack.i.h.bf16 %v5742_v32  ;;  %v5743_v34 = vunpack.i.l.bf16 %v5742_v32  ;;  %5330 = vmatprep.subr.bf16.mxu0 %v5329_v31 }
 0x2df   : > { %5332 = vmatpush3.bf16.msra.mxu0 %v5329_v31 }
 0x2e0   : > { %v5333_v35 = vpack.c.bf16 %v5744_v33, %v5743_v34 }
 0x2e2   : > { %5335 = vmatprep.subr.msk.bf16.mxu0 %vm6064_vm2, %v5333_v35 }
 0x2e4   : > { %v5806_v36 = vpop.eup %5805 }
 0x2e5   : > { %v909_v37 = vsel %vm720_vm0, %v5806_v36, 0.0  ;;  %v5808_v38 = vpop.eup %5807 }
 0x2e6   : > { %910 = vadd.xlane.f32.xlu1 %v909_v37  ;;  %v906_v39 = vsel %vm720_vm0, %v5808_v38, 0.0 }
 0x2ea   : > { %907 = vadd.xlane.f32.xlu1 %v906_v39 }
 0x2fb   : > { %1005 = vrot.lane.b32.xlu1 %v6052_v9, %s5892_s0 }
 0x373   : > { %v911_v40 = vpop.xlane.xlu1 %910 }
 0x374   : > { %5809 = vrcp.f32 %v911_v40 }
 0x377   : > { %v908_v41 = vpop.xlane.xlu1 %907 }
 0x378   : > { %5811 = vrcp.f32 %v908_v41 }
 0x37b   : > { %v1006_v46 = vpop.permute.xlu1 %1005 }
 0x37e   : > { %v5810_v42 = vpop.eup %5809 }
 0x37f   : > { %v915_v45 = vmul.f32 %v5810_v42, %v5806_v36 }
 0x382   : > { %v5812_v43 = vpop.eup %5811 }
 0x383   : > { %v914_v44 = vmul.f32 %v5812_v43, %v5808_v38 }
 0x385   : > { %5190 = vmatprep.mubr.msk.f32.mxu0 %vm720_vm0, %v914_v44 }
 0x386   : > { %5191 = vmatmul.mubr.msk.f32.vlgmr.msra.gmra.mrb[2].mxu0 %vm720_vm0, %v915_v45 }
 0x387   : > { %5338 = vmatpush3.bf16.xpose.msk.msra.mxu0 %vm6064_vm2, %v5333_v35  ;;  %5197 = vmatprep.mubr.msk.f32.mxu0 %vm808_vm1, %v1006_v46 }
 0x38e   : > { %5198 = vmatmul.mubr.msk.f32.vlgmr.msra.gmra.mrb[4].mxu0 %vm808_vm1, %v1008_v47 }
 0x459   : > { %v5192_v48 = vpop.f32.mrb[2].mxu0 }
 0x45a   : > { %1004 = vst.msk [vmem:[#allocation2 + $0x8] sm:$0xff] %vm808_vm1, %v5192_v48  ;;  %v994_v49 = vpop.f32.mrb[3].mxu0 }
 0x45b   : > { %1003 = vst.msk [vmem:[#allocation2] sm:$0xff] %vm808_vm1, %v994_v49 }
 0x461   : > { %v5199_v50 = vpop.f32.mrb[4].mxu0 }
 0x462   : > { %v1097_v51 = vmul.f32 0.5, %v5199_v50  ;;  %v1087_v52 = vpop.f32.mrb[5].mxu0 }
 0x463   : > { %v1096_v53 = vmul.f32 0.5, %v1087_v52 }
 0x464   : > { %v1101_v54 = vsel %vm720_vm0, %v1097_v51, -inf }
 0x465   : > { %1102 = vmax.xlane.f32.xlu0 %v1101_v54  ;;  %v1098_v55 = vsel %vm720_vm0, %v1096_v53, -inf }
 0x466   : > { %1099 = vmax.xlane.f32.xlu1 %v1098_v55 }
 0x477   : > { %5746 = vrot.lane.b32.xlu1 %v6058_v10, %s5893_s23  ;;  %s7472_s23 = sld [smem:[#allocation8_spill]] }
 0x47b   : > { %5751 = vrot.lane.b32.xlu0 %v6058_v10, %s7454_s5  ;;  %1218 = vrot.lane.b32.xlu1 %v6052_v9, %s7455_s24  ;;  %s7473_s5 = sld [smem:[#allocation4_spill]] }
 0x4f2   : > { %v1103_v56 = vpop.xlane.xlu0 %1102 }
 0x4f3   : > { %v1105_v57 = vsub.f32 %v1097_v51, %v1103_v56  ;;  %v1100_v58 = vpop.xlane.xlu1 %1099 }
 0x4f4   : > { %v1104_v59 = vsub.f32 %v1096_v53, %v1100_v58 }
 0x4f5   : > { %v1108_v60 = vmul.f32 1.442695, %v1105_v57 }
 0x4f6   : > { %v1106_v61 = vmul.f32 1.442695, %v1104_v59  ;;  %v5752_v62 = vpop.permute.xlu0 %5751 }
 0x4f7   : > { %5813 = vpow2.f32 %v1108_v60  ;;  %v5747_v63 = vpop.permute.xlu1 %5746  ;;  %v5754_v0 = vunpack.i.h.bf16 %v5752_v62  ;;  %v5753_v1 = vunpack.i.l.bf16 %v5752_v62 }
 0x4f8   : > { %v5749_v2 = vunpack.i.h.bf16 %v5747_v63  ;;  %v5748_v5 = vunpack.i.l.bf16 %v5747_v63  ;;  %5815 = vpow2.f32 %v1106_v61 }
 0x4f9   : > { %v5343_v8 = vpack.c.bf16 %v5754_v0, %v5753_v1 }
 0x4fa   : > { %v5339_v6 = vpack.c.bf16 %v5749_v2, %v5748_v5 }
 0x4fb   : > { %v1219_v16 = vpop.permute.xlu1 %1218 }
 0x4fc   : > { %5340 = vmatprep.subr.bf16.mxu1 %v5339_v6 }
 0x4fd   : > { %5342 = vmatpush3.bf16.msra.mxu1 %v5339_v6 }
 0x4fe   : > { %5345 = vmatprep.subr.msk.bf16.mxu1 %vm6064_vm2, %v5343_v8 }
 0x501   : > { %v5814_v11 = vpop.eup %5813 }
 0x502   : > { %v1113_v12 = vsel %vm720_vm0, %v5814_v11, 0.0  ;;  %v5816_v13 = vpop.eup %5815 }
 0x503   : > { %1114 = vadd.xlane.f32.xlu1 %v1113_v12  ;;  %v1110_v15 = vsel %vm720_vm0, %v5816_v13, 0.0 }
 0x507   : > { %1111 = vadd.xlane.f32.xlu1 %v1110_v15 }
 0x518   : > { %1220 = vrot.lane.b32.xlu1 %v6050_v7, %s7455_s24  ;;  %s698_s24 = scalar_lea.vmem %s7473_s5, %s6033_s1  ;;  %s7477_s5 = smov 104  }
 0x590   : > { %v1115_v17 = vpop.xlane.xlu1 %1114 }
 0x591   : > { %5817 = vrcp.f32 %v1115_v17 }
 0x594   : > { %v1112_v18 = vpop.xlane.xlu1 %1111 }
 0x595   : > { %5819 = vrcp.f32 %v1112_v18 }
 0x598   : > { %v1221_v23 = vpop.permute.xlu1 %1220 }
 0x59b   : > { %v5818_v19 = vpop.eup %5817 }
 0x59c   : > { %v1119_v22 = vmul.f32 %v5818_v19, %v5814_v11 }
 0x59f   : > { %v5820_v20 = vpop.eup %5819 }
 0x5a0   : > { %v1118_v21 = vmul.f32 %v5820_v20, %v5816_v13 }
 0x5a2   : > { %5204 = vmatprep.mubr.msk.f32.mxu1 %vm720_vm0, %v1118_v21 }
 0x5a3   : > { %5205 = vmatmul.mubr.msk.f32.vlgmr.msra.gmra.mrb[2].mxu1 %vm720_vm0, %v1119_v22 }
 0x5a4   : > { %5348 = vmatpush3.bf16.xpose.msk.msra.mxu1 %vm6064_vm2, %v5343_v8  ;;  %5211 = vmatprep.mubr.msk.f32.mxu1 %vm808_vm1, %v1219_v16 }
 0x5ab   : > { %5212 = vmatmul.mubr.msk.f32.vlgmr.msra.gmra.mrb[4].mxu1 %vm808_vm1, %v1221_v23 }
 0x676   : > { %v6114_v24 = vpop.f32.mrb[2].mxu1 }
 0x677   : > { %v6116_v25 = vpop.f32.mrb[3].mxu1 }
 0x67e   : > { %v5213_v26 = vpop.f32.mrb[4].mxu1 }
 0x67f   : > { %v1310_v27 = vmul.f32 0.5, %v5213_v26  ;;  %v1300_v28 = vpop.f32.mrb[5].mxu1 }
 0x680   : > { %v1309_v29 = vmul.f32 0.5, %v1300_v28 }
 0x681   : > { %v1314_v30 = vsel %vm720_vm0, %v1310_v27, -inf }
 0x682   : > { %1315 = vmax.xlane.f32.xlu0 %v1314_v30  ;;  %v1311_v31 = vsel %vm720_vm0, %v1309_v29, -inf }
 0x683   : > { %1312 = vmax.xlane.f32.xlu1 %v1311_v31 }
 0x70f   : > { %v1316_v32 = vpop.xlane.xlu0 %1315 }
 0x710   : > { %v1318_v33 = vsub.f32 %v1310_v27, %v1316_v32  ;;  %v1313_v34 = vpop.xlane.xlu1 %1312 }
 0x711   : > { %v1317_v35 = vsub.f32 %v1309_v29, %v1313_v34 }
 0x712   : > { %v1321_v36 = vmul.f32 1.442695, %v1318_v33 }
 0x713   : > { %v1319_v37 = vmul.f32 1.442695, %v1317_v35 }
 0x714   : > { %5821 = vpow2.f32 %v1321_v36 }
 0x715   : > { %5823 = vpow2.f32 %v1319_v37 }
 0x71e   : > { %v5822_v38 = vpop.eup %5821 }
 0x71f   : > { %v5824_v39 = vpop.eup %5823  ;;  %v1326_v40 = vsel %vm720_vm0, %v5822_v38, 0.0 }
 0x720   : > { %1327 = vadd.xlane.f32.xlu1 %v1326_v40  ;;  %v1323_v41 = vsel %vm720_vm0, %v5824_v39, 0.0 }
 0x721   : > { %1324 = vadd.xlane.f32.xlu0 %v1323_v41 }
 0x731   : > { %5761 = vrot.lane.b32.xlu1 %v6058_v10, %s7449_s6  ;;  %s7450_s6 = smov 12  }
 0x735   : > { %1431 = vrot.lane.b32.xlu1 %v6052_v9, %s7452_s25 }
 0x737   : > { %5756 = vrot.lane.b32.xlu0 %v6058_v10, %s5898_s26 }
 0x73b   : > { %1433 = vrot.lane.b32.xlu0 %v6050_v7, %s7452_s25  ;;  %s7481_s25 = smov 8  }
 0x7ad   : > { %v1328_v42 = vpop.xlane.xlu1 %1327 }
 0x7ae   : > { %5825 = vrcp.f32 %v1328_v42  ;;  %v1325_v43 = vpop.xlane.xlu0 %1324 }
 0x7af   : > { %5827 = vrcp.f32 %v1325_v43 }
 0x7b1   : > { %v5762_v44 = vpop.permute.xlu1 %5761 }
 0x7b2   : > { %v5757_v45 = vpop.permute.xlu0 %5756  ;;  %v5764_v46 = vunpack.i.h.bf16 %v5762_v44  ;;  %v5763_v47 = vunpack.i.l.bf16 %v5762_v44 }
 0x7b3   : > { %v5759_v48 = vunpack.i.h.bf16 %v5757_v45  ;;  %v5758_v49 = vunpack.i.l.bf16 %v5757_v45 }
 0x7b4   : > { %v5353_v51 = vpack.c.bf16 %v5764_v46, %v5763_v47 }
 0x7b5   : > { %v5349_v50 = vpack.c.bf16 %v5759_v48, %v5758_v49  ;;  %v1432_v54 = vpop.permute.xlu1 %1431 }
 0x7b6   : > { %v1434_v55 = vpop.permute.xlu0 %1433 }
 0x7b7   : > { %5350 = vmatprep.subr.bf16.mxu0 %v5349_v50 }
 0x7b8   : > { %v5826_v9 = vpop.eup %5825  ;;  %5352 = vmatpush3.bf16.msra.mxu0 %v5349_v50 }
 0x7b9   : > { %v5828_v52 = vpop.eup %5827  ;;  %5355 = vmatprep.subr.msk.bf16.mxu0 %vm6064_vm2, %v5353_v51  ;;  %v1332_v53 = vmul.f32 %v5826_v9, %v5822_v38  ;;  %v4720_v38 = vld [vmem:[%s7472_s23] ss:$0 sm:$0xff] }
 0x7ba   : > { %v1331_v7 = vmul.f32 %v5828_v52, %v5824_v39 }
 0x7bc   : > { %5218 = vmatprep.mubr.msk.f32.mxu0 %vm720_vm0, %v1331_v7 }
 0x7bd   : > { %5219 = vmatmul.mubr.msk.f32.vlgmr.msra.gmra.mrb[6].mxu0 %vm720_vm0, %v1332_v53 }
 0x7be   : > { %5225 = vmatprep.mubr.msk.f32.mxu0 %vm808_vm1, %v1432_v54  ;;  %v1784_v54 = vld [vmem:[%s7430_s10 + $0x8] sm:$0xff] }
 0x7c1   : > { %5358 = vmatpush3.bf16.xpose.msk.msra.mxu0 %vm6064_vm2, %v5353_v51 }
 0x7c8   : > { %5226 = vmatmul.mubr.msk.f32.vlgmr.msra.gmra.mrb[8].mxu0 %vm808_vm1, %v1434_v55 }
 0x890   : > { %v5220_v56 = vpop.f32.mrb[6].mxu0 }
 0x891   : > { %v1411_v57 = vpop.f32.mrb[7].mxu0 }
 0x89b   : > { %v5227_v58 = vpop.f32.mrb[8].mxu0 }
 0x89c   : > { %v1523_v59 = vmul.f32 0.5, %v5227_v58  ;;  %v1513_v60 = vpop.f32.mrb[9].mxu0  ;;  %v1780_v58 = vld [vmem:[%s7428_s8] sm:$0xff] }
 0x89d   : > { %v1522_v61 = vmul.f32 0.5, %v1513_v60 }
 0x89e   : > { %v1527_v62 = vsel %vm720_vm0, %v1523_v59, -inf }
 0x89f   : > { %1528 = vmax.xlane.f32.xlu0 %v1527_v62  ;;  %v1524_v63 = vsel %vm720_vm0, %v1522_v61, -inf }
 0x8a0   : > { %1525 = vmax.xlane.f32.xlu1 %v1524_v63 }
 0x92c   : > { %v1529_v0 = vpop.xlane.xlu0 %1528 }
 0x92d   : > { %v1531_v1 = vsub.f32 %v1523_v59, %v1529_v0  ;;  %v1526_v2 = vpop.xlane.xlu1 %1525  ;;  %v1781_v59 = vld [vmem:[%s7428_s8 + $0x8] sm:$0xff] }
 0x92e   : > { %v1530_v5 = vsub.f32 %v1522_v61, %v1526_v2  ;;  %v5367_v60 = vpack.c.bf16 %v1781_v59, %v1780_v58 }
 0x92f   : > { %v1534_v6 = vmul.f32 1.442695, %v1531_v1 }
 0x930   : > { %v1532_v8 = vmul.f32 1.442695, %v1530_v5  ;;  %5368 = vmatprep.subr.bf16.mxu0 %v5367_v60 }
 0x931   : > { %5829 = vpow2.f32 %v1534_v6  ;;  %5370 = vmatpush3.bf16.msra.mxu0 %v5367_v60  ;;  %v4723_v6 = vld [vmem:[%s7474_s30] ss:$0 sm:$0xff]  ;;  %s7479_s30 = smov 100  }
 0x932   : > { %5831 = vpow2.f32 %v1532_v8 }
 0x93b   : > { %v5830_v11 = vpop.eup %5829 }
 0x93c   : > { %v5832_v12 = vpop.eup %5831  ;;  %v1539_v13 = vsel %vm720_vm0, %v5830_v11, 0.0 }
 0x93d   : > { %1540 = vadd.xlane.f32.xlu1 %v1539_v13  ;;  %v1536_v15 = vsel %vm720_vm0, %v5832_v12, 0.0 }
 0x93e   : > { %1537 = vadd.xlane.f32.xlu0 %v1536_v15 }
 0x94e   : > { %1209 = vrot.lane.b32.xlu1 %v6116_v25, %s7447_s2 }
 0x952   : > { %1211 = vrot.lane.b32.xlu1 %v6114_v24, %s7447_s2 }
 0x954   : > { %5766 = vrot.lane.b32.xlu0 %v6058_v10, %s5900_s27  ;;  %s7471_s27 = sld [smem:[#allocation7_spill]] }
 0x956   : > { %1424 = vrot.lane.b32.xlu1 %v5220_v56, %s7445_s29  ;;  %v706_v56 = vld [vmem:[%s698_s24] sm:$0xff] }
 0x958   : > { %1422 = vrot.lane.b32.xlu0 %v1411_v57, %s7445_s29  ;;  %v707_v57 = vld [vmem:[%s698_s24 + $0x8] sm:$0xff]  ;;  %s7478_s24 = smov 116  }
 0x95a   : > { %v711_v29 = vld [vmem:[%s7471_s27] sm:$0xff]  ;;  %v712_v30 = vld [vmem:[%s7471_s27 + $0x8] sm:$0xff] }
 0x95b   : > { %v5363_v31 = vpack.c.bf16 %v712_v30, %v711_v29 }
 0x9ca   : > { %v1541_v16 = vpop.xlane.xlu1 %1540 }
 0x9cb   : > { %5833 = vrcp.f32 %v1541_v16  ;;  %v1538_v17 = vpop.xlane.xlu0 %1537 }
 0x9cc   : > { %5835 = vrcp.f32 %v1538_v17 }
 0x9ce   : > { %v1210_v18 = vpop.permute.xlu1 %1209 }
 0x9cf   : > { %1216 = vst.msk [vmem:[#allocation2] sm:$0xff] %vm1215_vm3, %v1210_v18  ;;  %v5767_v19 = vpop.permute.xlu0 %5766 }
 0x9d0   : > { %v5769_v20 = vunpack.i.h.bf16 %v5767_v19  ;;  %v5768_v21 = vunpack.i.l.bf16 %v5767_v19  ;;  %v4728_v19 = vld [vmem:[%s7431_s11] ss:$0 sm:$0xff] }
 0x9d2   : > { %v5359_v22 = vpack.c.bf16 %v5769_v20, %v5768_v21  ;;  %v1212_v23 = vpop.permute.xlu1 %1211 }
 0x9d3   : > { %1217 = vst.msk [vmem:[#allocation2 + $0x8] sm:$0xff] %vm1215_vm3, %v1212_v23  ;;  %v1423_v10 = vpop.permute.xlu0 %1422 }
 0x9d4   : > { %1429 = vst.msk [vmem:[#allocation2] sm:$0xff] %vm1428_vm4, %v1423_v10  ;;  %5360 = vmatprep.subr.bf16.mxu1 %v5359_v22 }
 0x9d5   : > { %v5834_v24 = vpop.eup %5833  ;;  %5362 = vmatpush3.bf16.msra.mxu1 %v5359_v22 }
 0x9d6   : > { %v5836_v25 = vpop.eup %5835  ;;  %v1425_v26 = vpop.permute.xlu1 %1424  ;;  %v1545_v28 = vmul.f32 %v5834_v24, %v5830_v11  ;;  %5364 = vmatprep.subr.bf16.mxu1 %v5363_v31  ;;  %v4724_v11 = vld [vmem:[%s7427_s7] ss:$0 sm:$0xff] }
 0x9d7   : > { %1430 = vst.msk [vmem:[#allocation2 + $0x8] sm:$0xff] %vm1428_vm4, %v1425_v26  ;;  %v1544_v27 = vmul.f32 %v5836_v25, %v5832_v12  ;;  %v4725_v25 = vld [vmem:[%s7429_s9] ss:$0 sm:$0xff] }
 0x9d9   : > { %5232 = vmatprep.mubr.msk.f32.mxu1 %vm720_vm0, %v1544_v27 }
 0x9da   : > { %5233 = vmatmul.mubr.msk.f32.vlgmr.msra.gmra.mrb[6].mxu1 %vm720_vm0, %v1545_v28 }
 0x9db   : > { %5366 = vmatpush3.bf16.msra.mxu1 %v5363_v31 }
 0xaad   : > { %v5234_v32 = vpop.f32.mrb[6].mxu1 }
 0xaae   : > { %1637 = vrot.lane.b32.xlu1 %v5234_v32, %s7450_s6  ;;  %v1624_v33 = vpop.f32.mrb[7].mxu1 }
 0xaaf   : > { %1635 = vrot.lane.b32.xlu0 %v1624_v33, %s7450_s6  ;;  %s7480_s6 = smov 4  }
 0xb20   : > { %v1638_v34 = vpop.permute.xlu1 %1637 }
 0xb21   : > { %1643 = vst.msk [vmem:[#allocation2 + $0x8] sm:$0xff] %vm1641_vm5, %v1638_v34  ;;  %v1636_v35 = vpop.permute.xlu0 %1635 }
 0xb22   : > { %1642 = vst.msk [vmem:[#allocation2] sm:$0xff] %vm1641_vm5, %v1636_v35 }
 0xb28   : > { %v1645_v37 = vld [vmem:[#allocation2 + $0x8] sm:$0xff] }
 0xb29   : > { %v1644_v36 = vld [vmem:[#allocation2] sm:$0xff] }
 0xb2a   : > { %5239 = vmatprep.mubr.msk.f32.mxu1 %vm720_vm0, %v1644_v36 }
 0xb2b   : > { %5240 = vmatmul.mubr.msk.f32.vlgmr.msra.gmra.mrb[8].mxu1 %vm720_vm0, %v1645_v37 }
 0xb2c   : > { %5253 = vmatprep.mubr.msk.f32.mxu1 %vm720_vm0, %v706_v56 }
 0xbfe   : > { %v5241_v39 = vpop.f32.mrb[8].mxu1 }
 0xbff   : > { %v1730_v40 = vadd.f32 %v5241_v39, %v4720_v38  ;;  %v1724_v41 = vpop.f32.mrb[9].mxu1 }
 0xc00   : > { %v1725_v42 = vadd.f32 %v4720_v38, %v1724_v41 }
 0xc01   : > { %v1734_v43 = vadd.f32 %v1730_v40, %v6041_v4  ;;  %v1783_v4 = vld [vmem:[%s7430_s10] sm:$0xff] }
 0xc02   : > { %v1733_v44 = vadd.f32 %v1725_v42, %v6039_v3  ;;  %v5371_v55 = vpack.c.bf16 %v1784_v54, %v1783_v4 }
 0xc03   : > { %v1740_v45 = vsel %vm720_vm0, %v1734_v43, 0.0 }
 0xc04   : > { %1741 = vadd.xlane.f32.xlu1 %v1740_v45  ;;  %v1737_v46 = vsel %vm720_vm0, %v1733_v44, 0.0  ;;  %5372 = vmatprep.subr.bf16.mxu1 %v5371_v55 }
 0xc05   : > { %1738 = vadd.xlane.f32.xlu0 %v1737_v46  ;;  %5374 = vmatpush3.bf16.msra.mxu1 %v5371_v55 }
 0xc08   : > { %5254 = vmatmul.mubr.msk.f32.vlgmr.msra.gmra.mrb[10].mxu1 %vm720_vm0, %v707_v57 }
 0xc91   : > { %v1742_v47 = vpop.xlane.xlu1 %1741 }
 0xc92   : > { %v1745_v48 = vmul.f32 0.0625, %v1742_v47  ;;  %v1739_v49 = vpop.xlane.xlu0 %1738 }
 0xc93   : > { %v1744_v50 = vmul.f32 0.0625, %v1739_v49 }
 0xc94   : > { %v1747_v51 = vsub.f32 %v1734_v43, %v1745_v48 }
 0xc95   : > { %v1746_v9 = vsub.f32 %v1733_v44, %v1744_v50 }
 0xc96   : > { %v1749_v53 = vmul.f32 %v1747_v51, %v1747_v51 }
 0xc97   : > { %v1748_v52 = vmul.f32 %v1746_v9, %v1746_v9 }
 0xc98   : > { %v1753_v3 = vsel %vm720_vm0, %v1749_v53, 0.0 }
 0xc99   : > { %v1750_v7 = vsel %vm720_vm0, %v1748_v52, 0.0 }
 0xc9a   : > { %1751 = vadd.xlane.f32.xlu0 %v1750_v7 }
 0xc9e   : > { %1754 = vadd.xlane.f32.xlu0 %v1753_v3 }
 0xcdb   : > { %v5255_v20 = vpop.f32.mrb[10].mxu1 }
 0xcdc   : > { %v1960_v21 = vadd.f32 %v5255_v20, %v4728_v19  ;;  %v1954_v22 = vpop.f32.mrb[11].mxu1 }
 0xcdd   : > { %v1955_v23 = vadd.f32 %v4728_v19, %v1954_v22 }
 0xcdf   : > { %v5375_v10 = vpack.c.bf16 %v1960_v21, %v1955_v23  ;;  %v6210_v24 = vpack.i.bf16 %v1960_v21, %v1955_v23 }
 0xce1   : > { %5377 = vmatprep.subr.msk.bf16.mxu0 %vm6064_vm2, %v5375_v10 }
 0xd27   : > { %v1752_v61 = vpop.xlane.xlu0 %1751 }
 0xd28   : > { %v1756_v62 = vmul.f32 0.0625, %v1752_v61 }
 0xd2a   : > { %v1758_v63 = vadd.f32 1e-05, %v1756_v62 }
 0xd2b   : > { %v1755_v0 = vpop.xlane.xlu0 %1754 }
 0xd2c   : > { %5837 = vrsqrt.f32 %v1758_v63  ;;  %v1757_v1 = vmul.f32 0.0625, %v1755_v0 }
 0xd2e   : > { %v1759_v2 = vadd.f32 1e-05, %v1757_v1 }
 0xd30   : > { %5839 = vrsqrt.f32 %v1759_v2 }
 0xd36   : > { %v5838_v5 = vpop.eup %5837 }
 0xd37   : > { %v1762_v8 = vmul.f32 %v5838_v5, %v1746_v9 }
 0xd39   : > { %v1770_v12 = vmul.f32 %v4723_v6, %v1762_v8 }
 0xd3a   : > { %v5840_v13 = vpop.eup %5839 }
 0xd3b   : > { %v1763_v15 = vmul.f32 %v5840_v13, %v1747_v51  ;;  %v6199_v16 = vadd.f32 %v4724_v11, %v1770_v12 }
 0xd3d   : > { %v1771_v17 = vmul.f32 %v4723_v6, %v1763_v15  ;;  %5246 = vmatprep.mubr.msk.f32.mxu0 %vm720_vm0, %v6199_v16 }
 0xd3f   : > { %v6203_v18 = vadd.f32 %v4724_v11, %v1771_v17 }
 0xd41   : > { %5247 = vmatmul.mubr.msk.f32.vlgmr.msra.gmra.mrb[10].mxu0 %vm720_vm0, %v6203_v18 }
 0xd42   : > { %5380 = vmatpush3.bf16.xpose.msk.msra.mxu0 %vm6064_vm2, %v5375_v10 }
 0xe14   : > { %v5248_v26 = vpop.f32.mrb[10].mxu0 }
 0xe15   : > { %v1867_v27 = vpop.f32.mrb[11].mxu0  ;;  %v6221_v29 = vadd.f32 %v5248_v26, %v4725_v25 }
 0xe16   : > { %v6219_v28 = vadd.f32 %v4725_v25, %v1867_v27 }
 0xe18   : > { %5260 = vmatprep.mubr.msk.f32.mxu0 %vm808_vm1, %v6219_v28 }
 0xe19   : > { %5261 = vmatmul.mubr.msk.f32.vlgmr.msra.gmra.mrb[12].mxu0 %vm808_vm1, %v6221_v29 }
 0xeec   : > { %v5262_v30 = vpop.f32.mrb[12].mxu0 }
 0xeed   : > { %v2051_v31 = vmul.f32 0.5, %v5262_v30  ;;  %v2041_v32 = vpop.f32.mrb[13].mxu0 }
 0xeee   : > { %v2050_v33 = vmul.f32 0.5, %v2041_v32 }
 0xeef   : > { %v2055_v34 = vsel %vm720_vm0, %v2051_v31, -inf }
 0xef0   : > { %2056 = vmax.xlane.f32.xlu0 %v2055_v34  ;;  %v2052_v35 = vsel %vm720_vm0, %v2050_v33, -inf }
 0xef1   : > { %2053 = vmax.xlane.f32.xlu1 %v2052_v35 }
 0xf02   : > { %5771 = vrot.lane.b32.xlu1 %v6210_v24, %s5889_s28  ;;  %s7475_s28 = smov 108  }
 0xf06   : > { %2163 = vrot.lane.b32.xlu1 %v6219_v28, %s5892_s0 }
 0xf7d   : > { %v2057_v36 = vpop.xlane.xlu0 %2056 }
 0xf7e   : > { %v2059_v37 = vsub.f32 %v2051_v31, %v2057_v36  ;;  %v2054_v38 = vpop.xlane.xlu1 %2053 }
 0xf7f   : > { %v2058_v39 = vsub.f32 %v2050_v33, %v2054_v38 }
 0xf80   : > { %v2062_v40 = vmul.f32 1.442695, %v2059_v37 }
 0xf81   : > { %v2060_v41 = vmul.f32 1.442695, %v2058_v39 }
 0xf82   : > { %5841 = vpow2.f32 %v2062_v40  ;;  %v5772_v42 = vpop.permute.xlu1 %5771 }
 0xf83   : > { %5843 = vpow2.f32 %v2060_v41  ;;  %v5774_v43 = vunpack.i.h.bf16 %v5772_v42  ;;  %v5773_v44 = vunpack.i.l.bf16 %v5772_v42 }
 0xf85   : > { %v5381_v45 = vpack.c.bf16 %v5774_v43, %v5773_v44 }
 0xf86   : > { %v2164_v50 = vpop.permute.xlu1 %2163 }
 0xf87   : > { %5382 = vmatprep.subr.bf16.mxu1 %v5381_v45 }
 0xf88   : > { %5384 = vmatpush3.bf16.msra.mxu1 %v5381_v45 }
 0xf8c   : > { %v5842_v46 = vpop.eup %5841 }
 0xf8d   : > { %v5844_v47 = vpop.eup %5843  ;;  %v2067_v48 = vsel %vm720_vm0, %v5842_v46, 0.0 }
 0xf8e   : > { %2068 = vadd.xlane.f32.xlu0 %v2067_v48  ;;  %v2064_v49 = vsel %vm720_vm0, %v5844_v47, 0.0 }
 0xf8f   : > { %2065 = vadd.xlane.f32.xlu1 %v2064_v49 }
 0xfa0   : > { %2165 = vrot.lane.b32.xlu1 %v6221_v29, %s5892_s0 }
 0xfa4   : > { %5776 = vrot.lane.b32.xlu0 %v6210_v24, %s5892_s0  ;;  %s7476_s0 = smov 120  }
0x101b   : > { %v2069_v51 = vpop.xlane.xlu0 %2068 }
0x101c   : > { %5845 = vrcp.f32 %v2069_v51  ;;  %v2066_v9 = vpop.xlane.xlu1 %2065 }
0x101d   : > { %5847 = vrcp.f32 %v2066_v9 }
0x101f   : > { %v5777_v52 = vpop.permute.xlu0 %5776 }
0x1020   : > { %v5779_v7 = vunpack.i.h.bf16 %v5777_v52  ;;  %v5778_v53 = vunpack.i.l.bf16 %v5777_v52  ;;  %v2166_v57 = vpop.permute.xlu1 %2165 }
0x1022   : > { %v5385_v3 = vpack.c.bf16 %v5779_v7, %v5778_v53 }
0x1024   : > { %5387 = vmatprep.subr.msk.bf16.mxu1 %vm6064_vm2, %v5385_v3 }
0x1026   : > { %v5846_v4 = vpop.eup %5845 }
0x1027   : > { %v5848_v54 = vpop.eup %5847  ;;  %v2073_v56 = vmul.f32 %v5846_v4, %v5842_v46 }
0x1028   : > { %v2072_v55 = vmul.f32 %v5848_v54, %v5844_v47 }
0x102a   : > { %5267 = vmatprep.mubr.msk.f32.mxu1 %vm720_vm0, %v2072_v55 }
0x102b   : > { %5268 = vmatmul.mubr.msk.f32.vlgmr.msra.gmra.mrb[12].mxu1 %vm720_vm0, %v2073_v56 }
0x102c   : > { %5390 = vmatpush3.bf16.xpose.msk.msra.mxu1 %vm6064_vm2, %v5385_v3  ;;  %5274 = vmatprep.mubr.msk.f32.mxu1 %vm808_vm1, %v2164_v50 }
0x1033   : > { %5275 = vmatmul.mubr.msk.f32.vlgmr.msra.gmra.mrb[14].mxu1 %vm808_vm1, %v2166_v57 }
0x10fe   : > { %v5269_v58 = vpop.f32.mrb[12].mxu1 }
0x10ff   : > { %2162 = vst.msk [vmem:[#allocation2 + $0x8] sm:$0xff] %vm808_vm1, %v5269_v58  ;;  %v2152_v59 = vpop.f32.mrb[13].mxu1 }
0x1100   : > { %2161 = vst.msk [vmem:[#allocation2] sm:$0xff] %vm808_vm1, %v2152_v59 }
0x1106   : > { %v5276_v60 = vpop.f32.mrb[14].mxu1 }
0x1107   : > { %v2255_v61 = vmul.f32 0.5, %v5276_v60  ;;  %v2245_v62 = vpop.f32.mrb[15].mxu1 }
0x1108   : > { %v2254_v63 = vmul.f32 0.5, %v2245_v62 }
0x1109   : > { %v2259_v0 = vsel %vm720_vm0, %v2255_v61, -inf }
0x110a   : > { %2260 = vmax.xlane.f32.xlu1 %v2259_v0  ;;  %v2256_v1 = vsel %vm720_vm0, %v2254_v63, -inf }
0x110b   : > { %2257 = vmax.xlane.f32.xlu0 %v2256_v1 }
0x111b   : > { %5781 = vrot.lane.b32.xlu1 %v6210_v24, %s7475_s28  ;;  %s7482_s28 = smov 12  }
0x111f   : > { %2375 = vrot.lane.b32.xlu1 %v6219_v28, %s7476_s0 }
0x1123   : > { %2377 = vrot.lane.b32.xlu1 %v6221_v29, %s7476_s0 }
0x1197   : > { %v2261_v2 = vpop.xlane.xlu1 %2260 }
0x1198   : > { %v2263_v5 = vsub.f32 %v2255_v61, %v2261_v2  ;;  %v2258_v6 = vpop.xlane.xlu0 %2257 }
0x1199   : > { %v2262_v8 = vsub.f32 %v2254_v63, %v2258_v6 }
0x119a   : > { %v2266_v11 = vmul.f32 1.442695, %v2263_v5 }
0x119b   : > { %v2264_v12 = vmul.f32 1.442695, %v2262_v8  ;;  %v5782_v13 = vpop.permute.xlu1 %5781 }
0x119c   : > { %5849 = vpow2.f32 %v2266_v11  ;;  %v5784_v15 = vunpack.i.h.bf16 %v5782_v13  ;;  %v5783_v17 = vunpack.i.l.bf16 %v5782_v13 }
0x119d   : > { %5851 = vpow2.f32 %v2264_v12 }
0x119e   : > { %v5391_v19 = vpack.c.bf16 %v5784_v15, %v5783_v17 }
0x119f   : > { %v2376_v36 = vpop.permute.xlu1 %2375 }
0x11a0   : > { %5392 = vmatprep.subr.bf16.mxu0 %v5391_v19 }
0x11a1   : > { %5394 = vmatpush3.bf16.msra.mxu0 %v5391_v19 }
0x11a3   : > { %v2378_v37 = vpop.permute.xlu1 %2377 }
0x11a6   : > { %v5850_v20 = vpop.eup %5849 }
0x11a7   : > { %v2271_v21 = vsel %vm720_vm0, %v5850_v20, 0.0  ;;  %v5852_v22 = vpop.eup %5851 }
0x11a8   : > { %2272 = vadd.xlane.f32.xlu0 %v2271_v21  ;;  %v2268_v23 = vsel %vm720_vm0, %v5852_v22, 0.0 }
0x11ac   : > { %2269 = vadd.xlane.f32.xlu0 %v2268_v23 }
0x11c2   : > { %5786 = vrot.lane.b32.xlu0 %v6210_v24, %s7476_s0 }
0x1235   : > { %v2273_v10 = vpop.xlane.xlu0 %2272 }
0x1236   : > { %5853 = vrcp.f32 %v2273_v10 }
0x1239   : > { %v2270_v25 = vpop.xlane.xlu0 %2269 }
0x123a   : > { %5855 = vrcp.f32 %v2270_v25 }
0x123d   : > { %v5787_v26 = vpop.permute.xlu0 %5786 }
0x123e   : > { %v5789_v27 = vunpack.i.h.bf16 %v5787_v26  ;;  %v5788_v30 = vunpack.i.l.bf16 %v5787_v26 }
0x1240   : > { %v5395_v31 = vpack.c.bf16 %v5789_v27, %v5788_v30  ;;  %v5854_v32 = vpop.eup %5853 }
0x1241   : > { %v2277_v35 = vmul.f32 %v5854_v32, %v5850_v20 }
0x1242   : > { %5397 = vmatprep.subr.msk.bf16.mxu0 %vm6064_vm2, %v5395_v31 }
0x1244   : > { %v5856_v33 = vpop.eup %5855 }
0x1245   : > { %v2276_v34 = vmul.f32 %v5856_v33, %v5852_v22 }
0x1247   : > { %5281 = vmatprep.mubr.msk.f32.mxu0 %vm720_vm0, %v2276_v34 }
0x1248   : > { %5282 = vmatmul.mubr.msk.f32.vlgmr.msra.gmra.mrb[14].mxu0 %vm720_vm0, %v2277_v35 }
0x1249   : > { %5400 = vmatpush3.bf16.xpose.msk.msra.mxu0 %vm6064_vm2, %v5395_v31  ;;  %5288 = vmatprep.mubr.msk.f32.mxu0 %vm808_vm1, %v2376_v36 }
0x1250   : > { %5289 = vmatmul.mubr.msk.f32.vlgmr.msra.gmra.mrb[16].mxu0 %vm808_vm1, %v2378_v37 }
0x131b   : > { %v6269_v38 = vpop.f32.mrb[14].mxu0 }
0x131c   : > { %v6271_v39 = vpop.f32.mrb[15].mxu0 }
0x1323   : > { %v5290_v40 = vpop.f32.mrb[16].mxu0 }
0x1324   : > { %v2467_v41 = vmul.f32 0.5, %v5290_v40  ;;  %v2457_v42 = vpop.f32.mrb[17].mxu0 }
0x1325   : > { %v2466_v43 = vmul.f32 0.5, %v2457_v42  ;;  %v1786_v42 = vld [vmem:[%s7432_s12] sm:$0xff] }
0x1326   : > { %v2471_v44 = vsel %vm720_vm0, %v2467_v41, -inf }
0x1327   : > { %2472 = vmax.xlane.f32.xlu1 %v2471_v44  ;;  %v2468_v45 = vsel %vm720_vm0, %v2466_v43, -inf }
0x1328   : > { %2469 = vmax.xlane.f32.xlu0 %v2468_v45 }
0x1338   : > { %5791 = vrot.lane.b32.xlu1 %v6210_v24, %s7477_s5 }
0x133c   : > { %2587 = vrot.lane.b32.xlu1 %v6219_v28, %s7478_s24 }
0x1340   : > { %2589 = vrot.lane.b32.xlu1 %v6221_v29, %s7478_s24 }
0x13b4   : > { %v2473_v46 = vpop.xlane.xlu1 %2472 }
0x13b5   : > { %v2475_v47 = vsub.f32 %v2467_v41, %v2473_v46  ;;  %v2470_v48 = vpop.xlane.xlu0 %2469 }
0x13b6   : > { %v2474_v49 = vsub.f32 %v2466_v43, %v2470_v48  ;;  %v1787_v43 = vld [vmem:[%s7432_s12 + $0x8] sm:$0xff] }
0x13b7   : > { %v2478_v50 = vmul.f32 1.442695, %v2475_v47  ;;  %v5415_v44 = vpack.c.bf16 %v1787_v43, %v1786_v42  ;;  %v2959_v43 = vld [vmem:[%s7436_s16 + $0xc8] sm:$0xff] }
0x13b8   : > { %v2476_v51 = vmul.f32 1.442695, %v2474_v49  ;;  %v5792_v9 = vpop.permute.xlu1 %5791 }
0x13b9   : > { %5857 = vpow2.f32 %v2478_v50  ;;  %v5794_v52 = vunpack.i.h.bf16 %v5792_v9  ;;  %v5793_v7 = vunpack.i.l.bf16 %v5792_v9 }
0x13ba   : > { %5859 = vpow2.f32 %v2476_v51  ;;  %v4755_v51 = vld [vmem:[%s7433_s13] ss:$0 sm:$0xff] }
0x13bb   : > { %v5401_v53 = vpack.c.bf16 %v5794_v52, %v5793_v7 }
0x13bc   : > { %v2588_v0 = vpop.permute.xlu1 %2587 }
0x13bd   : > { %5402 = vmatprep.subr.bf16.mxu1 %v5401_v53 }
0x13be   : > { %5404 = vmatpush3.bf16.msra.mxu1 %v5401_v53 }
0x13c0   : > { %v2590_v1 = vpop.permute.xlu1 %2589 }
0x13c3   : > { %v5858_v3 = vpop.eup %5857 }
0x13c4   : > { %v2483_v28 = vsel %vm720_vm0, %v5858_v3, 0.0  ;;  %v5860_v4 = vpop.eup %5859 }
0x13c5   : > { %2484 = vadd.xlane.f32.xlu0 %v2483_v28  ;;  %v2480_v29 = vsel %vm720_vm0, %v5860_v4, 0.0 }
0x13c9   : > { %2481 = vadd.xlane.f32.xlu0 %v2480_v29 }
0x13df   : > { %5796 = vrot.lane.b32.xlu0 %v6210_v24, %s7478_s24 }
0x1452   : > { %v2485_v54 = vpop.xlane.xlu0 %2484 }
0x1453   : > { %5861 = vrcp.f32 %v2485_v54 }
0x1456   : > { %v2482_v55 = vpop.xlane.xlu0 %2481 }
0x1457   : > { %5863 = vrcp.f32 %v2482_v55 }
0x145a   : > { %v5797_v56 = vpop.permute.xlu0 %5796 }
0x145b   : > { %v5799_v57 = vunpack.i.h.bf16 %v5797_v56  ;;  %v5798_v58 = vunpack.i.l.bf16 %v5797_v56 }
0x145d   : > { %v5405_v59 = vpack.c.bf16 %v5799_v57, %v5798_v58  ;;  %v5862_v60 = vpop.eup %5861 }
0x145e   : > { %v2489_v63 = vmul.f32 %v5862_v60, %v5858_v3 }
0x145f   : > { %5407 = vmatprep.subr.msk.bf16.mxu1 %vm6064_vm2, %v5405_v59 }
0x1461   : > { %v5864_v61 = vpop.eup %5863 }
0x1462   : > { %v2488_v62 = vmul.f32 %v5864_v61, %v5860_v4 }
0x1464   : > { %5295 = vmatprep.mubr.msk.f32.mxu1 %vm720_vm0, %v2488_v62 }
0x1465   : > { %5296 = vmatmul.mubr.msk.f32.vlgmr.msra.gmra.mrb[16].mxu1 %vm720_vm0, %v2489_v63  ;;  %v2951_v63 = vld [vmem:[%s7436_s16 + $0x88] sm:$0xff] }
0x1466   : > { %5410 = vmatpush3.bf16.xpose.msk.msra.mxu1 %vm6064_vm2, %v5405_v59  ;;  %5302 = vmatprep.mubr.msk.f32.mxu1 %vm808_vm1, %v2588_v0  ;;  %v2937_v0 = vld [vmem:[%s7436_s16 + $0x18] sm:$0xff] }
0x146d   : > { %5303 = vmatmul.mubr.msk.f32.vlgmr.msra.gmra.mrb[18].mxu1 %vm808_vm1, %v2590_v1 }
0x1538   : > { %v5297_v2 = vpop.f32.mrb[16].mxu1 }
0x1539   : > { %v2568_v5 = vpop.f32.mrb[17].mxu1 }
0x1540   : > { %v5304_v6 = vpop.f32.mrb[18].mxu1 }
0x1541   : > { %v2679_v8 = vmul.f32 0.5, %v5304_v6  ;;  %v2669_v11 = vpop.f32.mrb[19].mxu1  ;;  %v2953_v6 = vld [vmem:[%s7436_s16 + $0x98] sm:$0xff] }
0x1542   : > { %v2678_v12 = vmul.f32 0.5, %v2669_v11  ;;  %v5423_v11 = vpack.c.bf16 %v2953_v6, %v2937_v0  ;;  %v3017_v0 = vld [vmem:[%s7438_s18 + $0x188] sm:$0xff] }
0x1543   : > { %v2683_v13 = vsel %vm720_vm0, %v2679_v8, -inf }
0x1544   : > { %2684 = vmax.xlane.f32.xlu1 %v2683_v13  ;;  %v2680_v15 = vsel %vm720_vm0, %v2678_v12, -inf  ;;  %v2952_v13 = vld [vmem:[%s7436_s16 + $0x90] sm:$0xff] }
0x1545   : > { %2681 = vmax.xlane.f32.xlu0 %v2680_v15 }
0x1555   : > { %5801 = vrot.lane.b32.xlu1 %v6210_v24, %s7479_s30 }
0x1559   : > { %2369 = vrot.lane.b32.xlu1 %v6269_v38, %s7480_s6 }
0x155d   : > { %2579 = vrot.lane.b32.xlu1 %v2568_v5, %s7481_s25  ;;  %v2950_v5 = vld [vmem:[%s7436_s16 + $0x80] sm:$0xff] }
0x15d1   : > { %v2685_v14 = vpop.xlane.xlu1 %2684 }
0x15d2   : > { %v2687_v17 = vsub.f32 %v2679_v8, %v2685_v14  ;;  %v2682_v19 = vpop.xlane.xlu0 %2681  ;;  %v5903_v14 = vmov 0.0  }
0x15d3   : > { %v2686_v20 = vsub.f32 %v2678_v12, %v2682_v19  ;;  %v2936_v12 = vld [vmem:[%s7436_s16 + $0x10] sm:$0xff]  ;;  %3377 = vmatprep.mubr.f32.mxu1 %v5903_v14  ;;  %v2955_v19 = vld [vmem:[%s7436_s16 + $0xa8] sm:$0xff] }
0x15d4   : > { %v2690_v21 = vmul.f32 1.442695, %v2687_v17  ;;  %v5425_v15 = vpack.c.bf16 %v2952_v13, %v2936_v12  ;;  %v2939_v17 = vld [vmem:[%s7436_s16 + $0x28] sm:$0xff]  ;;  %v3000_v12 = vld [vmem:[%s7438_s18 + $0x100] sm:$0xff] }
0x15d5   : > { %v2688_v22 = vmul.f32 1.442695, %v2686_v20  ;;  %v5802_v23 = vpop.permute.xlu1 %5801  ;;  %v2941_v20 = vld [vmem:[%s7436_s16 + $0x38] sm:$0xff]  ;;  %v3001_v13 = vld [vmem:[%s7438_s18 + $0x108] sm:$0xff] }
0x15d6   : > { %v5804_v10 = vunpack.i.h.bf16 %v5802_v23  ;;  %v5803_v25 = vunpack.i.l.bf16 %v5802_v23 }
0x15d7   : > { %5865 = vpow2.f32 %v2688_v22  ;;  %v2957_v22 = vld [vmem:[%s7436_s16 + $0xb8] sm:$0xff] }
0x15d8   : > { %v5411_v26 = vpack.c.bf16 %v5804_v10, %v5803_v25  ;;  %5867 = vpow2.f32 %v2690_v21  ;;  %v5427_v21 = vpack.c.bf16 %v2955_v19, %v2939_v17  ;;  %v5431_v23 = vpack.c.bf16 %v2957_v22, %v2941_v20  ;;  %v2987_v17 = vld [vmem:[%s7438_s18 + $0x98] sm:$0xff]  ;;  %v3018_v19 = vld [vmem:[%s7438_s18 + $0x190] sm:$0xff] }
0x15d9   : > { %v2370_v27 = vpop.permute.xlu1 %2369  ;;  %v3019_v20 = vld [vmem:[%s7438_s18 + $0x198] sm:$0xff]  ;;  %v5485_v22 = vpack.c.bf16 %v3001_v13, %v3000_v12  ;;  %v2996_v12 = vld [vmem:[%s7438_s18 + $0xe0] sm:$0xff]  ;;  %v2997_v13 = vld [vmem:[%s7438_s18 + $0xe8] sm:$0xff] }
0x15da   : > { %2374 = vst.msk [vmem:[#allocation2 + $0x8] sm:$0xff] %vm1215_vm3, %v2370_v27  ;;  %5412 = vmatprep.subr.bf16.mxu0 %v5411_v26 }
0x15db   : > { %5414 = vmatpush3.bf16.msra.mxu0 %v5411_v26 }
0x15dc   : > { %5416 = vmatprep.subr.bf16.mxu0 %v5415_v44 }
0x15dd   : > { %v2580_v36 = vpop.permute.xlu1 %2579 }
0x15e1   : > { %v5866_v24 = vpop.eup %5865 }
0x15e2   : > { %v2692_v30 = vsel %vm720_vm0, %v5866_v24, 0.0  ;;  %v5868_v31 = vpop.eup %5867 }
0x15e3   : > { %2693 = vadd.xlane.f32.xlu0 %v2692_v30  ;;  %v2695_v32 = vsel %vm720_vm0, %v5868_v31, 0.0 }
0x15e7   : > { %2696 = vadd.xlane.f32.xlu0 %v2695_v32 }
0x15fd   : > { %2367 = vrot.lane.b32.xlu0 %v6271_v39, %s7480_s6 }
0x1601   : > { %2581 = vrot.lane.b32.xlu0 %v5297_v2, %s7481_s25  ;;  %v2934_v2 = vld [vmem:[%s7436_s16] sm:$0xff]  ;;  %s703_s25 = scalar_lea.vmem %s7442_s22, %s6033_s1 }
0x1602   : > { %v5421_v8 = vpack.c.bf16 %v2950_v5, %v2934_v2 }
0x1670   : > { %v2694_v33 = vpop.xlane.xlu0 %2693 }
0x1671   : > { %5869 = vrcp.f32 %v2694_v33  ;;  %v4758_v33 = vld [vmem:[%s7434_s14] ss:$0 sm:$0xff] }
0x1674   : > { %v2697_v34 = vpop.xlane.xlu0 %2696 }
0x1675   : > { %5871 = vrcp.f32 %v2697_v34  ;;  %v4759_v34 = vld [vmem:[%s7435_s15] ss:$0 sm:$0xff] }
0x1678   : > { %v2368_v35 = vpop.permute.xlu0 %2367 }
0x1679   : > { %2373 = vst.msk [vmem:[#allocation2] sm:$0xff] %vm1215_vm3, %v2368_v35 }
0x167a   : > { %2585 = vst.msk [vmem:[#allocation2] sm:$0xff] %vm1428_vm4, %v2580_v36 }
0x167b   : > { %v5870_v37 = vpop.eup %5869 }
0x167c   : > { %v2582_v38 = vpop.permute.xlu0 %2581  ;;  %v2700_v40 = vmul.f32 %v5870_v37, %v5866_v24  ;;  %v2938_v37 = vld [vmem:[%s7436_s16 + $0x20] sm:$0xff] }
0x167d   : > { %2586 = vst.msk [vmem:[#allocation2 + $0x8] sm:$0xff] %vm1428_vm4, %v2582_v38  ;;  %v2954_v38 = vld [vmem:[%s7436_s16 + $0xa0] sm:$0xff] }
0x167e   : > { %5309 = vmatprep.mubr.msk.f32.mxu0 %vm720_vm0, %v2700_v40  ;;  %v2940_v40 = vld [vmem:[%s7436_s16 + $0x30] sm:$0xff] }
0x167f   : > { %v5872_v39 = vpop.eup %5871 }
0x1680   : > { %v2701_v41 = vmul.f32 %v5872_v39, %v5868_v31  ;;  %v2956_v39 = vld [vmem:[%s7436_s16 + $0xb0] sm:$0xff] }
0x1682   : > { %5310 = vmatmul.mubr.msk.f32.vlgmr.msra.gmra.mrb[18].mxu0 %vm720_vm0, %v2701_v41  ;;  %v2943_v41 = vld [vmem:[%s7436_s16 + $0x48] sm:$0xff] }
0x1683   : > { %5418 = vmatpush3.bf16.msra.mxu0 %v5415_v44  ;;  %v2945_v44 = vld [vmem:[%s7436_s16 + $0x58] sm:$0xff] }
0x1684   : > { %5424 = vmatprep.subr.bf16.mxu0 %v5423_v11  ;;  %v2969_v11 = vld [vmem:[%s7438_s18 + $0x8] sm:$0xff] }
0x1755   : > { %v5311_v45 = vpop.f32.mrb[18].mxu0 }
0x1756   : > { %2793 = vrot.lane.b32.xlu0 %v5311_v45, %s7482_s28  ;;  %v2780_v46 = vpop.f32.mrb[19].mxu0  ;;  %v2961_v45 = vld [vmem:[%s7436_s16 + $0xd8] sm:$0xff] }
0x1757   : > { %2791 = vrot.lane.b32.xlu1 %v2780_v46, %s7482_s28 }
0x17c8   : > { %v2794_v47 = vpop.permute.xlu0 %2793 }
0x17c9   : > { %2798 = vst.msk [vmem:[#allocation2 + $0x8] sm:$0xff] %vm1641_vm5, %v2794_v47  ;;  %v2792_v48 = vpop.permute.xlu1 %2791 }
0x17ca   : > { %2797 = vst.msk [vmem:[#allocation2] sm:$0xff] %vm1641_vm5, %v2792_v48  ;;  %v5429_v48 = vpack.c.bf16 %v2954_v38, %v2938_v37  ;;  %v2973_v37 = vld [vmem:[%s7438_s18 + $0x28] sm:$0xff] }
0x17d0   : > { %v2800_v50 = vld [vmem:[#allocation2 + $0x8] sm:$0xff] }
0x17d1   : > { %v2799_v49 = vld [vmem:[#allocation2] sm:$0xff] }
0x17d2   : > { %5316 = vmatprep.mubr.msk.f32.mxu0 %vm720_vm0, %v2799_v49  ;;  %v5433_v49 = vpack.c.bf16 %v2956_v39, %v2940_v40  ;;  %v3005_v39 = vld [vmem:[%s7438_s18 + $0x128] sm:$0xff] }
0x17d3   : > { %5317 = vmatmul.mubr.msk.f32.vlgmr.msra.gmra.mrb[20].mxu0 %vm720_vm0, %v2800_v50  ;;  %v5435_v50 = vpack.c.bf16 %v2959_v43, %v2943_v41  ;;  %v2990_v41 = vld [vmem:[%s7438_s18 + $0xb0] sm:$0xff] }
0x17d4   : > { %5426 = vmatpush1.bf16.msra.mxu0 %v5425_v15  ;;  %3454 = vmatprep.mubr.f32.mxu0 %v5903_v14  ;;  %v2986_v15 = vld [vmem:[%s7438_s18 + $0x90] sm:$0xff] }
0x17d5   : > { %5432 = vmatprep.subr.bf16.mxu0 %v5431_v23  ;;  %v2970_v23 = vld [vmem:[%s7438_s18 + $0x10] sm:$0xff] }
0x17d6   : > { %v3022_v43 = vld [vmem:[%s7438_s18 + $0x1b0] sm:$0xff] }
0x18a6   : > { %v5318_v9 = vpop.f32.mrb[20].mxu0 }
0x18a7   : > { %v2885_v52 = vadd.f32 %v5318_v9, %v4755_v51  ;;  %v2879_v7 = vpop.f32.mrb[21].mxu0 }
0x18a8   : > { %v2880_v53 = vadd.f32 %v4755_v51, %v2879_v7  ;;  %v5439_v51 = vpack.c.bf16 %v2961_v45, %v2945_v44  ;;  %v2958_v7 = vld [vmem:[%s7436_s16 + $0xc0] sm:$0xff]  ;;  %v3023_v44 = vld [vmem:[%s7438_s18 + $0x1b8] sm:$0xff] }
0x18a9   : > { %v2889_v3 = vadd.f32 %v2885_v52, %v6203_v18  ;;  %v2942_v52 = vld [vmem:[%s7436_s16 + $0x40] sm:$0xff] }
0x18aa   : > { %v2888_v28 = vadd.f32 %v2880_v53, %v6199_v16  ;;  %v2935_v16 = vld [vmem:[%s7436_s16 + $0x8] sm:$0xff]  ;;  %v2944_v53 = vld [vmem:[%s7436_s16 + $0x50] sm:$0xff] }
0x18ab   : > { %v2895_v4 = vsel %vm720_vm0, %v2889_v3, 0.0  ;;  %v5419_v1 = vpack.c.bf16 %v2951_v63, %v2935_v16  ;;  %v2985_v16 = vld [vmem:[%s7438_s18 + $0x88] sm:$0xff]  ;;  %v3016_v63 = vld [vmem:[%s7438_s18 + $0x180] sm:$0xff] }
0x18ac   : > { %2896 = vadd.xlane.f32.xlu0 %v2895_v4  ;;  %v2892_v29 = vsel %vm720_vm0, %v2888_v28, 0.0  ;;  %v2963_v4 = vld [vmem:[%s7436_s16 + $0xe8] sm:$0xff]  ;;  %v5483_v6 = vpack.c.bf16 %v3017_v0, %v3016_v63 }
0x18ad   : > { %2893 = vadd.xlane.f32.xlu1 %v2892_v29  ;;  %5420 = vmatprep.subr.bf16.mxu1 %v5419_v1  ;;  %v2949_v29 = vld [vmem:[%s7436_s16 + $0x78] sm:$0xff] }
0x18ae   : > { %5422 = vmatpush1.bf16.msra.mxu1 %v5421_v8  ;;  %v2968_v8 = vld [vmem:[%s7438_s18] sm:$0xff] }
0x18af   : > { %5428 = vmatprep.subr.bf16.mxu1 %v5427_v21  ;;  %v5453_v21 = vpack.c.bf16 %v2969_v11, %v2968_v8  ;;  %v3010_v8 = vld [vmem:[%s7438_s18 + $0x150] sm:$0xff]  ;;  %v3011_v11 = vld [vmem:[%s7438_s18 + $0x158] sm:$0xff] }
0x1939   : > { %v2897_v54 = vpop.xlane.xlu0 %2896 }
0x193a   : > { %v2899_v55 = vmul.f32 0.0625, %v2897_v54  ;;  %v2894_v56 = vpop.xlane.xlu1 %2893  ;;  %v2965_v54 = vld [vmem:[%s7436_s16 + $0xf8] sm:$0xff] }
0x193b   : > { %v2898_v57 = vmul.f32 0.0625, %v2894_v56 }
0x193c   : > { %v2901_v58 = vsub.f32 %v2889_v3, %v2899_v55  ;;  %v2960_v3 = vld [vmem:[%s7436_s16 + $0xd0] sm:$0xff]  ;;  %v5437_v55 = vpack.c.bf16 %v2958_v7, %v2942_v52  ;;  %v3007_v7 = vld [vmem:[%s7438_s18 + $0x138] sm:$0xff] }
0x193d   : > { %v2900_v59 = vsub.f32 %v2888_v28, %v2898_v57  ;;  %v2947_v28 = vld [vmem:[%s7436_s16 + $0x68] sm:$0xff]  ;;  %v5441_v56 = vpack.c.bf16 %v2960_v3, %v2944_v53  ;;  %v3006_v52 = vld [vmem:[%s7438_s18 + $0x130] sm:$0xff]  ;;  %v2992_v53 = vld [vmem:[%s7438_s18 + $0xc0] sm:$0xff] }
0x193e   : > { %v2903_v60 = vmul.f32 %v2901_v58, %v2901_v58  ;;  %v5443_v57 = vpack.c.bf16 %v2963_v4, %v2947_v28  ;;  %v2993_v3 = vld [vmem:[%s7438_s18 + $0xc8] sm:$0xff]  ;;  %v3024_v28 = vld [vmem:[%s7438_s18 + $0x1c0] sm:$0xff] }
0x193f   : > { %v2902_v61 = vmul.f32 %v2900_v59, %v2900_v59  ;;  %v3025_v4 = vld [vmem:[%s7438_s18 + $0x1c8] sm:$0xff] }
0x1940   : > { %v2907_v62 = vsel %vm720_vm0, %v2903_v60, 0.0  ;;  %v2962_v60 = vld [vmem:[%s7436_s16 + $0xe0] sm:$0xff] }
0x1941   : > { %2908 = vadd.xlane.f32.xlu1 %v2907_v62  ;;  %v2904_v18 = vsel %vm720_vm0, %v2902_v61, 0.0  ;;  %v2948_v61 = vld [vmem:[%s7436_s16 + $0x70] sm:$0xff] }
0x1942   : > { %2905 = vadd.xlane.f32.xlu0 %v2904_v18  ;;  %v2964_v62 = vld [vmem:[%s7436_s16 + $0xf0] sm:$0xff]  ;;  %v2984_v18 = vld [vmem:[%s7438_s18 + $0x80] sm:$0xff] }
0x1943   : > { %v5449_v2 = vpack.c.bf16 %v2964_v62, %v2948_v61  ;;  %v5451_v5 = vpack.c.bf16 %v2985_v16, %v2984_v18  ;;  %v2994_v61 = vld [vmem:[%s7438_s18 + $0xd0] sm:$0xff]  ;;  %v2995_v62 = vld [vmem:[%s7438_s18 + $0xd8] sm:$0xff] }
0x1944   : > { %v3026_v18 = vld [vmem:[%s7438_s18 + $0x1d0] sm:$0xff]  ;;  %v3027_v16 = vld [vmem:[%s7438_s18 + $0x1d8] sm:$0xff] }
0x19ce   : > { %v2909_v10 = vpop.xlane.xlu1 %2908 }
0x19cf   : > { %v2911_v25 = vmul.f32 0.0625, %v2909_v10  ;;  %v2906_v26 = vpop.xlane.xlu0 %2905  ;;  %v2971_v10 = vld [vmem:[%s7438_s18 + $0x18] sm:$0xff] }
0x19d0   : > { %v2910_v27 = vmul.f32 0.0625, %v2906_v26  ;;  %v5487_v26 = vpack.c.bf16 %v3019_v20, %v3018_v19  ;;  %v5505_v20 = vpack.c.bf16 %v3011_v11, %v3010_v8 }
0x19d1   : > { %v2913_v24 = vadd.f32 1e-05, %v2911_v25  ;;  %v5455_v25 = vpack.c.bf16 %v2987_v17, %v2986_v15  ;;  %v3028_v15 = vld [vmem:[%s7438_s18 + $0x1e0] sm:$0xff]  ;;  %v3029_v17 = vld [vmem:[%s7438_s18 + $0x1e8] sm:$0xff] }
0x19d2   : > { %v2912_v30 = vadd.f32 1e-05, %v2910_v27  ;;  %v3002_v27 = vld [vmem:[%s7438_s18 + $0x110] sm:$0xff] }
0x19d3   : > { %5873 = vrsqrt.f32 %v2913_v24  ;;  %v3003_v24 = vld [vmem:[%s7438_s18 + $0x118] sm:$0xff] }
0x19d4   : > { %5875 = vrsqrt.f32 %v2912_v30  ;;  %v2988_v30 = vld [vmem:[%s7438_s18 + $0xa0] sm:$0xff] }
0x19dd   : > { %v5874_v31 = vpop.eup %5873 }
0x19de   : > { %v5876_v32 = vpop.eup %5875  ;;  %v2917_v35 = vmul.f32 %v5874_v31, %v2901_v58  ;;  %v5447_v58 = vpack.c.bf16 %v2965_v54, %v2949_v29  ;;  %v2989_v31 = vld [vmem:[%s7438_s18 + $0xa8] sm:$0xff]  ;;  %v5497_v54 = vpack.c.bf16 %v3007_v7, %v3006_v52  ;;  %v6697_v52 = vld [vmem:[%s7437_s17] sm:$0xff] }
0x19df   : > { %v2916_v36 = vmul.f32 %v5876_v32, %v2900_v59  ;;  %v2946_v59 = vld [vmem:[%s7436_s16 + $0x60] sm:$0xff]  ;;  %v5459_v38 = vpack.c.bf16 %v2989_v31, %v2988_v30  ;;  %v2998_v30 = vld [vmem:[%s7438_s18 + $0xf0] sm:$0xff]  ;;  %v2999_v31 = vld [vmem:[%s7438_s18 + $0xf8] sm:$0xff] }
0x19e0   : > { %v2925_v46 = vmul.f32 %v4758_v33, %v2917_v35  ;;  %v5445_v1 = vpack.c.bf16 %v2962_v60, %v2946_v59  ;;  %v3020_v32 = vld [vmem:[%s7438_s18 + $0x1a0] sm:$0xff]  ;;  %v5489_v35 = vpack.c.bf16 %v3003_v24, %v3002_v27  ;;  %v3009_v60 = vld [vmem:[%s7438_s18 + $0x148] sm:$0xff] }
0x19e1   : > { %v2924_v42 = vmul.f32 %v4758_v33, %v2916_v36  ;;  %v3021_v33 = vld [vmem:[%s7438_s18 + $0x1a8] sm:$0xff]  ;;  %v2972_v36 = vld [vmem:[%s7438_s18 + $0x20] sm:$0xff] }
0x19e2   : > { %v6408_v9 = vadd.f32 %v4759_v34, %v2925_v46  ;;  %v5491_v40 = vpack.c.bf16 %v3021_v33, %v3020_v32  ;;  %v5461_v45 = vpack.c.bf16 %v2973_v37, %v2972_v36  ;;  %v3008_v59 = vld [vmem:[%s7438_s18 + $0x140] sm:$0xff]  ;;  %v3030_v32 = vld [vmem:[%s7438_s18 + $0x1f0] sm:$0xff]  ;;  %v5479_v33 = vpack.c.bf16 %v2999_v31, %v2998_v30  ;;  %v2983_v36 = vld [vmem:[%s7438_s18 + $0x78] sm:$0xff] }
0x19e3   : > { %v6400_v47 = vadd.f32 %v4759_v34, %v2924_v42  ;;  %v5457_v34 = vpack.c.bf16 %v2971_v10, %v2970_v23  ;;  %v2991_v42 = vld [vmem:[%s7438_s18 + $0xb8] sm:$0xff]  ;;  %v5501_v0 = vpack.c.bf16 %v3009_v60, %v3008_v59  ;;  %v5507_v23 = vpack.c.bf16 %v3029_v17, %v3028_v15  ;;  %v2981_v10 = vld [vmem:[%s7438_s18 + $0x68] sm:$0xff]  ;;  %v3064_v59 = vld [vmem:[%s7438_s18 + $0x300] sm:$0xff] }
0x19e4   : > { %v3065_v60 = vld [vmem:[%s7438_s18 + $0x308] sm:$0xff]  ;;  %v3034_v15 = vld [vmem:[%s7438_s18 + $0x210] sm:$0xff] }
0x19e5   : > { %4760 = vmatmul.mubr.msk.f32.vlgmr.msra.gmra.mrb[20].mxu1 %vm720_vm0, %v6400_v47  ;;  %4762 = vmatmul.mubr.msk.f32.vlgmr.msra.gmra.mrb[22].mxu0 %vm720_vm0, %v6400_v47 }
0x19e6   : > { %3383 = vmatprep.mubr.f32.mxu1 %v5903_v14  ;;  %3460 = vmatprep.mubr.f32.mxu0 %v5903_v14 }
0x19e7   : > { %5430 = vmatpush1.bf16.msra.mxu1 %v5429_v48  ;;  %5434 = vmatpush1.bf16.msra.mxu0 %v5433_v49  ;;  %v2974_v48 = vld [vmem:[%s7438_s18 + $0x30] sm:$0xff]  ;;  %v2975_v49 = vld [vmem:[%s7438_s18 + $0x38] sm:$0xff] }
0x19e8   : > { %5436 = vmatprep.subr.bf16.mxu1 %v5435_v50  ;;  %5440 = vmatprep.subr.bf16.mxu0 %v5439_v51  ;;  %v5463_v50 = vpack.c.bf16 %v2991_v42, %v2990_v41  ;;  %v5495_v51 = vpack.c.bf16 %v3023_v44, %v3022_v43  ;;  %v5465_v29 = vpack.c.bf16 %v2975_v49, %v2974_v48  ;;  %v3048_v41 = vld [vmem:[%s7438_s18 + $0x280] sm:$0xff]  ;;  %v3049_v42 = vld [vmem:[%s7438_s18 + $0x288] sm:$0xff]  ;;  %v3227_v48 = vlaneseq }
0x19e9   : > { %4761 = vmatmul.mubr.msk.f32.gmra.mrb[22].mxu1 %vm720_vm0, %v6408_v9  ;;  %4763 = vmatmul.mubr.msk.f32.gmra.mrb[24].mxu0 %vm720_vm0, %v6408_v9  ;;  %v3080_v43 = vld [vmem:[%s7438_s18 + $0x380] sm:$0xff]  ;;  %v5515_v44 = vpack.c.bf16 %v3049_v42, %v3048_v41  ;;  %v3037_v41 = vld [vmem:[%s7438_s18 + $0x228] sm:$0xff] }
0x19ea   : > { %3531 = vmatprep.mubr.f32.mxu1 %v5903_v14  ;;  %3608 = vmatprep.mubr.f32.mxu0 %v5903_v14  ;;  %v6690_v49 = vshrl.u32 %v3227_v48, 7 }
0x19ec   : > { %v3233_v7 = vsub.s32 1, %v6690_v49  ;;  %v3257_v8 = vsub.s32 7, %v6690_v49 }
0x19ed   : > { %4764 = vmatmul.mubr.msk.f32.vlgmr.msra.gmra.mrb[24].mxu1 %vm720_vm0, %v6400_v47  ;;  %4766 = vmatmul.mubr.msk.f32.vlgmr.msra.gmra.mrb[26].mxu0 %vm720_vm0, %v6400_v47 }
0x19ee   : > { %3537 = vmatprep.mubr.f32.mxu1 %v5903_v14  ;;  %3614 = vmatprep.mubr.f32.mxu0 %v5903_v14 }
0x19ef   : > { %5438 = vmatpush1.bf16.msra.mxu1 %v5437_v55  ;;  %5442 = vmatpush1.bf16.msra.mxu0 %v5441_v56  ;;  %v2976_v55 = vld [vmem:[%s7438_s18 + $0x40] sm:$0xff]  ;;  %v2977_v56 = vld [vmem:[%s7438_s18 + $0x48] sm:$0xff] }
0x19f0   : > { %5444 = vmatprep.subr.bf16.mxu1 %v5443_v57  ;;  %5448 = vmatprep.subr.bf16.mxu0 %v5447_v58  ;;  %v5467_v57 = vpack.c.bf16 %v2993_v3, %v2992_v53  ;;  %v5499_v58 = vpack.c.bf16 %v3025_v4, %v3024_v28  ;;  %v5469_v63 = vpack.c.bf16 %v2977_v56, %v2976_v55  ;;  %v3241_v53 = vsub.s32 3, %v6690_v49  ;;  %v3033_v55 = vld [vmem:[%s7438_s18 + $0x208] sm:$0xff] }
0x19f1   : > { %4765 = vmatmul.mubr.msk.f32.gmra.mrb[26].mxu1 %vm720_vm0, %v6408_v9  ;;  %4767 = vmatmul.mubr.msk.f32.gmra.mrb[28].mxu0 %vm720_vm0, %v6408_v9  ;;  %v3234_v4 = vrot.slane %v6697_v52, %v3233_v7  ;;  %v3249_v56 = vsub.s32 5, %v6690_v49 }
0x19f2   : > { %3685 = vmatprep.mubr.f32.mxu1 %v5903_v14  ;;  %3762 = vmatprep.mubr.f32.mxu0 %v5903_v14 }
0x19f5   : > { %4768 = vmatmul.mubr.msk.f32.vlgmr.msra.gmra.mrb[28].mxu1 %vm720_vm0, %v6400_v47  ;;  %4770 = vmatmul.mubr.msk.f32.vlgmr.msra.gmra.mrb[30].mxu0 %vm720_vm0, %v6400_v47 }
0x19f6   : > { %3691 = vmatprep.mubr.f32.mxu1 %v5903_v14  ;;  %3768 = vmatprep.mubr.f32.mxu0 %v5903_v14 }
0x19f7   : > { %5446 = vmatpush1.bf16.msra.mxu1 %v5445_v1  ;;  %5450 = vmatpush1.bf16.msra.mxu0 %v5449_v2  ;;  %v2978_v1 = vld [vmem:[%s7438_s18 + $0x50] sm:$0xff]  ;;  %v2979_v2 = vld [vmem:[%s7438_s18 + $0x58] sm:$0xff] }
0x19f8   : > { %5452 = vmatprep.subr.bf16.mxu1 %v5451_v5  ;;  %5484 = vmatprep.subr.bf16.mxu0 %v5483_v6  ;;  %v5471_v5 = vpack.c.bf16 %v2995_v62, %v2994_v61  ;;  %v5503_v6 = vpack.c.bf16 %v3027_v16, %v3026_v18  ;;  %v5473_v19 = vpack.c.bf16 %v2979_v2, %v2978_v1  ;;  %v3050_v61 = vld [vmem:[%s7438_s18 + $0x290] sm:$0xff]  ;;  %v3083_v2 = vld [vmem:[%s7438_s18 + $0x398] sm:$0xff] }
0x19f9   : > { %4769 = vmatmul.mubr.msk.f32.gmra.mrb[30].mxu1 %vm720_vm0, %v6408_v9  ;;  %4771 = vmatmul.mubr.msk.f32.gmra.mrb[32].mxu0 %vm720_vm0, %v6408_v9  ;;  %v3082_v1 = vld [vmem:[%s7438_s18 + $0x390] sm:$0xff] }
0x19fa   : > { %3839 = vmatprep.mubr.f32.mxu1 %v5903_v14  ;;  %3916 = vmatprep.mubr.f32.mxu0 %v5903_v14 }
0x19fd   : > { %4772 = vmatmul.mubr.msk.f32.vlgmr.msra.gmra.mrb[32].mxu1 %vm720_vm0, %v6400_v47  ;;  %4774 = vmatmul.mubr.msk.f32.vlgmr.msra.gmra.mrb[34].mxu0 %vm720_vm0, %v6400_v47 }
0x19fe   : > { %3845 = vmatprep.mubr.f32.mxu1 %v5903_v14  ;;  %3922 = vmatprep.mubr.f32.mxu0 %v5903_v14  ;;  %v3004_v14 = vld [vmem:[%s7438_s18 + $0x120] sm:$0xff] }
0x19ff   : > { %5454 = vmatpush3.bf16.msra.mxu1 %v5453_v21  ;;  %5486 = vmatpush3.bf16.msra.mxu0 %v5485_v22  ;;  %v5493_v46 = vpack.c.bf16 %v3005_v39, %v3004_v14  ;;  %v2980_v21 = vld [vmem:[%s7438_s18 + $0x60] sm:$0xff]  ;;  %v5475_v22 = vpack.c.bf16 %v2997_v13, %v2996_v12  ;;  %v3015_v14 = vld [vmem:[%s7438_s18 + $0x178] sm:$0xff]  ;;  %v5549_v12 = vpack.c.bf16 %v3065_v60, %v3064_v59  ;;  %v6792_v59 = vld [vmem:[%s7437_s17 + $0x8] sm:$0xff] }
0x1a00   : > { %5456 = vmatprep.subr.bf16.mxu1 %v5455_v25  ;;  %5488 = vmatprep.subr.bf16.mxu0 %v5487_v26  ;;  %v3012_v25 = vld [vmem:[%s7438_s18 + $0x160] sm:$0xff]  ;;  %v3013_v26 = vld [vmem:[%s7438_s18 + $0x168] sm:$0xff]  ;;  %v5477_v27 = vpack.c.bf16 %v2981_v10, %v2980_v21  ;;  %v6742_v13 = vrot.slane %v6697_v52, %v3249_v56  ;;  %v3035_v10 = vld [vmem:[%s7438_s18 + $0x218] sm:$0xff] }
0x1a01   : > { %4773 = vmatmul.mubr.msk.f32.gmra.mrb[34].mxu1 %vm720_vm0, %v6408_v9  ;;  %4775 = vmatmul.mubr.msk.f32.gmra.mrb[36].mxu0 %vm720_vm0, %v6408_v9  ;;  %v5509_v24 = vpack.c.bf16 %v3013_v26, %v3012_v25  ;;  %v3066_v25 = vld [vmem:[%s7438_s18 + $0x310] sm:$0xff] }
0x1a02   : > { %v3054_v60 = vld [vmem:[%s7438_s18 + $0x2b0] sm:$0xff] }
0x1a03   : > { %5458 = vmatpush3.bf16.msra.mxu1 %v5457_v34  ;;  %5490 = vmatpush3.bf16.msra.mxu0 %v5489_v35  ;;  %v3031_v34 = vld [vmem:[%s7438_s18 + $0x1f8] sm:$0xff]  ;;  %v2982_v35 = vld [vmem:[%s7438_s18 + $0x70] sm:$0xff] }
0x1a04   : > { %5460 = vmatprep.subr.bf16.mxu1 %v5459_v38  ;;  %5492 = vmatprep.subr.bf16.mxu0 %v5491_v40  ;;  %v5511_v37 = vpack.c.bf16 %v3031_v34, %v3030_v32  ;;  %v5481_v38 = vpack.c.bf16 %v2983_v36, %v2982_v35  ;;  %v3014_v40 = vld [vmem:[%s7438_s18 + $0x170] sm:$0xff]  ;;  %v3052_v34 = vld [vmem:[%s7438_s18 + $0x2a0] sm:$0xff] }
0x1a05   : > { %v5513_v39 = vpack.c.bf16 %v3015_v14, %v3014_v40  ;;  %v3084_v40 = vld [vmem:[%s7438_s18 + $0x3a0] sm:$0xff]  ;;  %v3085_v14 = vld [vmem:[%s7438_s18 + $0x3a8] sm:$0xff] }
0x1a07   : > { %5462 = vmatpush3.bf16.msra.mxu1 %v5461_v45  ;;  %5494 = vmatpush3.bf16.msra.mxu0 %v5493_v46  ;;  %v3081_v45 = vld [vmem:[%s7438_s18 + $0x388] sm:$0xff] }
0x1a08   : > { %5464 = vmatprep.subr.bf16.mxu1 %v5463_v50  ;;  %5496 = vmatprep.subr.bf16.mxu0 %v5495_v51  ;;  %v5547_v46 = vpack.c.bf16 %v3081_v45, %v3080_v43  ;;  %v3229_v50 = vsub.s32 0, %v6690_v49  ;;  %v3237_v51 = vsub.s32 2, %v6690_v49 }
0x1a0a   : > { %v3230_v3 = vrot.slane %v6697_v52, %v3229_v50  ;;  %v3238_v28 = vrot.slane %v6697_v52, %v3237_v51 }
0x1a0b   : > { %5466 = vmatpush3.bf16.msra.mxu1 %v5465_v29  ;;  %5498 = vmatpush3.bf16.msra.mxu0 %v5497_v54  ;;  %v3242_v29 = vrot.slane %v6697_v52, %v3241_v53  ;;  %v3032_v54 = vld [vmem:[%s7438_s18 + $0x200] sm:$0xff] }
0x1a0c   : > { %5468 = vmatprep.subr.bf16.mxu1 %v5467_v57  ;;  %5500 = vmatprep.subr.bf16.mxu0 %v5499_v58  ;;  %v5517_v11 = vpack.c.bf16 %v3033_v55, %v3032_v54 }
0x1a0f   : > { %5470 = vmatpush3.bf16.msra.mxu1 %v5469_v63  ;;  %5502 = vmatpush3.bf16.msra.mxu0 %v5501_v0  ;;  %v3051_v0 = vld [vmem:[%s7438_s18 + $0x298] sm:$0xff] }
0x1a10   : > { %5472 = vmatprep.subr.bf16.mxu1 %v5471_v5  ;;  %5504 = vmatprep.subr.bf16.mxu0 %v5503_v6 }
0x1a13   : > { %5474 = vmatpush3.bf16.msra.mxu1 %v5473_v19  ;;  %5506 = vmatpush3.bf16.msra.mxu0 %v5505_v20 }
0x1a14   : > { %5476 = vmatprep.subr.bf16.mxu1 %v5475_v22  ;;  %5508 = vmatprep.subr.bf16.mxu0 %v5507_v23  ;;  %v5519_v22 = vpack.c.bf16 %v3051_v0, %v3050_v61  ;;  %v5551_v23 = vpack.c.bf16 %v3083_v2, %v3082_v1 }
0x1a17   : > { %5478 = vmatpush3.bf16.msra.mxu1 %v5477_v27  ;;  %5510 = vmatpush3.bf16.msra.mxu0 %v5509_v24 }
0x1a18   : > { %5480 = vmatprep.subr.bf16.mxu1 %v5479_v33  ;;  %5512 = vmatprep.subr.bf16.mxu0 %v5511_v37  ;;  %v3067_v33 = vld [vmem:[%s7438_s18 + $0x318] sm:$0xff]  ;;  %v6762_v37 = vrot.slane %v6697_v52, %v3257_v8 }
0x1a19   : > { %v5553_v48 = vpack.c.bf16 %v3067_v33, %v3066_v25  ;;  %v3056_v25 = vld [vmem:[%s7438_s18 + $0x2c0] sm:$0xff] }
0x1a1a   : > { %v3040_v33 = vld [vmem:[%s7438_s18 + $0x240] sm:$0xff] }
0x1a1b   : > { %5482 = vmatpush3.bf16.msra.mxu1 %v5481_v38  ;;  %5514 = vmatpush3.bf16.msra.mxu0 %v5513_v39  ;;  %v3053_v38 = vld [vmem:[%s7438_s18 + $0x2a8] sm:$0xff]  ;;  %v3036_v39 = vld [vmem:[%s7438_s18 + $0x220] sm:$0xff] }
0x1a1c   : > { %5516 = vmatprep.subr.bf16.mxu1 %v5515_v44  ;;  %5548 = vmatprep.subr.bf16.mxu0 %v5547_v46  ;;  %v5521_v46 = vpack.c.bf16 %v3035_v10, %v3034_v15  ;;  %v3039_v15 = vld [vmem:[%s7438_s18 + $0x238] sm:$0xff] }
0x1a1d   : > { %v3071_v10 = vld [vmem:[%s7438_s18 + $0x338] sm:$0xff] }
0x1ab8   : > { %v3379_v57 = vpop.f32.mrb[20].mxu1  ;;  %v3456_v58 = vpop.f32.mrb[22].mxu0 }
0x1ab9   : > { %v3380_v62 = vadd.f32 %v3379_v57, %v3230_v3  ;;  %v3457_v18 = vadd.f32 %v3456_v58, %v3238_v28  ;;  %v3381_v16 = vpop.f32.mrb[21].mxu1  ;;  %v3458_v63 = vpop.f32.mrb[23].mxu0  ;;  %v5523_v57 = vpack.c.bf16 %v3053_v38, %v3052_v34  ;;  %v5555_v58 = vpack.c.bf16 %v3085_v14, %v3084_v40  ;;  %v3041_v34 = vld [vmem:[%s7438_s18 + $0x248] sm:$0xff] }
0x1aba   : > { %v3382_v5 = vadd.f32 %v3381_v16, %v3234_v4  ;;  %v3459_v6 = vadd.f32 %v3458_v63, %v3242_v29  ;;  %v3086_v16 = vld [vmem:[%s7438_s18 + $0x3b0] sm:$0xff]  ;;  %v3087_v63 = vld [vmem:[%s7438_s18 + $0x3b8] sm:$0xff] }
0x1abb   : > { %v3929_v26 = vmax.f32 %v3380_v62, 0.0  ;;  %v3931_v27 = vmax.f32 %v3457_v18, 0.0  ;;  %v3055_v18 = vld [vmem:[%s7438_s18 + $0x2b8] sm:$0xff] }
0x1abc   : > { %v3930_v17 = vmax.f32 %v3382_v5, 0.0  ;;  %v3932_v19 = vmax.f32 %v3459_v6, 0.0  ;;  %v3385_v20 = vpop.f32.mrb[22].mxu1  ;;  %v3462_v21 = vpop.f32.mrb[24].mxu0  ;;  %v5525_v6 = vpack.c.bf16 %v3037_v41, %v3036_v39  ;;  %v3072_v39 = vld [vmem:[%s7438_s18 + $0x340] sm:$0xff]  ;;  %v3073_v41 = vld [vmem:[%s7438_s18 + $0x348] sm:$0xff] }
0x1abd   : > { %v3386_v24 = vadd.f32 %v3385_v20, %v3230_v3  ;;  %v3463_v30 = vadd.f32 %v3462_v21, %v3238_v28  ;;  %v3387_v31 = vpop.f32.mrb[23].mxu1  ;;  %v3464_v32 = vpop.f32.mrb[25].mxu0  ;;  %v3068_v3 = vld [vmem:[%s7438_s18 + $0x320] sm:$0xff]  ;;  %v3069_v28 = vld [vmem:[%s7438_s18 + $0x328] sm:$0xff]  ;;  %v3270_v20 = vrot.slane %v6792_v59, %v3237_v51  ;;  %v5527_v21 = vpack.c.bf16 %v3055_v18, %v3054_v60  ;;  %v3042_v60 = vld [vmem:[%s7438_s18 + $0x250] sm:$0xff] }
0x1abe   : > { %v3388_v35 = vadd.f32 %v3387_v31, %v3234_v4  ;;  %v3465_v36 = vadd.f32 %v3464_v32, %v3242_v29  ;;  %4031 = vmatprep.mubr.f32.mxu1 %v3930_v17  ;;  %4106 = vmatprep.mubr.f32.mxu0 %v3932_v19  ;;  %v3057_v51 = vld [vmem:[%s7438_s18 + $0x2c8] sm:$0xff] }
0x1abf   : > { %4032 = vmatmul.mubr.f32.vlgmr.msra.gmra.mrb[36].mxu1 %v3929_v26  ;;  %4107 = vmatmul.mubr.f32.vlgmr.msra.gmra.mrb[38].mxu0 %v3931_v27  ;;  %v3945_v4 = vmax.f32 %v3386_v24, 0.0  ;;  %v3947_v29 = vmax.f32 %v3463_v30, 0.0  ;;  %v3088_v26 = vld [vmem:[%s7438_s18 + $0x3c0] sm:$0xff]  ;;  %v3089_v27 = vld [vmem:[%s7438_s18 + $0x3c8] sm:$0xff]  ;;  %v5531_v40 = vpack.c.bf16 %v3057_v51, %v3056_v25 }
0x1ac0   : > { %v3946_v42 = vmax.f32 %v3388_v35, 0.0  ;;  %v3948_v43 = vmax.f32 %v3465_v36, 0.0  ;;  %5518 = vmatpush3.bf16.msra.mxu1 %v5517_v11  ;;  %5550 = vmatpush3.bf16.msra.mxu0 %v5549_v12  ;;  %v6779_v44 = vpop.f32.mrb[24].mxu1  ;;  %v6781_v45 = vpop.f32.mrb[26].mxu0  ;;  %v5557_v11 = vpack.c.bf16 %v3069_v28, %v3068_v3  ;;  %v3038_v12 = vld [vmem:[%s7438_s18 + $0x230] sm:$0xff]  ;;  %v5563_v14 = vpack.c.bf16 %v3089_v27, %v3088_v26  ;;  %v3091_v28 = vld [vmem:[%s7438_s18 + $0x3d8] sm:$0xff] }
0x1ac1   : > { %v3535_v54 = vpop.f32.mrb[25].mxu1  ;;  %v3612_v55 = vpop.f32.mrb[27].mxu0  ;;  %5520 = vmatprep.subr.bf16.mxu1 %v5519_v22  ;;  %5552 = vmatprep.subr.bf16.mxu0 %v5551_v23  ;;  %v5559_v22 = vpack.c.bf16 %v3087_v63, %v3086_v16  ;;  %v3070_v23 = vld [vmem:[%s7438_s18 + $0x330] sm:$0xff]  ;;  %v5529_v31 = vpack.c.bf16 %v3039_v15, %v3038_v12  ;;  %v3061_v12 = vld [vmem:[%s7438_s18 + $0x2e8] sm:$0xff]  ;;  %v3282_v15 = vrot.slane %v6792_v59, %v3249_v56  ;;  %v3044_v56 = vld [vmem:[%s7438_s18 + $0x260] sm:$0xff] }
0x1ac2   : > { %v3536_v61 = vadd.f32 %v3535_v54, %v6742_v13  ;;  %v3613_v62 = vadd.f32 %v3612_v55, %v6762_v37  ;;  %4036 = vmatprep.mubr.f32.mxu1 %v3946_v42  ;;  %4111 = vmatprep.mubr.f32.mxu0 %v3948_v43  ;;  %v5561_v32 = vpack.c.bf16 %v3071_v10, %v3070_v23  ;;  %v3058_v42 = vld [vmem:[%s7438_s18 + $0x2d0] sm:$0xff]  ;;  %v3245_v43 = vsub.s32 4, %v6690_v49  ;;  %v3076_v27 = vld [vmem:[%s7438_s18 + $0x360] sm:$0xff] }
0x1ac3   : > { %4037 = vmatmul.mubr.f32.gmra.mrb[38].mxu1 %v3945_v4  ;;  %4112 = vmatmul.mubr.f32.gmra.mrb[40].mxu0 %v3947_v29  ;;  %v3090_v3 = vld [vmem:[%s7438_s18 + $0x3d0] sm:$0xff]  ;;  %v5533_v4 = vpack.c.bf16 %v3041_v34, %v3040_v33  ;;  %v5565_v55 = vpack.c.bf16 %v3073_v41, %v3072_v39  ;;  %v3063_v39 = vld [vmem:[%s7438_s18 + $0x2f8] sm:$0xff] }
0x1ac4   : > { %v3934_v0 = vmax.f32 %v3536_v61, 0.0  ;;  %v3936_v1 = vmax.f32 %v3613_v62, 0.0  ;;  %5522 = vmatpush3.bf16.msra.mxu1 %v5521_v46  ;;  %5554 = vmatpush3.bf16.msra.mxu0 %v5553_v48  ;;  %v6808_v2 = vpop.f32.mrb[26].mxu1  ;;  %v6810_v5 = vpop.f32.mrb[28].mxu0  ;;  %v3253_v46 = vsub.s32 6, %v6690_v49  ;;  %v3059_v48 = vld [vmem:[%s7438_s18 + $0x2d8] sm:$0xff] }
0x1ac5   : > { %v6818_v17 = vpop.f32.mrb[27].mxu1  ;;  %v6820_v19 = vpop.f32.mrb[29].mxu0  ;;  %5524 = vmatprep.subr.bf16.mxu1 %v5523_v57  ;;  %5556 = vmatprep.subr.bf16.mxu0 %v5555_v58  ;;  %v3278_v57 = vrot.slane %v6792_v59, %v3245_v43  ;;  %v3043_v61 = vld [vmem:[%s7438_s18 + $0x258] sm:$0xff]  ;;  %v3074_v62 = vld [vmem:[%s7438_s18 + $0x350] sm:$0xff]  ;;  %v3177_v49 = vld [vmem:[%s7438_s18 + $0x688] sm:$0xff] }
0x1ac6   : > { %4181 = vmatprep.mubr.f32.mxu1 %v3934_v0  ;;  %4256 = vmatprep.mubr.f32.mxu0 %v3936_v1  ;;  %v3286_v58 = vrot.slane %v6792_v59, %v3253_v46  ;;  %v5535_v0 = vpack.c.bf16 %v3059_v48, %v3058_v42  ;;  %v5567_v1 = vpack.c.bf16 %v3091_v28, %v3090_v3  ;;  %v3094_v48 = vld [vmem:[%s7438_s18 + $0x3f0] sm:$0xff]  ;;  %v3095_v3 = vld [vmem:[%s7438_s18 + $0x3f8] sm:$0xff] }
0x1ac7   : > { %v5537_v25 = vpack.c.bf16 %v3043_v61, %v3042_v60  ;;  %v3246_v28 = vrot.slane %v6697_v52, %v3245_v43  ;;  %v3078_v43 = vld [vmem:[%s7438_s18 + $0x370] sm:$0xff] }
0x1ac8   : > { %5526 = vmatpush3.bf16.msra.mxu1 %v5525_v6  ;;  %5558 = vmatpush3.bf16.msra.mxu0 %v5557_v11  ;;  %v6843_v24 = vpop.f32.mrb[28].mxu1  ;;  %v3764_v30 = vpop.f32.mrb[30].mxu0  ;;  %v3075_v6 = vld [vmem:[%s7438_s18 + $0x358] sm:$0xff]  ;;  %v3060_v11 = vld [vmem:[%s7438_s18 + $0x2e0] sm:$0xff] }
0x1ac9   : > { %v6851_v35 = vadd.f32 %v3764_v30, %v3270_v20  ;;  %v6853_v36 = vpop.f32.mrb[29].mxu1  ;;  %v6855_v38 = vpop.f32.mrb[31].mxu0  ;;  %5528 = vmatprep.subr.bf16.mxu1 %v5527_v21  ;;  %5560 = vmatprep.subr.bf16.mxu0 %v5559_v22  ;;  %v3092_v21 = vld [vmem:[%s7438_s18 + $0x3e0] sm:$0xff]  ;;  %v3093_v22 = vld [vmem:[%s7438_s18 + $0x3e8] sm:$0xff]  ;;  %v5569_v51 = vpack.c.bf16 %v3075_v6, %v3074_v62  ;;  %v5539_v26 = vpack.c.bf16 %v3061_v12, %v3060_v11 }
0x1aca   : > { %v5571_v34 = vpack.c.bf16 %v3093_v22, %v3092_v21  ;;  %v5575_v12 = vpack.c.bf16 %v3095_v3, %v3094_v48  ;;  %v3079_v21 = vld [vmem:[%s7438_s18 + $0x378] sm:$0xff]  ;;  %v3112_v22 = vld [vmem:[%s7438_s18 + $0x480] sm:$0xff]  ;;  %v7016_v3 = vrot.slane %v6792_v59, %v3233_v7  ;;  %v3098_v7 = vld [vmem:[%s7438_s18 + $0x410] sm:$0xff] }
0x1acb   : > { %v3147_v48 = vld [vmem:[%s7438_s18 + $0x598] sm:$0xff] }
0x1acc   : > { %5530 = vmatpush3.bf16.msra.mxu1 %v5529_v31  ;;  %5562 = vmatpush3.bf16.msra.mxu0 %v5561_v32  ;;  %v6877_v29 = vpop.f32.mrb[30].mxu1  ;;  %v3770_v54 = vpop.f32.mrb[32].mxu0 }
0x1acd   : > { %v6890_v18 = vadd.f32 %v3770_v54, %v3270_v20  ;;  %v6892_v16 = vpop.f32.mrb[31].mxu1  ;;  %v6894_v63 = vpop.f32.mrb[33].mxu0  ;;  %5532 = vmatprep.subr.bf16.mxu1 %v5531_v40  ;;  %5564 = vmatprep.subr.bf16.mxu0 %v5563_v14  ;;  %v3290_v20 = vrot.slane %v6792_v59, %v3257_v8  ;;  %v3045_v8 = vld [vmem:[%s7438_s18 + $0x268] sm:$0xff]  ;;  %v3062_v14 = vld [vmem:[%s7438_s18 + $0x2f0] sm:$0xff] }
0x1ace   : > { %v3077_v40 = vld [vmem:[%s7438_s18 + $0x368] sm:$0xff]  ;;  %v5541_v60 = vpack.c.bf16 %v3045_v8, %v3044_v56  ;;  %v5543_v62 = vpack.c.bf16 %v3063_v39, %v3062_v14  ;;  %v3128_v8 = vld [vmem:[%s7438_s18 + $0x500] sm:$0xff]  ;;  %v3115_v14 = vld [vmem:[%s7438_s18 + $0x498] sm:$0xff] }
0x1acf   : > { %v5573_v61 = vpack.c.bf16 %v3077_v40, %v3076_v27  ;;  %v3129_v27 = vld [vmem:[%s7438_s18 + $0x508] sm:$0xff]  ;;  %v3146_v39 = vld [vmem:[%s7438_s18 + $0x590] sm:$0xff] }
0x1ad0   : > { %5534 = vmatpush3.bf16.msra.mxu1 %v5533_v4  ;;  %5566 = vmatpush3.bf16.msra.mxu0 %v5565_v55  ;;  %v3841_v23 = vpop.f32.mrb[32].mxu1  ;;  %v3918_v10 = vpop.f32.mrb[34].mxu0  ;;  %v3254_v4 = vrot.slane %v6697_v52, %v3253_v46 }
0x1ad1   : > { %v6926_v30 = vadd.f32 %v3841_v23, %v3278_v57  ;;  %v6928_v31 = vadd.f32 %v3918_v10, %v3286_v58  ;;  %v3843_v32 = vpop.f32.mrb[33].mxu1  ;;  %v3920_v33 = vpop.f32.mrb[35].mxu0  ;;  %5536 = vmatprep.subr.bf16.mxu1 %v5535_v0  ;;  %5568 = vmatprep.subr.bf16.mxu0 %v5567_v1  ;;  %v3046_v0 = vld [vmem:[%s7438_s18 + $0x270] sm:$0xff]  ;;  %v3047_v1 = vld [vmem:[%s7438_s18 + $0x278] sm:$0xff]  ;;  %v3144_v10 = vld [vmem:[%s7438_s18 + $0x580] sm:$0xff] }
0x1ad2   : > { %v6939_v41 = vadd.f32 %v3843_v32, %v3282_v15  ;;  %v6941_v42 = vadd.f32 %v3920_v33, %v3290_v20  ;;  %v3114_v32 = vld [vmem:[%s7438_s18 + $0x490] sm:$0xff]  ;;  %v3534_v33 = vadd.f32 %v6779_v44, %v3246_v28  ;;  %v3542_v44 = vadd.f32 %v6818_v17, %v6742_v13 }
0x1ad4   : > { %5538 = vmatpush3.bf16.msra.mxu1 %v5537_v25  ;;  %5570 = vmatpush3.bf16.msra.mxu0 %v5569_v51  ;;  %v3847_v54 = vpop.f32.mrb[34].mxu1  ;;  %v3924_v55 = vpop.f32.mrb[36].mxu0  ;;  %v3145_v25 = vld [vmem:[%s7438_s18 + $0x588] sm:$0xff]  ;;  %v3096_v51 = vld [vmem:[%s7438_s18 + $0x400] sm:$0xff]  ;;  %v3933_v13 = vmax.f32 %v3534_v33, 0.0  ;;  %v3151_v33 = vld [vmem:[%s7438_s18 + $0x5b8] sm:$0xff] }
0x1ad5   : > { %v6960_v52 = vadd.f32 %v3847_v54, %v3278_v57  ;;  %v6962_v46 = vadd.f32 %v3924_v55, %v3286_v58  ;;  %v3849_v6 = vpop.f32.mrb[35].mxu1  ;;  %v3926_v11 = vpop.f32.mrb[37].mxu0  ;;  %5540 = vmatprep.subr.bf16.mxu1 %v5539_v26  ;;  %5572 = vmatprep.subr.bf16.mxu0 %v5571_v34  ;;  %v3113_v57 = vld [vmem:[%s7438_s18 + $0x488] sm:$0xff]  ;;  %v3611_v34 = vadd.f32 %v6781_v45, %v3254_v4 }
0x1ad6   : > { %v6973_v23 = vadd.f32 %v3849_v6, %v3282_v15  ;;  %v6975_v58 = vadd.f32 %v3926_v11, %v3290_v20  ;;  %v3097_v26 = vld [vmem:[%s7438_s18 + $0x408] sm:$0xff]  ;;  %v5545_v15 = vpack.c.bf16 %v3047_v1, %v3046_v0  ;;  %v5577_v20 = vpack.c.bf16 %v3079_v21, %v3078_v43 }
0x1ad7   : > { %v5579_v56 = vpack.c.bf16 %v3113_v57, %v3112_v22  ;;  %v5611_v40 = vpack.c.bf16 %v3145_v25, %v3144_v10  ;;  %v3619_v45 = vadd.f32 %v6820_v19, %v6762_v37  ;;  %v7021_v54 = vrot.slane %v6792_v59, %v3241_v53  ;;  %v3099_v53 = vld [vmem:[%s7438_s18 + $0x418] sm:$0xff]  ;;  %v3149_v6 = vld [vmem:[%s7438_s18 + $0x5a8] sm:$0xff]  ;;  %v3100_v57 = vld [vmem:[%s7438_s18 + $0x420] sm:$0xff] }
0x1ad8   : > { %5542 = vmatpush3.bf16.msra.mxu1 %v5541_v60  ;;  %5574 = vmatpush3.bf16.msra.mxu0 %v5573_v61  ;;  %v5581_v55 = vpack.c.bf16 %v3097_v26, %v3096_v51  ;;  %v5613_v60 = vpack.c.bf16 %v3129_v27, %v3128_v8  ;;  %v5583_v61 = vpack.c.bf16 %v3115_v14, %v3114_v32  ;;  %v3935_v17 = vmax.f32 %v3611_v34, 0.0  ;;  %v3101_v10 = vld [vmem:[%s7438_s18 + $0x428] sm:$0xff]  ;;  %v3118_v8 = vld [vmem:[%s7438_s18 + $0x4b0] sm:$0xff]  ;;  %v3119_v27 = vld [vmem:[%s7438_s18 + $0x4b8] sm:$0xff] }
0x1ad9   : > { %5544 = vmatprep.subr.bf16.mxu1 %v5543_v62  ;;  %5576 = vmatprep.subr.bf16.mxu0 %v5575_v12  ;;  %v5615_v62 = vpack.c.bf16 %v3147_v48, %v3146_v39  ;;  %v3540_v37 = vadd.f32 %v6808_v2, %v3246_v28  ;;  %v3617_v19 = vadd.f32 %v6810_v5, %v3254_v4  ;;  %v3950_v0 = vmax.f32 %v3542_v44, 0.0  ;;  %v3130_v5 = vld [vmem:[%s7438_s18 + $0x510] sm:$0xff]  ;;  %v3131_v28 = vld [vmem:[%s7438_s18 + $0x518] sm:$0xff]  ;;  %v3116_v4 = vld [vmem:[%s7438_s18 + $0x4a0] sm:$0xff] }
0x1ada   : > { %v3952_v1 = vmax.f32 %v3619_v45, 0.0  ;;  %v3690_v43 = vadd.f32 %v6853_v36, %v7016_v3  ;;  %v3767_v2 = vadd.f32 %v6855_v38, %v7021_v54  ;;  %v3117_v36 = vld [vmem:[%s7438_s18 + $0x4a8] sm:$0xff]  ;;  %v3148_v38 = vld [vmem:[%s7438_s18 + $0x5a0] sm:$0xff]  ;;  %v5585_v21 = vpack.c.bf16 %v3099_v53, %v3098_v7  ;;  %v3150_v32 = vld [vmem:[%s7438_s18 + $0x5b0] sm:$0xff] }
0x1adb   : > { %v3949_v11 = vmax.f32 %v3540_v37, 0.0  ;;  %v3951_v12 = vmax.f32 %v3617_v19, 0.0  ;;  %v5617_v22 = vpack.c.bf16 %v3131_v28, %v3130_v5  ;;  %v5587_v26 = vpack.c.bf16 %v3117_v36, %v3116_v4  ;;  %v3102_v14 = vld [vmem:[%s7438_s18 + $0x430] sm:$0xff]  ;;  %v3103_v39 = vld [vmem:[%s7438_s18 + $0x438] sm:$0xff]  ;;  %v3104_v19 = vld [vmem:[%s7438_s18 + $0x440] sm:$0xff] }
0x1adc   : > { %5546 = vmatpush3.bf16.msra.mxu1 %v5545_v15  ;;  %5578 = vmatpush3.bf16.msra.mxu0 %v5577_v20  ;;  %v3938_v25 = vmax.f32 %v3690_v43, 0.0  ;;  %v3940_v51 = vmax.f32 %v3767_v2, 0.0  ;;  %v5619_v15 = vpack.c.bf16 %v3149_v6, %v3148_v38  ;;  %v3132_v20 = vld [vmem:[%s7438_s18 + $0x520] sm:$0xff]  ;;  %v5589_v34 = vpack.c.bf16 %v3101_v10, %v3100_v57  ;;  %v3134_v45 = vld [vmem:[%s7438_s18 + $0x530] sm:$0xff]  ;;  %v3105_v7 = vld [vmem:[%s7438_s18 + $0x448] sm:$0xff] }
0x1add   : > { %5580 = vmatprep.subr.bf16.mxu1 %v5579_v56  ;;  %5612 = vmatprep.subr.bf16.mxu0 %v5611_v40  ;;  %v3133_v56 = vld [vmem:[%s7438_s18 + $0x528] sm:$0xff]  ;;  %v5591_v48 = vpack.c.bf16 %v3119_v27, %v3118_v8  ;;  %v5623_v44 = vpack.c.bf16 %v3151_v33, %v3150_v32  ;;  %v3122_v2 = vld [vmem:[%s7438_s18 + $0x4d0] sm:$0xff]  ;;  %v3123_v5 = vld [vmem:[%s7438_s18 + $0x4d8] sm:$0xff]  ;;  %v5597_v36 = vpack.c.bf16 %v3105_v7, %v3104_v19 }
0x1ade   : > { %v5621_v40 = vpack.c.bf16 %v3133_v56, %v3132_v20  ;;  %v3137_v43 = vld [vmem:[%s7438_s18 + $0x548] sm:$0xff]  ;;  %v3154_v28 = vld [vmem:[%s7438_s18 + $0x5d0] sm:$0xff]  ;;  %v3155_v4 = vld [vmem:[%s7438_s18 + $0x5d8] sm:$0xff] }
0x1adf   : > { %4182 = vmatmul.mubr.f32.vlgmr.msra.gmra.mrb[40].mxu1 %v3933_v13  ;;  %4257 = vmatmul.mubr.f32.vlgmr.msra.gmra.mrb[42].mxu0 %v3935_v17  ;;  %v3153_v13 = vld [vmem:[%s7438_s18 + $0x5c8] sm:$0xff]  ;;  %v5593_v17 = vpack.c.bf16 %v3103_v39, %v3102_v14  ;;  %v3106_v6 = vld [vmem:[%s7438_s18 + $0x450] sm:$0xff]  ;;  %v3139_v57 = vld [vmem:[%s7438_s18 + $0x558] sm:$0xff] }
0x1ae0   : > { %4186 = vmatprep.mubr.f32.mxu1 %v3950_v0  ;;  %4261 = vmatprep.mubr.f32.mxu0 %v3952_v1  ;;  %v3136_v1 = vld [vmem:[%s7438_s18 + $0x540] sm:$0xff]  ;;  %v3109_v8 = vld [vmem:[%s7438_s18 + $0x468] sm:$0xff]  ;;  %v3127_v14 = vld [vmem:[%s7438_s18 + $0x4f8] sm:$0xff] }
0x1ae1   : > { %5582 = vmatpush3.bf16.msra.mxu1 %v5581_v55  ;;  %5614 = vmatpush3.bf16.msra.mxu0 %v5613_v60  ;;  %v3135_v55 = vld [vmem:[%s7438_s18 + $0x538] sm:$0xff]  ;;  %v3120_v60 = vld [vmem:[%s7438_s18 + $0x4c0] sm:$0xff]  ;;  %v5629_v38 = vpack.c.bf16 %v3137_v43, %v3136_v1  ;;  %v3158_v39 = vld [vmem:[%s7438_s18 + $0x5f0] sm:$0xff] }
0x1ae2   : > { %5584 = vmatprep.subr.bf16.mxu1 %v5583_v61  ;;  %5616 = vmatprep.subr.bf16.mxu0 %v5615_v62  ;;  %v3121_v61 = vld [vmem:[%s7438_s18 + $0x4c8] sm:$0xff]  ;;  %v3152_v62 = vld [vmem:[%s7438_s18 + $0x5c0] sm:$0xff]  ;;  %v5625_v37 = vpack.c.bf16 %v3135_v55, %v3134_v45  ;;  %v3110_v55 = vld [vmem:[%s7438_s18 + $0x470] sm:$0xff] }
0x1ae3   : > { %4187 = vmatmul.mubr.f32.gmra.mrb[42].mxu1 %v3949_v11  ;;  %4262 = vmatmul.mubr.f32.gmra.mrb[44].mxu0 %v3951_v12  ;;  %v5595_v53 = vpack.c.bf16 %v3121_v61, %v3120_v60  ;;  %v5627_v0 = vpack.c.bf16 %v3153_v13, %v3152_v62  ;;  %v3107_v11 = vld [vmem:[%s7438_s18 + $0x458] sm:$0xff]  ;;  %v5599_v12 = vpack.c.bf16 %v3123_v5, %v3122_v2  ;;  %v3124_v10 = vld [vmem:[%s7438_s18 + $0x4e0] sm:$0xff]  ;;  %v3161_v5 = vld [vmem:[%s7438_s18 + $0x608] sm:$0xff] }
0x1ae4   : > { %4331 = vmatprep.mubr.f32.mxu1 %v3938_v25  ;;  %4406 = vmatprep.mubr.f32.mxu0 %v3940_v51  ;;  %v3125_v25 = vld [vmem:[%s7438_s18 + $0x4e8] sm:$0xff]  ;;  %v3156_v51 = vld [vmem:[%s7438_s18 + $0x5e0] sm:$0xff]  ;;  %v3111_v60 = vld [vmem:[%s7438_s18 + $0x478] sm:$0xff]  ;;  %v3262_v61 = vrot.slane %v6792_v59, %v3229_v50 }
0x1ae5   : > { %5586 = vmatpush3.bf16.msra.mxu1 %v5585_v21  ;;  %5618 = vmatpush3.bf16.msra.mxu0 %v5617_v22  ;;  %v5631_v21 = vpack.c.bf16 %v3155_v4, %v3154_v28  ;;  %v3138_v22 = vld [vmem:[%s7438_s18 + $0x550] sm:$0xff]  ;;  %v3108_v56 = vld [vmem:[%s7438_s18 + $0x460] sm:$0xff]  ;;  %v5603_v27 = vpack.c.bf16 %v3125_v25, %v3124_v10  ;;  %v3209_v59 = vld [vmem:[%s7438_s18 + $0x788] sm:$0xff]  ;;  %v5609_v7 = vpack.c.bf16 %v3111_v60, %v3110_v55 }
0x1ae6   : > { %5588 = vmatprep.subr.bf16.mxu1 %v5587_v26  ;;  %5620 = vmatprep.subr.bf16.mxu0 %v5619_v15  ;;  %v3157_v26 = vld [vmem:[%s7438_s18 + $0x5e8] sm:$0xff]  ;;  %v5601_v15 = vpack.c.bf16 %v3107_v11, %v3106_v6  ;;  %v5633_v20 = vpack.c.bf16 %v3139_v57, %v3138_v22  ;;  %v3140_v33 = vld [vmem:[%s7438_s18 + $0x560] sm:$0xff]  ;;  %v3696_v28 = vadd.f32 %v6892_v16, %v7016_v3  ;;  %v3179_v6 = vld [vmem:[%s7438_s18 + $0x698] sm:$0xff]  ;;  %v3939_v11 = vmax.f32 %v6851_v35, 0.0 }
0x1ae7   : > { %v5635_v32 = vpack.c.bf16 %v3157_v26, %v3156_v51  ;;  %v3176_v19 = vld [vmem:[%s7438_s18 + $0x680] sm:$0xff]  ;;  %v3773_v4 = vadd.f32 %v6894_v63, %v7021_v54  ;;  %v3210_v16 = vld [vmem:[%s7438_s18 + $0x790] sm:$0xff]  ;;  %v3211_v63 = vld [vmem:[%s7438_s18 + $0x798] sm:$0xff] }
0x1ae8   : > { %v3208_v50 = vld [vmem:[%s7438_s18 + $0x780] sm:$0xff]  ;;  %v5643_v1 = vpack.c.bf16 %v3177_v49, %v3176_v19  ;;  %v3162_v22 = vld [vmem:[%s7438_s18 + $0x610] sm:$0xff]  ;;  %v3163_v57 = vld [vmem:[%s7438_s18 + $0x618] sm:$0xff]  ;;  %v3954_v10 = vmax.f32 %v3696_v28, 0.0  ;;  %v5679_v26 = vpack.c.bf16 %v3211_v63, %v3210_v16 }
0x1ae9   : > { %5590 = vmatpush3.bf16.msra.mxu1 %v5589_v34  ;;  %5622 = vmatpush3.bf16.msra.mxu0 %v5621_v40  ;;  %v3141_v34 = vld [vmem:[%s7438_s18 + $0x568] sm:$0xff]  ;;  %v3126_v40 = vld [vmem:[%s7438_s18 + $0x4f0] sm:$0xff]  ;;  %v5675_v43 = vpack.c.bf16 %v3209_v59, %v3208_v50  ;;  %v3160_v2 = vld [vmem:[%s7438_s18 + $0x600] sm:$0xff]  ;;  %v3956_v25 = vmax.f32 %v3773_v4, 0.0 }
0x1aea   : > { %5592 = vmatprep.subr.bf16.mxu1 %v5591_v48  ;;  %5624 = vmatprep.subr.bf16.mxu0 %v5623_v44  ;;  %v3159_v48 = vld [vmem:[%s7438_s18 + $0x5f8] sm:$0xff]  ;;  %v5605_v44 = vpack.c.bf16 %v3109_v8, %v3108_v56  ;;  %v5637_v45 = vpack.c.bf16 %v3141_v34, %v3140_v33  ;;  %v5607_v62 = vpack.c.bf16 %v3127_v14, %v3126_v40  ;;  %v3194_v35 = vld [vmem:[%s7438_s18 + $0x710] sm:$0xff]  ;;  %v3212_v56 = vld [vmem:[%s7438_s18 + $0x7a0] sm:$0xff] }
0x1aeb   : > { %v5639_v13 = vpack.c.bf16 %v3159_v48, %v3158_v39  ;;  %v5645_v3 = vpack.c.bf16 %v3161_v5, %v3160_v2  ;;  %v3213_v8 = vld [vmem:[%s7438_s18 + $0x7a8] sm:$0xff]  ;;  %v5649_v33 = vpack.c.bf16 %v3163_v57, %v3162_v22  ;;  %v3164_v40 = vld [vmem:[%s7438_s18 + $0x620] sm:$0xff]  ;;  %v3942_v39 = vmax.f32 %v6939_v41, 0.0  ;;  %v3182_v60 = vld [vmem:[%s7438_s18 + $0x6b0] sm:$0xff] }
0x1aec   : > { %v3165_v14 = vld [vmem:[%s7438_s18 + $0x628] sm:$0xff]  ;;  %v3944_v48 = vmax.f32 %v6941_v42, 0.0  ;;  %v3183_v41 = vld [vmem:[%s7438_s18 + $0x6b8] sm:$0xff]  ;;  %v3214_v42 = vld [vmem:[%s7438_s18 + $0x7b0] sm:$0xff] }
0x1aed   : > { %5594 = vmatpush3.bf16.msra.mxu1 %v5593_v17  ;;  %5626 = vmatpush3.bf16.msra.mxu0 %v5625_v37  ;;  %v3142_v17 = vld [vmem:[%s7438_s18 + $0x570] sm:$0xff]  ;;  %v3143_v37 = vld [vmem:[%s7438_s18 + $0x578] sm:$0xff]  ;;  %v3197_v55 = vld [vmem:[%s7438_s18 + $0x728] sm:$0xff]  ;;  %v5655_v19 = vpack.c.bf16 %v3183_v41, %v3182_v60 }
0x1aee   : > { %5596 = vmatprep.subr.bf16.mxu1 %v5595_v53  ;;  %5628 = vmatprep.subr.bf16.mxu0 %v5627_v0  ;;  %v5641_v53 = vpack.c.bf16 %v3143_v37, %v3142_v17  ;;  %v3688_v0 = vadd.f32 %v6843_v24, %v3262_v61  ;;  %v3192_v24 = vld [vmem:[%s7438_s18 + $0x700] sm:$0xff]  ;;  %v3166_v17 = vld [vmem:[%s7438_s18 + $0x630] sm:$0xff]  ;;  %v3167_v37 = vld [vmem:[%s7438_s18 + $0x638] sm:$0xff] }
0x1aef   : > { %v3198_v50 = vld [vmem:[%s7438_s18 + $0x730] sm:$0xff]  ;;  %v3199_v59 = vld [vmem:[%s7438_s18 + $0x738] sm:$0xff]  ;;  %v3168_v5 = vld [vmem:[%s7438_s18 + $0x640] sm:$0xff] }
0x1af0   : > { %v3937_v54 = vmax.f32 %v3688_v0, 0.0  ;;  %v3216_v0 = vld [vmem:[%s7438_s18 + $0x7c0] sm:$0xff]  ;;  %v5689_v2 = vpack.c.bf16 %v3199_v59, %v3198_v50  ;;  %v3169_v28 = vld [vmem:[%s7438_s18 + $0x648] sm:$0xff]  ;;  %v3187_v16 = vld [vmem:[%s7438_s18 + $0x6d8] sm:$0xff]  ;;  %v3957_v50 = vmax.f32 %v6960_v52, 0.0  ;;  %v3959_v59 = vmax.f32 %v6962_v46, 0.0 }
0x1af1   : > { %5598 = vmatpush3.bf16.msra.mxu1 %v5597_v36  ;;  %5630 = vmatpush3.bf16.msra.mxu0 %v5629_v38  ;;  %v3193_v36 = vld [vmem:[%s7438_s18 + $0x708] sm:$0xff]  ;;  %v3178_v38 = vld [vmem:[%s7438_s18 + $0x690] sm:$0xff]  ;;  %v3175_v41 = vld [vmem:[%s7438_s18 + $0x678] sm:$0xff] }
0x1af2   : > { %5600 = vmatprep.subr.bf16.mxu1 %v5599_v12  ;;  %5632 = vmatprep.subr.bf16.mxu0 %v5631_v21  ;;  %v3694_v12 = vadd.f32 %v6877_v29, %v3262_v61  ;;  %v5677_v21 = vpack.c.bf16 %v3193_v36, %v3192_v24  ;;  %v5647_v51 = vpack.c.bf16 %v3179_v6, %v3178_v38  ;;  %v3195_v29 = vld [vmem:[%s7438_s18 + $0x718] sm:$0xff]  ;;  %v3200_v36 = vld [vmem:[%s7438_s18 + $0x740] sm:$0xff]  ;;  %v3201_v38 = vld [vmem:[%s7438_s18 + $0x748] sm:$0xff] }
0x1af3   : > { %v5681_v34 = vpack.c.bf16 %v3195_v29, %v3194_v35  ;;  %v3215_v61 = vld [vmem:[%s7438_s18 + $0x7b8] sm:$0xff]  ;;  %v3186_v6 = vld [vmem:[%s7438_s18 + $0x6d0] sm:$0xff]  ;;  %v3220_v35 = vld [vmem:[%s7438_s18 + $0x7e0] sm:$0xff] }
0x1af4   : > { %v5687_v49 = vpack.c.bf16 %v3215_v61, %v3214_v42  ;;  %v3218_v63 = vld [vmem:[%s7438_s18 + $0x7d0] sm:$0xff]  ;;  %v5663_v22 = vpack.c.bf16 %v3187_v16, %v3186_v6  ;;  %v3221_v29 = vld [vmem:[%s7438_s18 + $0x7e8] sm:$0xff]  ;;  %v3207_v61 = vld [vmem:[%s7438_s18 + $0x778] sm:$0xff] }
0x1af5   : > { %5602 = vmatpush3.bf16.msra.mxu1 %v5601_v15  ;;  %5634 = vmatpush3.bf16.msra.mxu0 %v5633_v20  ;;  %v3180_v15 = vld [vmem:[%s7438_s18 + $0x6a0] sm:$0xff]  ;;  %v3181_v20 = vld [vmem:[%s7438_s18 + $0x6a8] sm:$0xff]  ;;  %v3206_v42 = vld [vmem:[%s7438_s18 + $0x770] sm:$0xff] }
0x1af6   : > { %5604 = vmatprep.subr.bf16.mxu1 %v5603_v27  ;;  %5636 = vmatprep.subr.bf16.mxu0 %v5635_v32  ;;  %v3953_v27 = vmax.f32 %v3694_v12, 0.0  ;;  %v3955_v32 = vmax.f32 %v6890_v18, 0.0  ;;  %v5683_v18 = vpack.c.bf16 %v3213_v8, %v3212_v56  ;;  %v3170_v12 = vld [vmem:[%s7438_s18 + $0x650] sm:$0xff]  ;;  %v3172_v56 = vld [vmem:[%s7438_s18 + $0x660] sm:$0xff]  ;;  %v3173_v8 = vld [vmem:[%s7438_s18 + $0x668] sm:$0xff] }
0x1af9   : > { %5606 = vmatpush3.bf16.msra.mxu1 %v5605_v44  ;;  %5638 = vmatpush3.bf16.msra.mxu0 %v5637_v45  ;;  %v5651_v44 = vpack.c.bf16 %v3181_v20, %v3180_v15  ;;  %v3196_v45 = vld [vmem:[%s7438_s18 + $0x720] sm:$0xff] }
0x1afa   : > { %5608 = vmatprep.subr.bf16.mxu1 %v5607_v62  ;;  %5640 = vmatprep.subr.bf16.mxu0 %v5639_v13  ;;  %v5653_v62 = vpack.c.bf16 %v3165_v14, %v3164_v40  ;;  %v5685_v13 = vpack.c.bf16 %v3197_v55, %v3196_v45  ;;  %v3190_v40 = vld [vmem:[%s7438_s18 + $0x6f0] sm:$0xff]  ;;  %v3191_v14 = vld [vmem:[%s7438_s18 + $0x6f8] sm:$0xff] }
0x1afb   : > { %v3174_v45 = vld [vmem:[%s7438_s18 + $0x670] sm:$0xff]  ;;  %v5671_v55 = vpack.c.bf16 %v3191_v14, %v3190_v40 }
0x1afd   : > { %5610 = vmatpush3.bf16.msra.mxu1 %v5609_v7  ;;  %5642 = vmatpush3.bf16.msra.mxu0 %v5641_v53  ;;  %v3184_v7 = vld [vmem:[%s7438_s18 + $0x6c0] sm:$0xff]  ;;  %v3185_v53 = vld [vmem:[%s7438_s18 + $0x6c8] sm:$0xff] }
0x1afe   : > { %5644 = vmatprep.subr.bf16.mxu1 %v5643_v1  ;;  %5676 = vmatprep.subr.bf16.mxu0 %v5675_v43  ;;  %v3217_v1 = vld [vmem:[%s7438_s18 + $0x7c8] sm:$0xff]  ;;  %v5657_v43 = vpack.c.bf16 %v3167_v37, %v3166_v17  ;;  %v5659_v4 = vpack.c.bf16 %v3185_v53, %v3184_v7  ;;  %v3941_v17 = vmax.f32 %v6926_v30, 0.0  ;;  %v3943_v37 = vmax.f32 %v6928_v31, 0.0  ;;  %v4776_v30 = vld [vmem:[%s7439_s19] ss:$0 sm:$0xff] }
0x1aff   : > { %v5691_v24 = vpack.c.bf16 %v3217_v1, %v3216_v0 }
0x1b00   : > { %4332 = vmatmul.mubr.f32.vlgmr.msra.gmra.mrb[44].mxu1 %v3937_v54  ;;  %4407 = vmatmul.mubr.f32.vlgmr.msra.gmra.mrb[46].mxu0 %v3939_v11  ;;  %v5661_v54 = vpack.c.bf16 %v3169_v28, %v3168_v5  ;;  %v5693_v11 = vpack.c.bf16 %v3201_v38, %v3200_v36 }
0x1b01   : > { %4336 = vmatprep.mubr.f32.mxu1 %v3954_v10  ;;  %4411 = vmatprep.mubr.f32.mxu0 %v3956_v25  ;;  %v3202_v10 = vld [vmem:[%s7438_s18 + $0x750] sm:$0xff]  ;;  %v3203_v25 = vld [vmem:[%s7438_s18 + $0x758] sm:$0xff] }
0x1b02   : > { %5646 = vmatpush3.bf16.msra.mxu1 %v5645_v3  ;;  %5678 = vmatpush3.bf16.msra.mxu0 %v5677_v21  ;;  %v3219_v3 = vld [vmem:[%s7438_s18 + $0x7d8] sm:$0xff]  ;;  %v5697_v20 = vpack.c.bf16 %v3203_v25, %v3202_v10 }
0x1b03   : > { %5648 = vmatprep.subr.bf16.mxu1 %v5647_v51  ;;  %5680 = vmatprep.subr.bf16.mxu0 %v5679_v26  ;;  %v3171_v21 = vld [vmem:[%s7438_s18 + $0x658] sm:$0xff]  ;;  %v5695_v57 = vpack.c.bf16 %v3219_v3, %v3218_v63  ;;  %v3188_v51 = vld [vmem:[%s7438_s18 + $0x6e0] sm:$0xff]  ;;  %v3189_v26 = vld [vmem:[%s7438_s18 + $0x6e8] sm:$0xff] }
0x1b04   : > { %4337 = vmatmul.mubr.f32.gmra.mrb[46].mxu1 %v3953_v27  ;;  %4412 = vmatmul.mubr.f32.gmra.mrb[48].mxu0 %v3955_v32  ;;  %v5665_v15 = vpack.c.bf16 %v3171_v21, %v3170_v12  ;;  %v5667_v27 = vpack.c.bf16 %v3189_v26, %v3188_v51  ;;  %v5699_v32 = vpack.c.bf16 %v3221_v29, %v3220_v35 }
0x1b05   : > { %4481 = vmatprep.mubr.f32.mxu1 %v3942_v39  ;;  %4556 = vmatprep.mubr.f32.mxu0 %v3944_v48  ;;  %v3222_v39 = vld [vmem:[%s7438_s18 + $0x7f0] sm:$0xff]  ;;  %v3223_v48 = vld [vmem:[%s7438_s18 + $0x7f8] sm:$0xff] }
0x1b06   : > { %5650 = vmatpush3.bf16.msra.mxu1 %v5649_v33  ;;  %5682 = vmatpush3.bf16.msra.mxu0 %v5681_v34  ;;  %v3204_v33 = vld [vmem:[%s7438_s18 + $0x760] sm:$0xff]  ;;  %v3205_v34 = vld [vmem:[%s7438_s18 + $0x768] sm:$0xff]  ;;  %v5703_v60 = vpack.c.bf16 %v3223_v48, %v3222_v39 }
0x1b07   : > { %5652 = vmatprep.subr.bf16.mxu1 %v5651_v44  ;;  %5684 = vmatprep.subr.bf16.mxu0 %v5683_v18  ;;  %v5669_v44 = vpack.c.bf16 %v3173_v8, %v3172_v56  ;;  %v5701_v18 = vpack.c.bf16 %v3205_v34, %v3204_v33 }
0x1b0a   : > { %5654 = vmatpush3.bf16.msra.mxu1 %v5653_v62  ;;  %5686 = vmatpush3.bf16.msra.mxu0 %v5685_v13  ;;  %v5673_v62 = vpack.c.bf16 %v3175_v41, %v3174_v45  ;;  %v5705_v13 = vpack.c.bf16 %v3207_v61, %v3206_v42 }
0x1b0b   : > { %5656 = vmatprep.subr.bf16.mxu1 %v5655_v19  ;;  %5688 = vmatprep.subr.bf16.mxu0 %v5687_v49  ;;  %v3958_v19 = vmax.f32 %v6973_v23, 0.0  ;;  %v3960_v49 = vmax.f32 %v6975_v58, 0.0 }
0x1b0e   : > { %5658 = vmatpush3.bf16.msra.mxu1 %v5657_v43  ;;  %5690 = vmatpush3.bf16.msra.mxu0 %v5689_v2 }
0x1b0f   : > { %5660 = vmatprep.subr.bf16.mxu1 %v5659_v4  ;;  %5692 = vmatprep.subr.bf16.mxu0 %v5691_v24 }
0x1b12   : > { %5662 = vmatpush3.bf16.msra.mxu1 %v5661_v54  ;;  %5694 = vmatpush3.bf16.msra.mxu0 %v5693_v11 }
0x1b13   : > { %5664 = vmatprep.subr.bf16.mxu1 %v5663_v22  ;;  %5696 = vmatprep.subr.bf16.mxu0 %v5695_v57 }
0x1b16   : > { %5666 = vmatpush3.bf16.msra.mxu1 %v5665_v15  ;;  %5698 = vmatpush3.bf16.msra.mxu0 %v5697_v20 }
0x1b17   : > { %5668 = vmatprep.subr.bf16.mxu1 %v5667_v27  ;;  %5700 = vmatprep.subr.bf16.mxu0 %v5699_v32 }
0x1b1a   : > { %5670 = vmatpush3.bf16.msra.mxu1 %v5669_v44  ;;  %5702 = vmatpush3.bf16.msra.mxu0 %v5701_v18 }
0x1b1b   : > { %5672 = vmatprep.subr.bf16.mxu1 %v5671_v55  ;;  %5704 = vmatprep.subr.bf16.mxu0 %v5703_v60 }
0x1b1e   : > { %5674 = vmatpush3.bf16.msra.mxu1 %v5673_v62  ;;  %5706 = vmatpush3.bf16.msra.mxu0 %v5705_v13 }
0x1b21   : > { %4482 = vmatmul.mubr.f32.vlgmr.msra.gmra.mrb[48].mxu1 %v3941_v17  ;;  %4557 = vmatmul.mubr.f32.vlgmr.msra.gmra.mrb[50].mxu0 %v3943_v37 }
0x1b22   : > { %4486 = vmatprep.mubr.f32.mxu1 %v3958_v19  ;;  %4561 = vmatprep.mubr.f32.mxu0 %v3960_v49 }
0x1b25   : > { %4487 = vmatmul.mubr.f32.gmra.mrb[50].mxu1 %v3957_v50  ;;  %4562 = vmatmul.mubr.f32.gmra.mrb[52].mxu0 %v3959_v59 }
0x1b92   : > { %v4900_v7 = vpop.f32.mrb[36].mxu1  ;;  %v4938_v53 = vpop.f32.mrb[38].mxu0 }
0x1b93   : > { %v4901_v31 = vpop.f32.mrb[37].mxu1  ;;  %v4939_v23 = vpop.f32.mrb[39].mxu0 }
0x1b94   : > { %v4902_v0 = vadd.f32 %v4901_v31, %v4900_v7  ;;  %v4940_v58 = vadd.f32 %v4939_v23, %v4938_v53 }
0x1b96   : > { %v4034_v1 = vadd.f32 %v4902_v0, %v4776_v30  ;;  %v4903_v43 = vpop.f32.mrb[38].mxu1  ;;  %v4941_v2 = vpop.f32.mrb[40].mxu0 }
0x1b97   : > { %v4904_v5 = vpop.f32.mrb[39].mxu1  ;;  %v4942_v28 = vpop.f32.mrb[41].mxu0 }
0x1b98   : > { %v4109_v52 = vadd.f32 %v4940_v58, %v4034_v1  ;;  %v4905_v4 = vadd.f32 %v4904_v5, %v4903_v43  ;;  %v4943_v46 = vadd.f32 %v4942_v28, %v4941_v2 }
0x1b9a   : > { %v4039_v24 = vadd.f32 %v4905_v4, %v4776_v30 }
0x1b9c   : > { %v4114_v36 = vadd.f32 %v4943_v46, %v4039_v24 }
0x1bb2   : > { %v4976_v38 = vpop.f32.mrb[40].mxu1  ;;  %v5014_v6 = vpop.f32.mrb[42].mxu0 }
0x1bb3   : > { %v4977_v16 = vpop.f32.mrb[41].mxu1  ;;  %v5015_v63 = vpop.f32.mrb[43].mxu0 }
0x1bb4   : > { %v4978_v3 = vadd.f32 %v4977_v16, %v4976_v38  ;;  %v5016_v54 = vadd.f32 %v5015_v63, %v5014_v6 }
0x1bb6   : > { %v4184_v11 = vadd.f32 %v4978_v3, %v4109_v52  ;;  %v4979_v12 = vpop.f32.mrb[42].mxu1  ;;  %v5017_v21 = vpop.f32.mrb[44].mxu0 }
0x1bb7   : > { %v4980_v22 = vpop.f32.mrb[43].mxu1  ;;  %v5018_v57 = vpop.f32.mrb[45].mxu0 }
0x1bb8   : > { %v4259_v10 = vadd.f32 %v5016_v54, %v4184_v11  ;;  %v4981_v25 = vadd.f32 %v4980_v22, %v4979_v12  ;;  %v5019_v51 = vadd.f32 %v5018_v57, %v5017_v21  ;;  %v4777_v54 = vld [vmem:[%s7440_s20] ss:$0 sm:$0xff] }
0x1bb9   : > { %v4778_v12 = vld [vmem:[%s7441_s21] ss:$0 sm:$0xff] }
0x1bba   : > { %v4189_v26 = vadd.f32 %v4981_v25, %v4114_v36 }
0x1bbc   : > { %v4264_v35 = vadd.f32 %v5019_v51, %v4189_v26 }
0x1bd3   : > { %v5052_v29 = vpop.f32.mrb[44].mxu1  ;;  %v5090_v15 = vpop.f32.mrb[46].mxu0 }
0x1bd4   : > { %v5053_v20 = vpop.f32.mrb[45].mxu1  ;;  %v5091_v56 = vpop.f32.mrb[47].mxu0 }
0x1bd5   : > { %v5054_v8 = vadd.f32 %v5053_v20, %v5052_v29  ;;  %v5092_v27 = vadd.f32 %v5091_v56, %v5090_v15 }
0x1bd7   : > { %v4334_v32 = vadd.f32 %v5054_v8, %v4259_v10  ;;  %v5055_v33 = vpop.f32.mrb[46].mxu1  ;;  %v5093_v34 = vpop.f32.mrb[48].mxu0 }
0x1bd8   : > { %v5056_v40 = vpop.f32.mrb[47].mxu1  ;;  %v5094_v14 = vpop.f32.mrb[49].mxu0 }
0x1bd9   : > { %v4409_v39 = vadd.f32 %v5092_v27, %v4334_v32  ;;  %v5057_v48 = vadd.f32 %v5056_v40, %v5055_v33  ;;  %v5095_v44 = vadd.f32 %v5094_v14, %v5093_v34 }
0x1bdb   : > { %v4339_v18 = vadd.f32 %v5057_v48, %v4264_v35 }
0x1bdd   : > { %v4414_v45 = vadd.f32 %v5095_v44, %v4339_v18 }
0x1bf4   : > { %v5128_v55 = vpop.f32.mrb[48].mxu1  ;;  %v5166_v60 = vpop.f32.mrb[50].mxu0 }
0x1bf5   : > { %v5129_v41 = vpop.f32.mrb[49].mxu1  ;;  %v5167_v42 = vpop.f32.mrb[51].mxu0 }
0x1bf6   : > { %v5130_v61 = vadd.f32 %v5129_v41, %v5128_v55  ;;  %v5168_v62 = vadd.f32 %v5167_v42, %v5166_v60 }
0x1bf8   : > { %v4484_v13 = vadd.f32 %v5130_v61, %v4409_v39  ;;  %v5131_v17 = vpop.f32.mrb[50].mxu1  ;;  %v5169_v37 = vpop.f32.mrb[52].mxu0 }
0x1bf9   : > { %v5132_v19 = vpop.f32.mrb[51].mxu1  ;;  %v5170_v49 = vpop.f32.mrb[53].mxu0 }
0x1bfa   : > { %v4559_v50 = vadd.f32 %v5168_v62, %v4484_v13  ;;  %v5133_v59 = vadd.f32 %v5132_v19, %v5131_v17  ;;  %v5171_v7 = vadd.f32 %v5170_v49, %v5169_v37 }
0x1bfc   : > { %v4489_v53 = vadd.f32 %v5133_v59, %v4414_v45  ;;  %v4567_v30 = vadd.f32 %v4559_v50, %v6400_v47 }
0x1bfe   : > { %v4564_v31 = vadd.f32 %v5171_v7, %v4489_v53  ;;  %v4571_v23 = vsel %vm720_vm0, %v4567_v30, 0.0 }
0x1bff   : > { %4572 = vadd.xlane.f32.xlu0 %v4571_v23 }
0x1c00   : > { %v4568_v0 = vadd.f32 %v4564_v31, %v6408_v9 }
0x1c02   : > { %v4574_v58 = vsel %vm720_vm0, %v4568_v0, 0.0 }
0x1c03   : > { %4575 = vadd.xlane.f32.xlu1 %v4574_v58 }
0x1c8c   : > { %v4573_v1 = vpop.xlane.xlu0 %4572 }
0x1c8d   : > { %v4577_v43 = vmul.f32 0.0625, %v4573_v1 }
0x1c8f   : > { %v4579_v2 = vsub.f32 %v4567_v30, %v4577_v43 }
0x1c90   : > { %v4576_v5 = vpop.xlane.xlu1 %4575 }
0x1c91   : > { %v4578_v28 = vmul.f32 0.0625, %v4576_v5  ;;  %v4581_v52 = vmul.f32 %v4579_v2, %v4579_v2 }
0x1c93   : > { %v4580_v4 = vsub.f32 %v4568_v0, %v4578_v28  ;;  %v4583_v46 = vsel %vm720_vm0, %v4581_v52, 0.0 }
0x1c94   : > { %4584 = vadd.xlane.f32.xlu0 %v4583_v46 }
0x1c95   : > { %v4582_v47 = vmul.f32 %v4580_v4, %v4580_v4 }
0x1c97   : > { %v4586_v24 = vsel %vm720_vm0, %v4582_v47, 0.0 }
0x1c98   : > { %4587 = vadd.xlane.f32.xlu1 %v4586_v24 }
0x1d21   : > { %v4585_v36 = vpop.xlane.xlu0 %4584 }
0x1d22   : > { %v4589_v9 = vmul.f32 0.0625, %v4585_v36 }
0x1d24   : > { %v4591_v38 = vadd.f32 1e-05, %v4589_v9 }
0x1d25   : > { %v4588_v6 = vpop.xlane.xlu1 %4587 }
0x1d26   : > { %5877 = vrsqrt.f32 %v4591_v38  ;;  %v4590_v16 = vmul.f32 0.0625, %v4588_v6 }
0x1d28   : > { %v4592_v63 = vadd.f32 1e-05, %v4590_v16 }
0x1d2a   : > { %5879 = vrsqrt.f32 %v4592_v63 }
0x1d30   : > { %v5878_v3 = vpop.eup %5877 }
0x1d31   : > { %v4595_v11 = vmul.f32 %v5878_v3, %v4579_v2 }
0x1d33   : > { %v4603_v21 = vmul.f32 %v4777_v54, %v4595_v11 }
0x1d34   : > { %v5880_v22 = vpop.eup %5879 }
0x1d35   : > { %v4611_v57 = vadd.f32 %v4778_v12, %v4603_v21  ;;  %v4596_v10 = vmul.f32 %v5880_v22, %v4580_v4 }
0x1d37   : > { %4613 = vst.msk [vmem:[%s703_s25] sm:$0xff] %vm720_vm0, %v4611_v57  ;;  %v4604_v25 = vmul.f32 %v4777_v54, %v4596_v10 }
0x1d39   : > { %v4612_v51 = vadd.f32 %v4778_v12, %v4604_v25 }
0x1d3b   : > { %4614 = vst.msk [vmem:[%s703_s25 + $0x8] sm:$0xff] %vm720_vm0, %v4612_v51 }
0x1d3c PF: > { %s32_s3 = sadd.s32 1, %s5887_s3  }
0x1d3d   : > { %p29_p4 = scmp.ge.s32.totalorder %s32_s3, 4  }
0x1d3f   :  { %31 = sbr.rel (!%p29_p4) target bundleno = 8 (0x8), region = 141 }

</bundles_post_ra>
